<compile_context>
chip_gen: v6e
topology: v6e:2x2x1
jax: 0.10.0
libtpu: 0.0.40
codegen_flags: <defaults>
</compile_context>

<pallas_src>
import functools
import math

import jax
import jax.numpy as jnp
from jax.experimental import pallas as pl
from jax.experimental.pallas import tpu as pltpu


def _round_up(n, m):
    return ((n + m - 1) // m) * m


# ----------------------------------------------------------------------------
# Fused MLP kernel: sequence of (Linear | LayerNorm) [+ ReLU], optional residual
# ----------------------------------------------------------------------------
def _fused_mlp_kernel(*refs, steps, has_pre, has_post, eps=1e-5):
    n_p = 2 * len(steps)
    x_ref = refs[0]
    p_refs = refs[1:1 + n_p]
    idx = 1 + n_p
    pre_ref = refs[idx] if has_pre else None
    if has_pre:
        idx += 1
    post_ref = refs[idx] if has_post else None
    if has_post:
        idx += 1
    o_ref = refs[idx]

    h = x_ref[...].astype(jnp.float32)
    if has_pre:
        h = h + pre_ref[...].astype(jnp.float32)
    for si, (kind, act) in enumerate(steps):
        a_ref, b_ref = p_refs[2 * si], p_refs[2 * si + 1]
        if kind == "linear":
            w = a_ref[...]                                   # bf16 weight
            h = jnp.dot(h.astype(w.dtype), w,
                        preferred_element_type=jnp.float32) + b_ref[...].astype(jnp.float32)
        else:  # layernorm (f32 statistics)
            mu = jnp.mean(h, axis=-1, keepdims=True)
            hc = h - mu
            var = jnp.mean(hc * hc, axis=-1, keepdims=True)
            h = hc * jax.lax.rsqrt(var + eps) * a_ref[...].astype(jnp.float32) \
                + b_ref[...].astype(jnp.float32)
        if act == "relu":
            h = jnp.maximum(h, 0.0)
    if has_post:
        h = h + post_ref[...].astype(jnp.float32)
    o_ref[...] = h.astype(o_ref.dtype)


def fused_mlp(x, steps, pre_add=None, post_add=None):
    """steps: list of ("linear", W, b, act) or ("layernorm", g, b, act); act in {"none","relu"}."""
    *lead, din = x.shape
    x2 = x.reshape(-1, din).astype(jnp.float32)
    rows = x2.shape[0]
    dout = din
    for kind, a, _, _ in steps:
        if kind == "linear":
            dout = a.shape[1]

    # row blocking: sublane-aligned blocks, "parallel" grid so v7x's 2 TCs both work
    bm = 16 if rows > 16 else _round_up(rows, 8)
    rows_p = _round_up(rows, bm)

    def pad_rows(a):
        return a if a.shape[0] == rows_p else jnp.pad(a, ((0, rows_p - a.shape[0]), (0, 0)))

    inputs = [pad_rows(x2)]
    in_specs = [pl.BlockSpec((bm, din), lambda i: (i, 0))]
    for _, a, b, _ in steps:
        inputs += [a, b]
        in_specs += [pl.BlockSpec(a.shape, lambda i: (0, 0)),
                     pl.BlockSpec(b.shape, lambda i: (0, 0))]
    has_pre = pre_add is not None
    has_post = post_add is not None
    if has_pre:
        inputs.append(pad_rows(pre_add.reshape(-1, din).astype(jnp.float32)))
        in_specs.append(pl.BlockSpec((bm, din), lambda i: (i, 0)))
    if has_post:
        inputs.append(pad_rows(post_add.reshape(-1, dout).astype(jnp.float32)))
        in_specs.append(pl.BlockSpec((bm, dout), lambda i: (i, 0)))

    out = pl.pallas_call(
        functools.partial(_fused_mlp_kernel,
                          steps=tuple((k, act) for k, _, _, act in steps),
                          has_pre=has_pre, has_post=has_post),
        grid=(rows_p // bm,),
        in_specs=in_specs,
        out_specs=pl.BlockSpec((bm, dout), lambda i: (i, 0)),
        out_shape=jax.ShapeDtypeStruct((rows_p, dout), jnp.float32),
        compiler_params=pltpu.CompilerParams(dimension_semantics=("parallel",)),
    )(*inputs)
    return out[:rows].reshape(*lead, dout)


# ----------------------------------------------------------------------------
# Fully fused nn.TransformerEncoderLayer kernel (post-norm, ReLU FFN, eval mode)
# ----------------------------------------------------------------------------
def _encoder_layer_kernel(x_ref, m_ref, wqkv_ref, bqkv_ref, wo_ref, bo_ref,
                          g1_ref, be1_ref, w1_ref, b1_ref, w2_ref, b2_ref,
                          g2_ref, be2_ref, o_ref, *, nhead, eps=1e-5):
    x = x_ref[0].astype(jnp.float32)                         # (S, D)
    S, D = x.shape
    dh = D // nhead
    scale = 1.0 / math.sqrt(dh)

    qkv = jnp.dot(x.astype(wqkv_ref.dtype), wqkv_ref[...],
                  preferred_element_type=jnp.float32) + bqkv_ref[...].astype(jnp.float32)
    mask = m_ref[0].astype(jnp.float32)                      # (1, S) additive key mask

    heads = []
    for hi in range(nhead):
        q = (qkv[:, hi * dh:(hi + 1) * dh] * scale).astype(jnp.bfloat16)
        k = qkv[:, D + hi * dh:D + (hi + 1) * dh].astype(jnp.bfloat16)
        v = qkv[:, 2 * D + hi * dh:2 * D + (hi + 1) * dh].astype(jnp.bfloat16)
        s = jnp.dot(q, k.T, preferred_element_type=jnp.float32)     # (S, S)
        s = s + mask
        s = s - jnp.max(s, axis=-1, keepdims=True)
        p = jnp.exp(s)
        p = p * pl.reciprocal(jnp.sum(p, axis=-1, keepdims=True), approx=True)
        heads.append(jnp.dot(p.astype(jnp.bfloat16), v,
                             preferred_element_type=jnp.float32))
    attn = jnp.concatenate(heads, axis=-1)                   # (S, D)
    attn = jnp.dot(attn.astype(wo_ref.dtype), wo_ref[...],
                   preferred_element_type=jnp.float32) + bo_ref[...].astype(jnp.float32)

    # residual + LayerNorm1
    h = x + attn
    mu = jnp.mean(h, axis=-1, keepdims=True)
    hc = h - mu
    var = jnp.mean(hc * hc, axis=-1, keepdims=True)
    h1 = hc * jax.lax.rsqrt(var + eps) * g1_ref[...].astype(jnp.float32) \
        + be1_ref[...].astype(jnp.float32)

    # FFN (Linear -> ReLU -> Linear), residual + LayerNorm2
    ff = jnp.dot(h1.astype(w1_ref.dtype), w1_ref[...],
                 preferred_element_type=jnp.float32) + b1_ref[...].astype(jnp.float32)
    ff = jnp.maximum(ff, 0.0)
    ff = jnp.dot(ff.astype(w2_ref.dtype), w2_ref[...],
                 preferred_element_type=jnp.float32) + b2_ref[...].astype(jnp.float32)
    h = h1 + ff
    mu = jnp.mean(h, axis=-1, keepdims=True)
    hc = h - mu
    var = jnp.mean(hc * hc, axis=-1, keepdims=True)
    h2 = hc * jax.lax.rsqrt(var + eps) * g2_ref[...].astype(jnp.float32) \
        + be2_ref[...].astype(jnp.float32)

    o_ref[0] = h2.astype(o_ref.dtype)


def pallas_encoder_layer(x, mask3, p, nhead):
    """x: (B, S, D) f32, mask3: (B, 1, S) additive f32 key-padding mask."""
    B, S, D = x.shape
    a = p["attn"]
    args = [x.astype(jnp.float32), mask3,
            a["in_proj_w"], a["in_proj_b"], a["out_proj_w"], a["out_proj_b"],
            p["norm1_g"], p["norm1_b"],
            p["lin1_w"], p["lin1_b"], p["lin2_w"], p["lin2_b"],
            p["norm2_g"], p["norm2_b"]]
    in_specs = [pl.BlockSpec((1, S, D), lambda b: (b, 0, 0)),
                pl.BlockSpec((1, 1, S), lambda b: (b, 0, 0))]
    in_specs += [pl.BlockSpec(w.shape, lambda b: (0, 0)) for w in args[2:]]
    return pl.pallas_call(
        functools.partial(_encoder_layer_kernel, nhead=nhead),
        grid=(B,),
        in_specs=in_specs,
        out_specs=pl.BlockSpec((1, S, D), lambda b: (b, 0, 0)),
        out_shape=jax.ShapeDtypeStruct((B, S, D), jnp.float32),
        compiler_params=pltpu.CompilerParams(dimension_semantics=("parallel",)),
    )(*args)


# ----------------------------------------------------------------------------
# Non-hot-path helpers (plain JAX glue, fused by XLA under jit)
# ----------------------------------------------------------------------------
def gelu(x):
    # TODO(synk): exact (erf) GELU stays in plain JAX; erf lowering inside Pallas not relied upon.
    return jax.nn.gelu(x, approximate=False)


def sinusoidal_emb(x, dim, input_dim, t_min, t_max):
    # TODO(synk): SinusoidalEmb source not provided; standard geometric-frequency sin/cos assumed.
    half = dim // (2 * input_dim)
    idx = jnp.arange(half, dtype=jnp.float32)
    periods = t_min * (t_max / t_min) ** (idx / max(half - 1, 1))
    ang = x[..., None].astype(jnp.float32) * (2.0 * jnp.pi / periods)   # (..., input_dim, half)
    emb = jnp.concatenate([jnp.sin(ang), jnp.cos(ang)], axis=-1)        # (..., input_dim, 2*half)
    return emb.reshape(x.shape[:-1] + (dim,))


def make_pe_table(d_model, max_len):
    half = d_model // 2
    pos = jnp.arange(max_len, dtype=jnp.float32)[:, None]
    div = jnp.exp(jnp.arange(0, half, 2, dtype=jnp.float32) * (-jnp.log(10000.0) / half))
    pe = jnp.zeros((max_len, half), jnp.float32)
    pe = pe.at[:, 0::2].set(jnp.sin(pos * div))
    pe = pe.at[:, 1::2].set(jnp.cos(pos * div))
    return pe


def get_rank_from_pts(pts, max_len):
    # TODO(synk): PositionalEncoding2D source not provided; rank = discretized grid index assumed.
    idx = jnp.floor((pts + 1.0) * 0.5 * max_len)
    return jnp.clip(idx, 0, max_len - 1).astype(jnp.int32)   # (B, L, 2)


def apply_pe2d(feature, rank, pe_table):
    px = pe_table[rank[..., 0]]
    py = pe_table[rank[..., 1]]
    return feature + jnp.concatenate([px, py], axis=-1)


def map_index(fmap, loc):
    # TODO(synk): MapIndexLayer source not provided; nearest-neighbor fmap lookup at loc assumed.
    B, C, H, W = fmap.shape
    ix = jnp.clip(jnp.round((loc[..., 0] + 1.0) * 0.5 * (W - 1)), 0, W - 1).astype(jnp.int32)
    iy = jnp.clip(jnp.round((loc[..., 1] + 1.0) * 0.5 * (H - 1)), 0, H - 1).astype(jnp.int32)
    fm = fmap.transpose(0, 2, 3, 1)                          # (B, H, W, C)
    return jax.vmap(lambda f, y, x: f[y, x])(fm, iy, ix)     # (B, L, C)


# ----------------------------------------------------------------------------
# Module forward passes (padded sequence length, masked padded keys)
# ----------------------------------------------------------------------------
def cond_layer_fwd(src, t_sin, fmap, loc_pad, mask3, p, cfg):
    nhead = cfg["nhead"]
    B, S, D = src.shape

    # map conditioning -> additive term for rows 1:
    map_info = map_index(fmap, loc_pad)                      # (B, S-1, C)
    map_embed = fused_mlp(map_info,
                          [("linear", p["map1_w"], p["map1_b"], "relu"),
                           ("linear", p["map2_w"], p["map2_b"], "relu"),
                           ("linear", p["map3_w"], p["map3_b"], "none")])
    addend = jnp.concatenate([jnp.zeros((B, 1, D), jnp.float32), map_embed], axis=1)

    # in block: (add + LayerNorm) fused, GELU in XLA, fused encoder layer
    h = fused_mlp(src, [("layernorm", p["in_norm_g"], p["in_norm_b"], "none")], pre_add=addend)
    h = gelu(h)
    h = pallas_encoder_layer(h, mask3, p["in_tel"], nhead)

    # time conditioning
    t_embed = fused_mlp(t_sin, [("linear", p["tm1_w"], p["tm1_b"], "relu"),
                                ("linear", p["tm2_w"], p["tm2_b"], "none")])    # (B, D)
    t_add = jnp.concatenate(
        [jnp.zeros((B, 1, D), jnp.float32),
         jnp.broadcast_to(t_embed[:, None, :], (B, S - 1, D))], axis=1)

    # out block
    h = fused_mlp(h, [("layernorm", p["out_norm_g"], p["out_norm_b"], "none")], pre_add=t_add)
    h = gelu(h)
    h = pallas_encoder_layer(h, mask3, p["out_tel"], nhead)

    # skip connection: LayerNorm(Linear(src)) + h, fused with post-residual
    return fused_mlp(src, [("linear", p["skip_w"], p["skip_b"], "none"),
                           ("layernorm", p["skip_norm_g"], p["skip_norm_b"], "none")],
                     post_add=h)


def noise_pred_body(f, t_emb, p):
    B, L, _ = f.shape
    xcat = jnp.concatenate(
        [f, jnp.broadcast_to(t_emb[:, None, :], (B, L, t_emb.shape[-1]))], axis=-1)
    # final d->2 matmul fused into the same kernel
    return fused_mlp(xcat, [("linear", p["b1_w"], p["b1_b"], "relu"),
                            ("linear", p["b2_w"], p["b2_b"], "relu"),
                            ("linear", p["b3_w"], p["b3_b"], "none")])


def conditional_encoder_fwd(src, t, fmap, loc_pad, mask3, params, cfg):
    np_p = params["noise_pred"]
    dt = cfg["dim_t_embed"]
    t_sin = sinusoidal_emb(t, dt, 1, 0.001, 10.0)            # shared by all time MLPs

    # noise-predictor time embedding is loop-invariant -> computed once
    t_mid = fused_mlp(t_sin, [("linear", np_p["tm1_w"], np_p["tm1_b"], "none")])
    t_emb_np = fused_mlp(gelu(t_mid), [("linear", np_p["tm2_w"], np_p["tm2_b"], "none")])

    output = src
    noise = None
    for lp in params["layers"]:
        output = cond_layer_fwd(output, t_sin, fmap, loc_pad, mask3, lp, cfg)
        noise = noise_pred_body(output[:, 1:], t_emb_np, np_p)       # (B, S-1, 2)
        loc_pad = jnp.clip(loc_pad - noise, -1.0, 1.0)
    return noise


def transformer_backbone_fwd(pos, original, fmap, t, mask, params, cfg):
    fields = ["pedestrian", "bicyclist", "vehicle"]
    B = fmap.shape[0]
    d = cfg["d_model"]
    dp, dc = cfg["dim_pos_embed"], cfg["dim_category_embed"]

    # build features for all three categories and run the head ONCE (fused)
    feats, lengths = [], []
    for i, field in enumerate(fields):
        p_f = pos[field]
        L = p_f.shape[1]
        lengths.append(L)
        pos_embed = sinusoidal_emb(p_f, dp, 2, 0.001, 1000.0)
        fcat = jnp.broadcast_to(params["cat_embed"][i][None, None, :], (B, L, dc))
        feats.append(jnp.concatenate([fcat, pos_embed], axis=-1))
    feat = jnp.concatenate(feats, axis=1)                    # (B, sumL, dp+dc)
    hp = params["head"]
    feature = fused_mlp(feat, [("linear", hp["w1"], hp["b1"], "none"),
                               ("layernorm", hp["ln1_g"], hp["ln1_b"], "relu"),
                               ("linear", hp["w2"], hp["b2"], "none"),
                               ("layernorm", hp["ln2_g"], hp["ln2_b"], "relu"),
                               ("linear", hp["w3"], hp["b3"], "none")])
    orig = jnp.concatenate([original[f] for f in fields], axis=1)
    rank = get_rank_from_pts(orig, cfg["max_len"])
    feature = apply_pe2d(feature, rank, params["pe_table"])

    x = jnp.concatenate(
        [jnp.broadcast_to(params["empty_token"][None, None, :], (B, 1, d)), feature], axis=1)

    sumL = sum(lengths)
    S = 1 + sumL
    S_pad = _round_up(S, 8)                                  # sublane-aligned sequence

    # key-padding mask: bool True=ignore -> -1e9; float treated as additive (PyTorch semantics)
    if mask.dtype == jnp.bool_:
        mask_add = jnp.where(mask, -1e9, 0.0).astype(jnp.float32)
    else:
        mask_add = mask.astype(jnp.float32)
    full_mask = jnp.concatenate([jnp.zeros((B, 1), jnp.float32), mask_add], axis=1)
    full_mask = jnp.pad(full_mask, ((0, 0), (0, S_pad - S)), constant_values=-1e9)
    mask3 = full_mask[:, None, :]                            # (B, 1, S_pad)

    x = jnp.pad(x, ((0, 0), (0, S_pad - S), (0, 0)))
    loc = jnp.concatenate([pos[f] for f in fields], axis=1)  # (B, sumL, 2)
    loc_pad = jnp.pad(loc, ((0, 0), (0, S_pad - 1 - sumL), (0, 0)))

    noise = conditional_encoder_fwd(x, t, fmap, loc_pad, mask3, params, cfg)
    noise = noise[:, :sumL]
    l0, l1 = lengths[0], lengths[1]
    return {"pedestrian": noise[:, :l0],
            "bicyclist": noise[:, l0:l0 + l1],
            "vehicle": noise[:, l0 + l1:]}


# ----------------------------------------------------------------------------
# Deterministic parameter construction (weights bf16, biases / LN params f32)
# ----------------------------------------------------------------------------
class ParamGen:
    def __init__(self, seed=42):
        self.key = jax.random.PRNGKey(seed)

    def normal(self, shape, scale=0.02):
        self.key, sub = jax.random.split(self.key)
        return (scale * jax.random.normal(sub, shape)).astype(jnp.float32)


def build_params(cfg, gen):
    d, ff = cfg["d_model"], cfg["dim_feedforward"]
    dt, dm = cfg["dim_t_embed"], cfg["dim_map_embed"]
    dp, dc = cfg["dim_pos_embed"], cfg["dim_category_embed"]

    def lin(i, o):
        return gen.normal((i, o)).astype(jnp.bfloat16), jnp.zeros((1, o), jnp.float32)

    def ln(n):
        return jnp.ones((1, n), jnp.float32), jnp.zeros((1, n), jnp.float32)

    def tel():
        inw, inb = lin(d, 3 * d)
        ow, ob = lin(d, d)
        l1w, l1b = lin(d, ff)
        l2w, l2b = lin(ff, d)
        n1g, n1b = ln(d)
        n2g, n2b = ln(d)
        return dict(attn=dict(in_proj_w=inw, in_proj_b=inb, out_proj_w=ow, out_proj_b=ob),
                    lin1_w=l1w, lin1_b=l1b, lin2_w=l2w, lin2_b=l2b,
                    norm1_g=n1g, norm1_b=n1b, norm2_g=n2g, norm2_b=n2b)

    def cond_layer():
        in_g, in_b = ln(d)
        out_g, out_b = ln(d)
        tm1w, tm1b = lin(dt, d)
        tm2w, tm2b = lin(d, d)
        skw, skb = lin(d, d)
        skg, skbeta = ln(d)
        m1w, m1b = lin(dm, d)
        m2w, m2b = lin(d, d)
        m3w, m3b = lin(d, d)
        return dict(in_norm_g=in_g, in_norm_b=in_b, in_tel=tel(),
                    out_norm_g=out_g, out_norm_b=out_b, out_tel=tel(),
                    tm1_w=tm1w, tm1_b=tm1b, tm2_w=tm2w, tm2_b=tm2b,
                    skip_w=skw, skip_b=skb, skip_norm_g=skg, skip_norm_b=skbeta,
                    map1_w=m1w, map1_b=m1b, map2_w=m2w, map2_b=m2b,
                    map3_w=m3w, map3_b=m3b)

    hw1, hb1 = lin(dp + dc, 2 * d)
    hg1, hbt1 = ln(2 * d)
    hw2, hb2 = lin(2 * d, d)
    hg2, hbt2 = ln(d)
    hw3, hb3 = lin(d, d)
    head = dict(w1=hw1, b1=hb1, ln1_g=hg1, ln1_b=hbt1,
                w2=hw2, b2=hb2, ln2_g=hg2, ln2_b=hbt2, w3=hw3, b3=hb3)

    tm1w, tm1b = lin(dt, dt)
    tm2w, tm2b = lin(dt, dt)
    b1w, b1b = lin(d + dt, d)
    b2w, b2b = lin(d, d)
    b3w, b3b = lin(d, 2)
    noise_pred = dict(tm1_w=tm1w, tm1_b=tm1b, tm2_w=tm2w, tm2_b=tm2b,
                      b1_w=b1w, b1_b=b1b, b2_w=b2w, b2_b=b2b, b3_w=b3w, b3_b=b3b)

    layers = [cond_layer() for _ in range(cfg["n_layers"])]

    return dict(head=head, layers=layers, noise_pred=noise_pred,
                cat_embed=gen.normal((3, dc)),
                empty_token=gen.normal((d,)),
                pe_table=make_pe_table(d, cfg["max_len"]))


# ----------------------------------------------------------------------------
# Main
# ----------------------------------------------------------------------------
if __name__ == "__main__":
    cfg = dict(d_model=128, n_layers=2, nhead=4, dim_pos_embed=64, dim_map_embed=32,
               dim_category_embed=32, dim_feedforward=256, dim_t_embed=32, max_len=100)

    params = build_params(cfg, ParamGen(seed=42))

    key = jax.random.PRNGKey(0)
    ks = jax.random.split(key, 10)
    B = 2
    lens = {"pedestrian": 4, "bicyclist": 3, "vehicle": 5}
    sumL = sum(lens.values())

    pos = {f: jax.random.uniform(ks[i], (B, L, 2), minval=-1.0, maxval=1.0)
           for i, (f, L) in enumerate(lens.items())}
    original = {f: jax.random.uniform(ks[3 + i], (B, L, 2), minval=-1.0, maxval=1.0)
                for i, (f, L) in enumerate(lens.items())}
    fmap = jax.random.normal(ks[6], (B, cfg["dim_map_embed"], 8, 8))
    t = jax.random.uniform(ks[7], (B, 1), minval=0.001, maxval=10.0)
    mask = jnp.zeros((B, sumL), jnp.float32)   # additive key-padding mask (no padding)

    fwd = jax.jit(functools.partial(transformer_backbone_fwd, cfg=cfg))
    out = fwd(pos, original, fmap, t, mask, params)
    out = jax.block_until_ready(out)

    assert out["pedestrian"].shape == (B, lens["pedestrian"], 2)
    assert out["bicyclist"].shape == (B, lens["bicyclist"], 2)
    assert out["vehicle"].shape == (B, lens["vehicle"], 2)
    for v in out.values():
        assert bool(jnp.all(jnp.isfinite(v)))
    print("KERNEL_OK")
</pallas_src>

<mosaic_0001>
module attributes {stable_mosaic.version = 11 : i64} {
  func.func @_fused_mlp_kernel(%arg0: i32, %arg1: memref<16x96xf32, #tpu.memory_space<vmem>>, %arg2: memref<96x256xbf16, #tpu.memory_space<vmem>>, %arg3: memref<1x256xf32, #tpu.memory_space<vmem>>, %arg4: memref<1x256xf32, #tpu.memory_space<vmem>>, %arg5: memref<1x256xf32, #tpu.memory_space<vmem>>, %arg6: memref<256x128xbf16, #tpu.memory_space<vmem>>, %arg7: memref<1x128xf32, #tpu.memory_space<vmem>>, %arg8: memref<1x128xf32, #tpu.memory_space<vmem>>, %arg9: memref<1x128xf32, #tpu.memory_space<vmem>>, %arg10: memref<128x128xbf16, #tpu.memory_space<vmem>>, %arg11: memref<1x128xf32, #tpu.memory_space<vmem>>, %arg12: memref<16x128xf32, #tpu.memory_space<vmem>>) attributes {dimension_semantics = [#tpu.dimension_semantics<parallel>], iteration_bounds = array<i64: 2>, scalar_prefetch = 0 : i64, scratch_operands = 0 : i64, tpu.core_type = #tpu.core_type<tc>, window_params = [{transform_indices = @transform_0, window_bounds = array<i64: 16, 96>}, {pipeline_mode = #tpu.pipeline_mode<synchronous>, transform_indices = @transform_1, window_bounds = array<i64: 96, 256>}, {pipeline_mode = #tpu.pipeline_mode<synchronous>, transform_indices = @transform_2, window_bounds = array<i64: 1, 256>}, {pipeline_mode = #tpu.pipeline_mode<synchronous>, transform_indices = @transform_3, window_bounds = array<i64: 1, 256>}, {pipeline_mode = #tpu.pipeline_mode<synchronous>, transform_indices = @transform_4, window_bounds = array<i64: 1, 256>}, {pipeline_mode = #tpu.pipeline_mode<synchronous>, transform_indices = @transform_5, window_bounds = array<i64: 256, 128>}, {pipeline_mode = #tpu.pipeline_mode<synchronous>, transform_indices = @transform_6, window_bounds = array<i64: 1, 128>}, {pipeline_mode = #tpu.pipeline_mode<synchronous>, transform_indices = @transform_7, window_bounds = array<i64: 1, 128>}, {pipeline_mode = #tpu.pipeline_mode<synchronous>, transform_indices = @transform_8, window_bounds = array<i64: 1, 128>}, {pipeline_mode = #tpu.pipeline_mode<synchronous>, transform_indices = @transform_9, window_bounds = array<i64: 128, 128>}, {pipeline_mode = #tpu.pipeline_mode<synchronous>, transform_indices = @transform_10, window_bounds = array<i64: 1, 128>}, {transform_indices = @transform_11, window_bounds = array<i64: 16, 128>}]} {
    %c0 = arith.constant 0 : index
    %c0_0 = arith.constant 0 : index
    %0 = vector.load %arg1[%c0, %c0_0] : memref<16x96xf32, #tpu.memory_space<vmem>>, vector<16x96xf32>
    %c0_1 = arith.constant 0 : index
    %c0_2 = arith.constant 0 : index
    %1 = vector.load %arg2[%c0_1, %c0_2] : memref<96x256xbf16, #tpu.memory_space<vmem>>, vector<96x256xbf16>
    %2 = arith.truncf %0 : vector<16x96xf32> to vector<16x96xbf16>
    %cst = arith.constant dense<0.000000e+00> : vector<16x256xf32>
    %3 = tpu.matmul %2, %1, %cst {dimension_numbers = #tpu.dot_dimension_numbers<[1], [0], [0], [1], [0, 0, 1, 1], [], []>} : vector<16x96xbf16>, vector<96x256xbf16>, vector<16x256xf32> -> vector<16x256xf32>
    %c0_3 = arith.constant 0 : index
    %c0_4 = arith.constant 0 : index
    %4 = vector.load %arg3[%c0_3, %c0_4] : memref<1x256xf32, #tpu.memory_space<vmem>>, vector<1x256xf32>
    %5 = vector.broadcast %4 : vector<1x256xf32> to vector<16x256xf32>
    %6 = arith.addf %3, %5 : vector<16x256xf32>
    %cst_5 = arith.constant dense<0.000000e+00> : vector<16xf32>
    %7 = vector.multi_reduction <add>, %6, %cst_5 [1] : vector<16x256xf32> to vector<16xf32>
    %8 = vector.shape_cast %7 : vector<16xf32> to vector<16x1xf32>
    %cst_6 = arith.constant 2.560000e+02 : f32
    %9 = vector.broadcast %cst_6 : f32 to vector<16x1xf32>
    %10 = arith.divf %8, %9 : vector<16x1xf32>
    %11 = vector.broadcast %10 : vector<16x1xf32> to vector<16x256xf32>
    %12 = arith.subf %6, %11 : vector<16x256xf32>
    %13 = arith.mulf %12, %12 : vector<16x256xf32>
    %cst_7 = arith.constant dense<0.000000e+00> : vector<16xf32>
    %14 = vector.multi_reduction <add>, %13, %cst_7 [1] : vector<16x256xf32> to vector<16xf32>
    %15 = vector.shape_cast %14 : vector<16xf32> to vector<16x1xf32>
    %cst_8 = arith.constant 2.560000e+02 : f32
    %16 = vector.broadcast %cst_8 : f32 to vector<16x1xf32>
    %17 = arith.divf %15, %16 : vector<16x1xf32>
    %cst_9 = arith.constant 9.99999974E-6 : f32
    %18 = vector.broadcast %cst_9 : f32 to vector<16x1xf32>
    %19 = arith.addf %17, %18 : vector<16x1xf32>
    %20 = math.rsqrt %19 : vector<16x1xf32>
    %21 = vector.broadcast %20 : vector<16x1xf32> to vector<16x256xf32>
    %22 = arith.mulf %12, %21 : vector<16x256xf32>
    %c0_10 = arith.constant 0 : index
    %c0_11 = arith.constant 0 : index
    %23 = vector.load %arg4[%c0_10, %c0_11] : memref<1x256xf32, #tpu.memory_space<vmem>>, vector<1x256xf32>
    %24 = vector.broadcast %23 : vector<1x256xf32> to vector<16x256xf32>
    %25 = arith.mulf %22, %24 : vector<16x256xf32>
    %c0_12 = arith.constant 0 : index
    %c0_13 = arith.constant 0 : index
    %26 = vector.load %arg5[%c0_12, %c0_13] : memref<1x256xf32, #tpu.memory_space<vmem>>, vector<1x256xf32>
    %27 = vector.broadcast %26 : vector<1x256xf32> to vector<16x256xf32>
    %28 = arith.addf %25, %27 : vector<16x256xf32>
    %cst_14 = arith.constant 0.000000e+00 : f32
    %29 = vector.broadcast %cst_14 : f32 to vector<16x256xf32>
    %30 = arith.maximumf %28, %29 : vector<16x256xf32>
    %c0_15 = arith.constant 0 : index
    %c0_16 = arith.constant 0 : index
    %31 = vector.load %arg6[%c0_15, %c0_16] : memref<256x128xbf16, #tpu.memory_space<vmem>>, vector<256x128xbf16>
    %32 = arith.truncf %30 : vector<16x256xf32> to vector<16x256xbf16>
    %cst_17 = arith.constant dense<0.000000e+00> : vector<16x128xf32>
    %33 = tpu.matmul %32, %31, %cst_17 {dimension_numbers = #tpu.dot_dimension_numbers<[1], [0], [0], [1], [0, 0, 1, 1], [], []>} : vector<16x256xbf16>, vector<256x128xbf16>, vector<16x128xf32> -> vector<16x128xf32>
    %c0_18 = arith.constant 0 : index
    %c0_19 = arith.constant 0 : index
    %34 = vector.load %arg7[%c0_18, %c0_19] : memref<1x128xf32, #tpu.memory_space<vmem>>, vector<1x128xf32>
    %35 = vector.broadcast %34 : vector<1x128xf32> to vector<16x128xf32>
    %36 = arith.addf %33, %35 : vector<16x128xf32>
    %cst_20 = arith.constant dense<0.000000e+00> : vector<16xf32>
    %37 = vector.multi_reduction <add>, %36, %cst_20 [1] : vector<16x128xf32> to vector<16xf32>
    %38 = vector.shape_cast %37 : vector<16xf32> to vector<16x1xf32>
    %cst_21 = arith.constant 1.280000e+02 : f32
    %39 = vector.broadcast %cst_21 : f32 to vector<16x1xf32>
    %40 = arith.divf %38, %39 : vector<16x1xf32>
    %41 = vector.broadcast %40 : vector<16x1xf32> to vector<16x128xf32>
    %42 = arith.subf %36, %41 : vector<16x128xf32>
    %43 = arith.mulf %42, %42 : vector<16x128xf32>
    %cst_22 = arith.constant dense<0.000000e+00> : vector<16xf32>
    %44 = vector.multi_reduction <add>, %43, %cst_22 [1] : vector<16x128xf32> to vector<16xf32>
    %45 = vector.shape_cast %44 : vector<16xf32> to vector<16x1xf32>
    %cst_23 = arith.constant 1.280000e+02 : f32
    %46 = vector.broadcast %cst_23 : f32 to vector<16x1xf32>
    %47 = arith.divf %45, %46 : vector<16x1xf32>
    %cst_24 = arith.constant 9.99999974E-6 : f32
    %48 = vector.broadcast %cst_24 : f32 to vector<16x1xf32>
    %49 = arith.addf %47, %48 : vector<16x1xf32>
    %50 = math.rsqrt %49 : vector<16x1xf32>
    %51 = vector.broadcast %50 : vector<16x1xf32> to vector<16x128xf32>
    %52 = arith.mulf %42, %51 : vector<16x128xf32>
    %c0_25 = arith.constant 0 : index
    %c0_26 = arith.constant 0 : index
    %53 = vector.load %arg8[%c0_25, %c0_26] : memref<1x128xf32, #tpu.memory_space<vmem>>, vector<1x128xf32>
    %54 = vector.broadcast %53 : vector<1x128xf32> to vector<16x128xf32>
    %55 = arith.mulf %52, %54 : vector<16x128xf32>
    %c0_27 = arith.constant 0 : index
    %c0_28 = arith.constant 0 : index
    %56 = vector.load %arg9[%c0_27, %c0_28] : memref<1x128xf32, #tpu.memory_space<vmem>>, vector<1x128xf32>
    %57 = vector.broadcast %56 : vector<1x128xf32> to vector<16x128xf32>
    %58 = arith.addf %55, %57 : vector<16x128xf32>
    %cst_29 = arith.constant 0.000000e+00 : f32
    %59 = vector.broadcast %cst_29 : f32 to vector<16x128xf32>
    %60 = arith.maximumf %58, %59 : vector<16x128xf32>
    %c0_30 = arith.constant 0 : index
    %c0_31 = arith.constant 0 : index
    %61 = vector.load %arg10[%c0_30, %c0_31] : memref<128x128xbf16, #tpu.memory_space<vmem>>, vector<128x128xbf16>
    %62 = arith.truncf %60 : vector<16x128xf32> to vector<16x128xbf16>
    %cst_32 = arith.constant dense<0.000000e+00> : vector<16x128xf32>
    %63 = tpu.matmul %62, %61, %cst_32 {dimension_numbers = #tpu.dot_dimension_numbers<[1], [0], [0], [1], [0, 0, 1, 1], [], []>} : vector<16x128xbf16>, vector<128x128xbf16>, vector<16x128xf32> -> vector<16x128xf32>
    %c0_33 = arith.constant 0 : index
    %c0_34 = arith.constant 0 : index
    %64 = vector.load %arg11[%c0_33, %c0_34] : memref<1x128xf32, #tpu.memory_space<vmem>>, vector<1x128xf32>
    %65 = vector.broadcast %64 : vector<1x128xf32> to vector<16x128xf32>
    %66 = arith.addf %63, %65 : vector<16x128xf32>
    %c0_35 = arith.constant 0 : index
    %c0_36 = arith.constant 0 : index
    %67 = vector.load %arg12[%c0_35, %c0_36] : memref<16x128xf32, #tpu.memory_space<vmem>>, vector<16x128xf32>
    tpu.vector_store %arg12[%c0_35, %c0_36], %66 {strides = array<i32>} : memref<16x128xf32, #tpu.memory_space<vmem>>, vector<16x128xf32>,
    return
  }
  func.func @transform_0(%arg0: i32) -> (i32, i32) {
    %c0_i32 = arith.constant 0 : i32
    %c0_i32_0 = arith.constant 0 : i32
    return %arg0, %c0_i32 : i32, i32
  }
  func.func @transform_1(%arg0: i32) -> (i32, i32) {
    %c0_i32 = arith.constant 0 : i32
    %c0_i32_0 = arith.constant 0 : i32
    %c0_i32_1 = arith.constant 0 : i32
    return %c0_i32, %c0_i32_0 : i32, i32
  }
  func.func @transform_2(%arg0: i32) -> (i32, i32) {
    %c0_i32 = arith.constant 0 : i32
    %c0_i32_0 = arith.constant 0 : i32
    %c0_i32_1 = arith.constant 0 : i32
    return %c0_i32, %c0_i32_0 : i32, i32
  }
  func.func @transform_3(%arg0: i32) -> (i32, i32) {
    %c0_i32 = arith.constant 0 : i32
    %c0_i32_0 = arith.constant 0 : i32
    %c0_i32_1 = arith.constant 0 : i32
    return %c0_i32, %c0_i32_0 : i32, i32
  }
  func.func @transform_4(%arg0: i32) -> (i32, i32) {
    %c0_i32 = arith.constant 0 : i32
    %c0_i32_0 = arith.constant 0 : i32
    %c0_i32_1 = arith.constant 0 : i32
    return %c0_i32, %c0_i32_0 : i32, i32
  }
  func.func @transform_5(%arg0: i32) -> (i32, i32) {
    %c0_i32 = arith.constant 0 : i32
    %c0_i32_0 = arith.constant 0 : i32
    %c0_i32_1 = arith.constant 0 : i32
    return %c0_i32, %c0_i32_0 : i32, i32
  }
  func.func @transform_6(%arg0: i32) -> (i32, i32) {
    %c0_i32 = arith.constant 0 : i32
    %c0_i32_0 = arith.constant 0 : i32
    %c0_i32_1 = arith.constant 0 : i32
    return %c0_i32, %c0_i32_0 : i32, i32
  }
  func.func @transform_7(%arg0: i32) -> (i32, i32) {
    %c0_i32 = arith.constant 0 : i32
    %c0_i32_0 = arith.constant 0 : i32
    %c0_i32_1 = arith.constant 0 : i32
    return %c0_i32, %c0_i32_0 : i32, i32
  }
  func.func @transform_8(%arg0: i32) -> (i32, i32) {
    %c0_i32 = arith.constant 0 : i32
    %c0_i32_0 = arith.constant 0 : i32
    %c0_i32_1 = arith.constant 0 : i32
    return %c0_i32, %c0_i32_0 : i32, i32
  }
  func.func @transform_9(%arg0: i32) -> (i32, i32) {
    %c0_i32 = arith.constant 0 : i32
    %c0_i32_0 = arith.constant 0 : i32
    %c0_i32_1 = arith.constant 0 : i32
    return %c0_i32, %c0_i32_0 : i32, i32
  }
  func.func @transform_10(%arg0: i32) -> (i32, i32) {
    %c0_i32 = arith.constant 0 : i32
    %c0_i32_0 = arith.constant 0 : i32
    %c0_i32_1 = arith.constant 0 : i32
    return %c0_i32, %c0_i32_0 : i32, i32
  }
  func.func @transform_11(%arg0: i32) -> (i32, i32) {
    %c0_i32 = arith.constant 0 : i32
    %c0_i32_0 = arith.constant 0 : i32
    return %arg0, %c0_i32 : i32, i32
  }
}

module attributes {stable_mosaic.version = 11 : i64} {
  func.func @_fused_mlp_kernel(%arg0: i32, %arg1: memref<16x32xf32, #tpu.memory_space<vmem>>, %arg2: memref<32x128xbf16, #tpu.memory_space<vmem>>, %arg3: memref<1x128xf32, #tpu.memory_space<vmem>>, %arg4: memref<128x128xbf16, #tpu.memory_space<vmem>>, %arg5: memref<1x128xf32, #tpu.memory_space<vmem>>, %arg6: memref<128x128xbf16, #tpu.memory_space<vmem>>, %arg7: memref<1x128xf32, #tpu.memory_space<vmem>>, %arg8: memref<16x128xf32, #tpu.memory_space<vmem>>) attributes {dimension_semantics = [#tpu.dimension_semantics<parallel>], iteration_bounds = array<i64: 2>, scalar_prefetch = 0 : i64, scratch_operands = 0 : i64, tpu.core_type = #tpu.core_type<tc>, window_params = [{transform_indices = @transform_0, window_bounds = array<i64: 16, 32>}, {pipeline_mode = #tpu.pipeline_mode<synchronous>, transform_indices = @transform_1, window_bounds = array<i64: 32, 128>}, {pipeline_mode = #tpu.pipeline_mode<synchronous>, transform_indices = @transform_2, window_bounds = array<i64: 1, 128>}, {pipeline_mode = #tpu.pipeline_mode<synchronous>, transform_indices = @transform_3, window_bounds = array<i64: 128, 128>}, {pipeline_mode = #tpu.pipeline_mode<synchronous>, transform_indices = @transform_4, window_bounds = array<i64: 1, 128>}, {pipeline_mode = #tpu.pipeline_mode<synchronous>, transform_indices = @transform_5, window_bounds = array<i64: 128, 128>}, {pipeline_mode = #tpu.pipeline_mode<synchronous>, transform_indices = @transform_6, window_bounds = array<i64: 1, 128>}, {transform_indices = @transform_7, window_bounds = array<i64: 16, 128>}]} {
    %c0 = arith.constant 0 : index
    %c0_0 = arith.constant 0 : index
    %0 = vector.load %arg1[%c0, %c0_0] : memref<16x32xf32, #tpu.memory_space<vmem>>, vector<16x32xf32>
    %c0_1 = arith.constant 0 : index
    %c0_2 = arith.constant 0 : index
    %1 = vector.load %arg2[%c0_1, %c0_2] : memref<32x128xbf16, #tpu.memory_space<vmem>>, vector<32x128xbf16>
    %2 = arith.truncf %0 : vector<16x32xf32> to vector<16x32xbf16>
    %cst = arith.constant dense<0.000000e+00> : vector<16x128xf32>
    %3 = tpu.matmul %2, %1, %cst {dimension_numbers = #tpu.dot_dimension_numbers<[1], [0], [0], [1], [0, 0, 1, 1], [], []>} : vector<16x32xbf16>, vector<32x128xbf16>, vector<16x128xf32> -> vector<16x128xf32>
    %c0_3 = arith.constant 0 : index
    %c0_4 = arith.constant 0 : index
    %4 = vector.load %arg3[%c0_3, %c0_4] : memref<1x128xf32, #tpu.memory_space<vmem>>, vector<1x128xf32>
    %5 = vector.broadcast %4 : vector<1x128xf32> to vector<16x128xf32>
    %6 = arith.addf %3, %5 : vector<16x128xf32>
    %cst_5 = arith.constant 0.000000e+00 : f32
    %7 = vector.broadcast %cst_5 : f32 to vector<16x128xf32>
    %8 = arith.maximumf %6, %7 : vector<16x128xf32>
    %c0_6 = arith.constant 0 : index
    %c0_7 = arith.constant 0 : index
    %9 = vector.load %arg4[%c0_6, %c0_7] : memref<128x128xbf16, #tpu.memory_space<vmem>>, vector<128x128xbf16>
    %10 = arith.truncf %8 : vector<16x128xf32> to vector<16x128xbf16>
    %cst_8 = arith.constant dense<0.000000e+00> : vector<16x128xf32>
    %11 = tpu.matmul %10, %9, %cst_8 {dimension_numbers = #tpu.dot_dimension_numbers<[1], [0], [0], [1], [0, 0, 1, 1], [], []>} : vector<16x128xbf16>, vector<128x128xbf16>, vector<16x128xf32> -> vector<16x128xf32>
    %c0_9 = arith.constant 0 : index
    %c0_10 = arith.constant 0 : index
    %12 = vector.load %arg5[%c0_9, %c0_10] : memref<1x128xf32, #tpu.memory_space<vmem>>, vector<1x128xf32>
    %13 = vector.broadcast %12 : vector<1x128xf32> to vector<16x128xf32>
    %14 = arith.addf %11, %13 : vector<16x128xf32>
    %cst_11 = arith.constant 0.000000e+00 : f32
    %15 = vector.broadcast %cst_11 : f32 to vector<16x128xf32>
    %16 = arith.maximumf %14, %15 : vector<16x128xf32>
    %c0_12 = arith.constant 0 : index
    %c0_13 = arith.constant 0 : index
    %17 = vector.load %arg6[%c0_12, %c0_13] : memref<128x128xbf16, #tpu.memory_space<vmem>>, vector<128x128xbf16>
    %18 = arith.truncf %16 : vector<16x128xf32> to vector<16x128xbf16>
    %cst_14 = arith.constant dense<0.000000e+00> : vector<16x128xf32>
    %19 = tpu.matmul %18, %17, %cst_14 {dimension_numbers = #tpu.dot_dimension_numbers<[1], [0], [0], [1], [0, 0, 1, 1], [], []>} : vector<16x128xbf16>, vector<128x128xbf16>, vector<16x128xf32> -> vector<16x128xf32>
    %c0_15 = arith.constant 0 : index
    %c0_16 = arith.constant 0 : index
    %20 = vector.load %arg7[%c0_15, %c0_16] : memref<1x128xf32, #tpu.memory_space<vmem>>, vector<1x128xf32>
    %21 = vector.broadcast %20 : vector<1x128xf32> to vector<16x128xf32>
    %22 = arith.addf %19, %21 : vector<16x128xf32>
    %c0_17 = arith.constant 0 : index
    %c0_18 = arith.constant 0 : index
    %23 = vector.load %arg8[%c0_17, %c0_18] : memref<16x128xf32, #tpu.memory_space<vmem>>, vector<16x128xf32>
    tpu.vector_store %arg8[%c0_17, %c0_18], %22 {strides = array<i32>} : memref<16x128xf32, #tpu.memory_space<vmem>>, vector<16x128xf32>,
    return
  }
  func.func @transform_0(%arg0: i32) -> (i32, i32) {
    %c0_i32 = arith.constant 0 : i32
    %c0_i32_0 = arith.constant 0 : i32
    return %arg0, %c0_i32 : i32, i32
  }
  func.func @transform_1(%arg0: i32) -> (i32, i32) {
    %c0_i32 = arith.constant 0 : i32
    %c0_i32_0 = arith.constant 0 : i32
    %c0_i32_1 = arith.constant 0 : i32
    return %c0_i32, %c0_i32_0 : i32, i32
  }
  func.func @transform_2(%arg0: i32) -> (i32, i32) {
    %c0_i32 = arith.constant 0 : i32
    %c0_i32_0 = arith.constant 0 : i32
    %c0_i32_1 = arith.constant 0 : i32
    return %c0_i32, %c0_i32_0 : i32, i32
  }
  func.func @transform_3(%arg0: i32) -> (i32, i32) {
    %c0_i32 = arith.constant 0 : i32
    %c0_i32_0 = arith.constant 0 : i32
    %c0_i32_1 = arith.constant 0 : i32
    return %c0_i32, %c0_i32_0 : i32, i32
  }
  func.func @transform_4(%arg0: i32) -> (i32, i32) {
    %c0_i32 = arith.constant 0 : i32
    %c0_i32_0 = arith.constant 0 : i32
    %c0_i32_1 = arith.constant 0 : i32
    return %c0_i32, %c0_i32_0 : i32, i32
  }
  func.func @transform_5(%arg0: i32) -> (i32, i32) {
    %c0_i32 = arith.constant 0 : i32
    %c0_i32_0 = arith.constant 0 : i32
    %c0_i32_1 = arith.constant 0 : i32
    return %c0_i32, %c0_i32_0 : i32, i32
  }
  func.func @transform_6(%arg0: i32) -> (i32, i32) {
    %c0_i32 = arith.constant 0 : i32
    %c0_i32_0 = arith.constant 0 : i32
    %c0_i32_1 = arith.constant 0 : i32
    return %c0_i32, %c0_i32_0 : i32, i32
  }
  func.func @transform_7(%arg0: i32) -> (i32, i32) {
    %c0_i32 = arith.constant 0 : i32
    %c0_i32_0 = arith.constant 0 : i32
    return %arg0, %c0_i32 : i32, i32
  }
}

module attributes {stable_mosaic.version = 11 : i64} {
  func.func @_fused_mlp_kernel(%arg0: i32, %arg1: memref<16x128xf32, #tpu.memory_space<vmem>>, %arg2: memref<1x128xf32, #tpu.memory_space<vmem>>, %arg3: memref<1x128xf32, #tpu.memory_space<vmem>>, %arg4: memref<16x128xf32, #tpu.memory_space<vmem>>, %arg5: memref<16x128xf32, #tpu.memory_space<vmem>>) attributes {dimension_semantics = [#tpu.dimension_semantics<parallel>], iteration_bounds = array<i64: 2>, scalar_prefetch = 0 : i64, scratch_operands = 0 : i64, tpu.core_type = #tpu.core_type<tc>, window_params = [{transform_indices = @transform_0, window_bounds = array<i64: 16, 128>}, {pipeline_mode = #tpu.pipeline_mode<synchronous>, transform_indices = @transform_1, window_bounds = array<i64: 1, 128>}, {pipeline_mode = #tpu.pipeline_mode<synchronous>, transform_indices = @transform_2, window_bounds = array<i64: 1, 128>}, {transform_indices = @transform_3, window_bounds = array<i64: 16, 128>}, {transform_indices = @transform_4, window_bounds = array<i64: 16, 128>}]} {
    %c0 = arith.constant 0 : index
    %c0_0 = arith.constant 0 : index
    %0 = vector.load %arg1[%c0, %c0_0] : memref<16x128xf32, #tpu.memory_space<vmem>>, vector<16x128xf32>
    %c0_1 = arith.constant 0 : index
    %c0_2 = arith.constant 0 : index
    %1 = vector.load %arg4[%c0_1, %c0_2] : memref<16x128xf32, #tpu.memory_space<vmem>>, vector<16x128xf32>
    %2 = arith.addf %0, %1 : vector<16x128xf32>
    %cst = arith.constant dense<0.000000e+00> : vector<16xf32>
    %3 = vector.multi_reduction <add>, %2, %cst [1] : vector<16x128xf32> to vector<16xf32>
    %4 = vector.shape_cast %3 : vector<16xf32> to vector<16x1xf32>
    %cst_3 = arith.constant 1.280000e+02 : f32
    %5 = vector.broadcast %cst_3 : f32 to vector<16x1xf32>
    %6 = arith.divf %4, %5 : vector<16x1xf32>
    %7 = vector.broadcast %6 : vector<16x1xf32> to vector<16x128xf32>
    %8 = arith.subf %2, %7 : vector<16x128xf32>
    %9 = arith.mulf %8, %8 : vector<16x128xf32>
    %cst_4 = arith.constant dense<0.000000e+00> : vector<16xf32>
    %10 = vector.multi_reduction <add>, %9, %cst_4 [1] : vector<16x128xf32> to vector<16xf32>
    %11 = vector.shape_cast %10 : vector<16xf32> to vector<16x1xf32>
    %cst_5 = arith.constant 1.280000e+02 : f32
    %12 = vector.broadcast %cst_5 : f32 to vector<16x1xf32>
    %13 = arith.divf %11, %12 : vector<16x1xf32>
    %cst_6 = arith.constant 9.99999974E-6 : f32
    %14 = vector.broadcast %cst_6 : f32 to vector<16x1xf32>
    %15 = arith.addf %13, %14 : vector<16x1xf32>
    %16 = math.rsqrt %15 : vector<16x1xf32>
    %17 = vector.broadcast %16 : vector<16x1xf32> to vector<16x128xf32>
    %18 = arith.mulf %8, %17 : vector<16x128xf32>
    %c0_7 = arith.constant 0 : index
    %c0_8 = arith.constant 0 : index
    %19 = vector.load %arg2[%c0_7, %c0_8] : memref<1x128xf32, #tpu.memory_space<vmem>>, vector<1x128xf32>
    %20 = vector.broadcast %19 : vector<1x128xf32> to vector<16x128xf32>
    %21 = arith.mulf %18, %20 : vector<16x128xf32>
    %c0_9 = arith.constant 0 : index
    %c0_10 = arith.constant 0 : index
    %22 = vector.load %arg3[%c0_9, %c0_10] : memref<1x128xf32, #tpu.memory_space<vmem>>, vector<1x128xf32>
    %23 = vector.broadcast %22 : vector<1x128xf32> to vector<16x128xf32>
    %24 = arith.addf %21, %23 : vector<16x128xf32>
    %c0_11 = arith.constant 0 : index
    %c0_12 = arith.constant 0 : index
    %25 = vector.load %arg5[%c0_11, %c0_12] : memref<16x128xf32, #tpu.memory_space<vmem>>, vector<16x128xf32>
    tpu.vector_store %arg5[%c0_11, %c0_12], %24 {strides = array<i32>} : memref<16x128xf32, #tpu.memory_space<vmem>>, vector<16x128xf32>,
    return
  }
  func.func @transform_0(%arg0: i32) -> (i32, i32) {
    %c0_i32 = arith.constant 0 : i32
    %c0_i32_0 = arith.constant 0 : i32
    return %arg0, %c0_i32 : i32, i32
  }
  func.func @transform_1(%arg0: i32) -> (i32, i32) {
    %c0_i32 = arith.constant 0 : i32
    %c0_i32_0 = arith.constant 0 : i32
    %c0_i32_1 = arith.constant 0 : i32
    return %c0_i32, %c0_i32_0 : i32, i32
  }
  func.func @transform_2(%arg0: i32) -> (i32, i32) {
    %c0_i32 = arith.constant 0 : i32
    %c0_i32_0 = arith.constant 0 : i32
    %c0_i32_1 = arith.constant 0 : i32
    return %c0_i32, %c0_i32_0 : i32, i32
  }
  func.func @transform_3(%arg0: i32) -> (i32, i32) {
    %c0_i32 = arith.constant 0 : i32
    %c0_i32_0 = arith.constant 0 : i32
    return %arg0, %c0_i32 : i32, i32
  }
  func.func @transform_4(%arg0: i32) -> (i32, i32) {
    %c0_i32 = arith.constant 0 : i32
    %c0_i32_0 = arith.constant 0 : i32
    return %arg0, %c0_i32 : i32, i32
  }
}

module attributes {stable_mosaic.version = 11 : i64} {
  func.func @_encoder_layer_kernel(%arg0: i32, %arg1: memref<1x16x128xf32, #tpu.memory_space<vmem>>, %arg2: memref<1x1x16xf32, #tpu.memory_space<vmem>>, %arg3: memref<128x384xbf16, #tpu.memory_space<vmem>>, %arg4: memref<1x384xf32, #tpu.memory_space<vmem>>, %arg5: memref<128x128xbf16, #tpu.memory_space<vmem>>, %arg6: memref<1x128xf32, #tpu.memory_space<vmem>>, %arg7: memref<1x128xf32, #tpu.memory_space<vmem>>, %arg8: memref<1x128xf32, #tpu.memory_space<vmem>>, %arg9: memref<128x256xbf16, #tpu.memory_space<vmem>>, %arg10: memref<1x256xf32, #tpu.memory_space<vmem>>, %arg11: memref<256x128xbf16, #tpu.memory_space<vmem>>, %arg12: memref<1x128xf32, #tpu.memory_space<vmem>>, %arg13: memref<1x128xf32, #tpu.memory_space<vmem>>, %arg14: memref<1x128xf32, #tpu.memory_space<vmem>>, %arg15: memref<1x16x128xf32, #tpu.memory_space<vmem>>) attributes {dimension_semantics = [#tpu.dimension_semantics<parallel>], iteration_bounds = array<i64: 2>, scalar_prefetch = 0 : i64, scratch_operands = 0 : i64, tpu.core_type = #tpu.core_type<tc>, window_params = [{transform_indices = @transform_0, window_bounds = array<i64: 1, 16, 128>}, {transform_indices = @transform_1, window_bounds = array<i64: 1, 1, 16>}, {pipeline_mode = #tpu.pipeline_mode<synchronous>, transform_indices = @transform_2, window_bounds = array<i64: 128, 384>}, {pipeline_mode = #tpu.pipeline_mode<synchronous>, transform_indices = @transform_3, window_bounds = array<i64: 1, 384>}, {pipeline_mode = #tpu.pipeline_mode<synchronous>, transform_indices = @transform_4, window_bounds = array<i64: 128, 128>}, {pipeline_mode = #tpu.pipeline_mode<synchronous>, transform_indices = @transform_5, window_bounds = array<i64: 1, 128>}, {pipeline_mode = #tpu.pipeline_mode<synchronous>, transform_indices = @transform_6, window_bounds = array<i64: 1, 128>}, {pipeline_mode = #tpu.pipeline_mode<synchronous>, transform_indices = @transform_7, window_bounds = array<i64: 1, 128>}, {pipeline_mode = #tpu.pipeline_mode<synchronous>, transform_indices = @transform_8, window_bounds = array<i64: 128, 256>}, {pipeline_mode = #tpu.pipeline_mode<synchronous>, transform_indices = @transform_9, window_bounds = array<i64: 1, 256>}, {pipeline_mode = #tpu.pipeline_mode<synchronous>, transform_indices = @transform_10, window_bounds = array<i64: 256, 128>}, {pipeline_mode = #tpu.pipeline_mode<synchronous>, transform_indices = @transform_11, window_bounds = array<i64: 1, 128>}, {pipeline_mode = #tpu.pipeline_mode<synchronous>, transform_indices = @transform_12, window_bounds = array<i64: 1, 128>}, {pipeline_mode = #tpu.pipeline_mode<synchronous>, transform_indices = @transform_13, window_bounds = array<i64: 1, 128>}, {transform_indices = @transform_14, window_bounds = array<i64: 1, 16, 128>}]} {
    %c0 = arith.constant 0 : index
    %c0_0 = arith.constant 0 : index
    %c0_1 = arith.constant 0 : index
    %0 = vector.load %arg1[%c0, %c0_0, %c0_1] : memref<1x16x128xf32, #tpu.memory_space<vmem>>, vector<1x16x128xf32>
    %1 = vector.shape_cast %0 : vector<1x16x128xf32> to vector<16x128xf32>
    %2 = arith.truncf %1 : vector<16x128xf32> to vector<16x128xbf16>
    %c0_2 = arith.constant 0 : index
    %c0_3 = arith.constant 0 : index
    %3 = vector.load %arg3[%c0_2, %c0_3] : memref<128x384xbf16, #tpu.memory_space<vmem>>, vector<128x384xbf16>
    %cst = arith.constant dense<0.000000e+00> : vector<16x384xf32>
    %4 = tpu.matmul %2, %3, %cst {dimension_numbers = #tpu.dot_dimension_numbers<[1], [0], [0], [1], [0, 0, 1, 1], [], []>} : vector<16x128xbf16>, vector<128x384xbf16>, vector<16x384xf32> -> vector<16x384xf32>
    %c0_4 = arith.constant 0 : index
    %c0_5 = arith.constant 0 : index
    %5 = vector.load %arg4[%c0_4, %c0_5] : memref<1x384xf32, #tpu.memory_space<vmem>>, vector<1x384xf32>
    %6 = vector.broadcast %5 : vector<1x384xf32> to vector<16x384xf32>
    %7 = arith.addf %4, %6 : vector<16x384xf32>
    %c0_6 = arith.constant 0 : index
    %c0_7 = arith.constant 0 : index
    %c0_8 = arith.constant 0 : index
    %8 = vector.load %arg2[%c0_6, %c0_7, %c0_8] : memref<1x1x16xf32, #tpu.memory_space<vmem>>, vector<1x1x16xf32>
    %9 = vector.shape_cast %8 : vector<1x1x16xf32> to vector<1x16xf32>
    %10 = vector.extract_strided_slice %7 {offsets = [0, 0], sizes = [16, 32], strides = [1, 1]} : vector<16x384xf32> to vector<16x32xf32>
    %cst_9 = arith.constant 0.176776692 : f32
    %11 = vector.broadcast %cst_9 : f32 to vector<16x32xf32>
    %12 = arith.mulf %10, %11 : vector<16x32xf32>
    %13 = arith.truncf %12 : vector<16x32xf32> to vector<16x32xbf16>
    %14 = vector.extract_strided_slice %7 {offsets = [0, 128], sizes = [16, 32], strides = [1, 1]} : vector<16x384xf32> to vector<16x32xf32>
    %15 = arith.truncf %14 : vector<16x32xf32> to vector<16x32xbf16>
    %16 = vector.extract_strided_slice %7 {offsets = [0, 256], sizes = [16, 32], strides = [1, 1]} : vector<16x384xf32> to vector<16x32xf32>
    %17 = arith.truncf %16 : vector<16x32xf32> to vector<16x32xbf16>
    %18 = tpu.transpose %15, [1, 0] : vector<16x32xbf16> -> vector<32x16xbf16>
    %cst_10 = arith.constant dense<0.000000e+00> : vector<16x16xf32>
    %19 = tpu.matmul %13, %18, %cst_10 {dimension_numbers = #tpu.dot_dimension_numbers<[1], [0], [0], [1], [0, 0, 1, 1], [], []>} : vector<16x32xbf16>, vector<32x16xbf16>, vector<16x16xf32> -> vector<16x16xf32>
    %20 = vector.broadcast %9 : vector<1x16xf32> to vector<16x16xf32>
    %21 = arith.addf %19, %20 : vector<16x16xf32>
    %cst_11 = arith.constant dense<0xFF800000> : vector<16xf32>
    %22 = vector.multi_reduction <maximumf>, %21, %cst_11 [1] : vector<16x16xf32> to vector<16xf32>
    %23 = vector.shape_cast %22 : vector<16xf32> to vector<16x1xf32>
    %24 = vector.broadcast %23 : vector<16x1xf32> to vector<16x16xf32>
    %25 = arith.subf %21, %24 : vector<16x16xf32>
    %26 = math.exp %25 : vector<16x16xf32>
    %cst_12 = arith.constant dense<0.000000e+00> : vector<16xf32>
    %27 = vector.multi_reduction <add>, %26, %cst_12 [1] : vector<16x16xf32> to vector<16xf32>
    %28 = vector.shape_cast %27 : vector<16xf32> to vector<16x1xf32>
    %29 = tpu.reciprocal %28 {approx = true} : vector<16x1xf32> -> vector<16x1xf32>
    %30 = vector.broadcast %29 : vector<16x1xf32> to vector<16x16xf32>
    %31 = arith.mulf %26, %30 : vector<16x16xf32>
    %32 = arith.truncf %31 : vector<16x16xf32> to vector<16x16xbf16>
    %cst_13 = arith.constant dense<0.000000e+00> : vector<16x32xf32>
    %33 = tpu.matmul %32, %17, %cst_13 {dimension_numbers = #tpu.dot_dimension_numbers<[1], [0], [0], [1], [0, 0, 1, 1], [], []>} : vector<16x16xbf16>, vector<16x32xbf16>, vector<16x32xf32> -> vector<16x32xf32>
    %34 = vector.extract_strided_slice %7 {offsets = [0, 32], sizes = [16, 32], strides = [1, 1]} : vector<16x384xf32> to vector<16x32xf32>
    %cst_14 = arith.constant 0.176776692 : f32
    %35 = vector.broadcast %cst_14 : f32 to vector<16x32xf32>
    %36 = arith.mulf %34, %35 : vector<16x32xf32>
    %37 = arith.truncf %36 : vector<16x32xf32> to vector<16x32xbf16>
    %38 = vector.extract_strided_slice %7 {offsets = [0, 160], sizes = [16, 32], strides = [1, 1]} : vector<16x384xf32> to vector<16x32xf32>
    %39 = arith.truncf %38 : vector<16x32xf32> to vector<16x32xbf16>
    %40 = vector.extract_strided_slice %7 {offsets = [0, 288], sizes = [16, 32], strides = [1, 1]} : vector<16x384xf32> to vector<16x32xf32>
    %41 = arith.truncf %40 : vector<16x32xf32> to vector<16x32xbf16>
    %42 = tpu.transpose %39, [1, 0] : vector<16x32xbf16> -> vector<32x16xbf16>
    %cst_15 = arith.constant dense<0.000000e+00> : vector<16x16xf32>
    %43 = tpu.matmul %37, %42, %cst_15 {dimension_numbers = #tpu.dot_dimension_numbers<[1], [0], [0], [1], [0, 0, 1, 1], [], []>} : vector<16x32xbf16>, vector<32x16xbf16>, vector<16x16xf32> -> vector<16x16xf32>
    %44 = vector.broadcast %9 : vector<1x16xf32> to vector<16x16xf32>
    %45 = arith.addf %43, %44 : vector<16x16xf32>
    %cst_16 = arith.constant dense<0xFF800000> : vector<16xf32>
    %46 = vector.multi_reduction <maximumf>, %45, %cst_16 [1] : vector<16x16xf32> to vector<16xf32>
    %47 = vector.shape_cast %46 : vector<16xf32> to vector<16x1xf32>
    %48 = vector.broadcast %47 : vector<16x1xf32> to vector<16x16xf32>
    %49 = arith.subf %45, %48 : vector<16x16xf32>
    %50 = math.exp %49 : vector<16x16xf32>
    %cst_17 = arith.constant dense<0.000000e+00> : vector<16xf32>
    %51 = vector.multi_reduction <add>, %50, %cst_17 [1] : vector<16x16xf32> to vector<16xf32>
    %52 = vector.shape_cast %51 : vector<16xf32> to vector<16x1xf32>
    %53 = tpu.reciprocal %52 {approx = true} : vector<16x1xf32> -> vector<16x1xf32>
    %54 = vector.broadcast %53 : vector<16x1xf32> to vector<16x16xf32>
    %55 = arith.mulf %50, %54 : vector<16x16xf32>
    %56 = arith.truncf %55 : vector<16x16xf32> to vector<16x16xbf16>
    %cst_18 = arith.constant dense<0.000000e+00> : vector<16x32xf32>
    %57 = tpu.matmul %56, %41, %cst_18 {dimension_numbers = #tpu.dot_dimension_numbers<[1], [0], [0], [1], [0, 0, 1, 1], [], []>} : vector<16x16xbf16>, vector<16x32xbf16>, vector<16x32xf32> -> vector<16x32xf32>
    %58 = vector.extract_strided_slice %7 {offsets = [0, 64], sizes = [16, 32], strides = [1, 1]} : vector<16x384xf32> to vector<16x32xf32>
    %cst_19 = arith.constant 0.176776692 : f32
    %59 = vector.broadcast %cst_19 : f32 to vector<16x32xf32>
    %60 = arith.mulf %58, %59 : vector<16x32xf32>
    %61 = arith.truncf %60 : vector<16x32xf32> to vector<16x32xbf16>
    %62 = vector.extract_strided_slice %7 {offsets = [0, 192], sizes = [16, 32], strides = [1, 1]} : vector<16x384xf32> to vector<16x32xf32>
    %63 = arith.truncf %62 : vector<16x32xf32> to vector<16x32xbf16>
    %64 = vector.extract_strided_slice %7 {offsets = [0, 320], sizes = [16, 32], strides = [1, 1]} : vector<16x384xf32> to vector<16x32xf32>
    %65 = arith.truncf %64 : vector<16x32xf32> to vector<16x32xbf16>
    %66 = tpu.transpose %63, [1, 0] : vector<16x32xbf16> -> vector<32x16xbf16>
    %cst_20 = arith.constant dense<0.000000e+00> : vector<16x16xf32>
    %67 = tpu.matmul %61, %66, %cst_20 {dimension_numbers = #tpu.dot_dimension_numbers<[1], [0], [0], [1], [0, 0, 1, 1], [], []>} : vector<16x32xbf16>, vector<32x16xbf16>, vector<16x16xf32> -> vector<16x16xf32>
    %68 = vector.broadcast %9 : vector<1x16xf32> to vector<16x16xf32>
    %69 = arith.addf %67, %68 : vector<16x16xf32>
    %cst_21 = arith.constant dense<0xFF800000> : vector<16xf32>
    %70 = vector.multi_reduction <maximumf>, %69, %cst_21 [1] : vector<16x16xf32> to vector<16xf32>
    %71 = vector.shape_cast %70 : vector<16xf32> to vector<16x1xf32>
    %72 = vector.broadcast %71 : vector<16x1xf32> to vector<16x16xf32>
    %73 = arith.subf %69, %72 : vector<16x16xf32>
    %74 = math.exp %73 : vector<16x16xf32>
    %cst_22 = arith.constant dense<0.000000e+00> : vector<16xf32>
    %75 = vector.multi_reduction <add>, %74, %cst_22 [1] : vector<16x16xf32> to vector<16xf32>
    %76 = vector.shape_cast %75 : vector<16xf32> to vector<16x1xf32>
    %77 = tpu.reciprocal %76 {approx = true} : vector<16x1xf32> -> vector<16x1xf32>
    %78 = vector.broadcast %77 : vector<16x1xf32> to vector<16x16xf32>
    %79 = arith.mulf %74, %78 : vector<16x16xf32>
    %80 = arith.truncf %79 : vector<16x16xf32> to vector<16x16xbf16>
    %cst_23 = arith.constant dense<0.000000e+00> : vector<16x32xf32>
    %81 = tpu.matmul %80, %65, %cst_23 {dimension_numbers = #tpu.dot_dimension_numbers<[1], [0], [0], [1], [0, 0, 1, 1], [], []>} : vector<16x16xbf16>, vector<16x32xbf16>, vector<16x32xf32> -> vector<16x32xf32>
    %82 = vector.extract_strided_slice %7 {offsets = [0, 96], sizes = [16, 32], strides = [1, 1]} : vector<16x384xf32> to vector<16x32xf32>
    %cst_24 = arith.constant 0.176776692 : f32
    %83 = vector.broadcast %cst_24 : f32 to vector<16x32xf32>
    %84 = arith.mulf %82, %83 : vector<16x32xf32>
    %85 = arith.truncf %84 : vector<16x32xf32> to vector<16x32xbf16>
    %86 = vector.extract_strided_slice %7 {offsets = [0, 224], sizes = [16, 32], strides = [1, 1]} : vector<16x384xf32> to vector<16x32xf32>
    %87 = arith.truncf %86 : vector<16x32xf32> to vector<16x32xbf16>
    %88 = vector.extract_strided_slice %7 {offsets = [0, 352], sizes = [16, 32], strides = [1, 1]} : vector<16x384xf32> to vector<16x32xf32>
    %89 = arith.truncf %88 : vector<16x32xf32> to vector<16x32xbf16>
    %90 = tpu.transpose %87, [1, 0] : vector<16x32xbf16> -> vector<32x16xbf16>
    %cst_25 = arith.constant dense<0.000000e+00> : vector<16x16xf32>
    %91 = tpu.matmul %85, %90, %cst_25 {dimension_numbers = #tpu.dot_dimension_numbers<[1], [0], [0], [1], [0, 0, 1, 1], [], []>} : vector<16x32xbf16>, vector<32x16xbf16>, vector<16x16xf32> -> vector<16x16xf32>
    %92 = vector.broadcast %9 : vector<1x16xf32> to vector<16x16xf32>
    %93 = arith.addf %91, %92 : vector<16x16xf32>
    %cst_26 = arith.constant dense<0xFF800000> : vector<16xf32>
    %94 = vector.multi_reduction <maximumf>, %93, %cst_26 [1] : vector<16x16xf32> to vector<16xf32>
    %95 = vector.shape_cast %94 : vector<16xf32> to vector<16x1xf32>
    %96 = vector.broadcast %95 : vector<16x1xf32> to vector<16x16xf32>
    %97 = arith.subf %93, %96 : vector<16x16xf32>
    %98 = math.exp %97 : vector<16x16xf32>
    %cst_27 = arith.constant dense<0.000000e+00> : vector<16xf32>
    %99 = vector.multi_reduction <add>, %98, %cst_27 [1] : vector<16x16xf32> to vector<16xf32>
    %100 = vector.shape_cast %99 : vector<16xf32> to vector<16x1xf32>
    %101 = tpu.reciprocal %100 {approx = true} : vector<16x1xf32> -> vector<16x1xf32>
    %102 = vector.broadcast %101 : vector<16x1xf32> to vector<16x16xf32>
    %103 = arith.mulf %98, %102 : vector<16x16xf32>
    %104 = arith.truncf %103 : vector<16x16xf32> to vector<16x16xbf16>
    %cst_28 = arith.constant dense<0.000000e+00> : vector<16x32xf32>
    %105 = tpu.matmul %104, %89, %cst_28 {dimension_numbers = #tpu.dot_dimension_numbers<[1], [0], [0], [1], [0, 0, 1, 1], [], []>} : vector<16x16xbf16>, vector<16x32xbf16>, vector<16x32xf32> -> vector<16x32xf32>
    %106 = tpu.concatenate %33, %57, %81, %105 in 1 : vector<16x32xf32>, vector<16x32xf32>, vector<16x32xf32>, vector<16x32xf32> -> vector<16x128xf32>
    %107 = arith.truncf %106 : vector<16x128xf32> to vector<16x128xbf16>
    %c0_29 = arith.constant 0 : index
    %c0_30 = arith.constant 0 : index
    %108 = vector.load %arg5[%c0_29, %c0_30] : memref<128x128xbf16, #tpu.memory_space<vmem>>, vector<128x128xbf16>
    %cst_31 = arith.constant dense<0.000000e+00> : vector<16x128xf32>
    %109 = tpu.matmul %107, %108, %cst_31 {dimension_numbers = #tpu.dot_dimension_numbers<[1], [0], [0], [1], [0, 0, 1, 1], [], []>} : vector<16x128xbf16>, vector<128x128xbf16>, vector<16x128xf32> -> vector<16x128xf32>
    %c0_32 = arith.constant 0 : index
    %c0_33 = arith.constant 0 : index
    %110 = vector.load %arg6[%c0_32, %c0_33] : memref<1x128xf32, #tpu.memory_space<vmem>>, vector<1x128xf32>
    %111 = vector.broadcast %110 : vector<1x128xf32> to vector<16x128xf32>
    %112 = arith.addf %109, %111 : vector<16x128xf32>
    %113 = arith.addf %1, %112 : vector<16x128xf32>
    %cst_34 = arith.constant dense<0.000000e+00> : vector<16xf32>
    %114 = vector.multi_reduction <add>, %113, %cst_34 [1] : vector<16x128xf32> to vector<16xf32>
    %115 = vector.shape_cast %114 : vector<16xf32> to vector<16x1xf32>
    %cst_35 = arith.constant 1.280000e+02 : f32
    %116 = vector.broadcast %cst_35 : f32 to vector<16x1xf32>
    %117 = arith.divf %115, %116 : vector<16x1xf32>
    %118 = vector.broadcast %117 : vector<16x1xf32> to vector<16x128xf32>
    %119 = arith.subf %113, %118 : vector<16x128xf32>
    %120 = arith.mulf %119, %119 : vector<16x128xf32>
    %cst_36 = arith.constant dense<0.000000e+00> : vector<16xf32>
    %121 = vector.multi_reduction <add>, %120, %cst_36 [1] : vector<16x128xf32> to vector<16xf32>
    %122 = vector.shape_cast %121 : vector<16xf32> to vector<16x1xf32>
    %cst_37 = arith.constant 1.280000e+02 : f32
    %123 = vector.broadcast %cst_37 : f32 to vector<16x1xf32>
    %124 = arith.divf %122, %123 : vector<16x1xf32>
    %cst_38 = arith.constant 9.99999974E-6 : f32
    %125 = vector.broadcast %cst_38 : f32 to vector<16x1xf32>
    %126 = arith.addf %124, %125 : vector<16x1xf32>
    %127 = math.rsqrt %126 : vector<16x1xf32>
    %128 = vector.broadcast %127 : vector<16x1xf32> to vector<16x128xf32>
    %129 = arith.mulf %119, %128 : vector<16x128xf32>
    %c0_39 = arith.constant 0 : index
    %c0_40 = arith.constant 0 : index
    %130 = vector.load %arg7[%c0_39, %c0_40] : memref<1x128xf32, #tpu.memory_space<vmem>>, vector<1x128xf32>
    %131 = vector.broadcast %130 : vector<1x128xf32> to vector<16x128xf32>
    %132 = arith.mulf %129, %131 : vector<16x128xf32>
    %c0_41 = arith.constant 0 : index
    %c0_42 = arith.constant 0 : index
    %133 = vector.load %arg8[%c0_41, %c0_42] : memref<1x128xf32, #tpu.memory_space<vmem>>, vector<1x128xf32>
    %134 = vector.broadcast %133 : vector<1x128xf32> to vector<16x128xf32>
    %135 = arith.addf %132, %134 : vector<16x128xf32>
    %136 = arith.truncf %135 : vector<16x128xf32> to vector<16x128xbf16>
    %c0_43 = arith.constant 0 : index
    %c0_44 = arith.constant 0 : index
    %137 = vector.load %arg9[%c0_43, %c0_44] : memref<128x256xbf16, #tpu.memory_space<vmem>>, vector<128x256xbf16>
    %cst_45 = arith.constant dense<0.000000e+00> : vector<16x256xf32>
    %138 = tpu.matmul %136, %137, %cst_45 {dimension_numbers = #tpu.dot_dimension_numbers<[1], [0], [0], [1], [0, 0, 1, 1], [], []>} : vector<16x128xbf16>, vector<128x256xbf16>, vector<16x256xf32> -> vector<16x256xf32>
    %c0_46 = arith.constant 0 : index
    %c0_47 = arith.constant 0 : index
    %139 = vector.load %arg10[%c0_46, %c0_47] : memref<1x256xf32, #tpu.memory_space<vmem>>, vector<1x256xf32>
    %140 = vector.broadcast %139 : vector<1x256xf32> to vector<16x256xf32>
    %141 = arith.addf %138, %140 : vector<16x256xf32>
    %cst_48 = arith.constant 0.000000e+00 : f32
    %142 = vector.broadcast %cst_48 : f32 to vector<16x256xf32>
    %143 = arith.maximumf %141, %142 : vector<16x256xf32>
    %144 = arith.truncf %143 : vector<16x256xf32> to vector<16x256xbf16>
    %c0_49 = arith.constant 0 : index
    %c0_50 = arith.constant 0 : index
    %145 = vector.load %arg11[%c0_49, %c0_50] : memref<256x128xbf16, #tpu.memory_space<vmem>>, vector<256x128xbf16>
    %cst_51 = arith.constant dense<0.000000e+00> : vector<16x128xf32>
    %146 = tpu.matmul %144, %145, %cst_51 {dimension_numbers = #tpu.dot_dimension_numbers<[1], [0], [0], [1], [0, 0, 1, 1], [], []>} : vector<16x256xbf16>, vector<256x128xbf16>, vector<16x128xf32> -> vector<16x128xf32>
    %c0_52 = arith.constant 0 : index
    %c0_53 = arith.constant 0 : index
    %147 = vector.load %arg12[%c0_52, %c0_53] : memref<1x128xf32, #tpu.memory_space<vmem>>, vector<1x128xf32>
    %148 = vector.broadcast %147 : vector<1x128xf32> to vector<16x128xf32>
    %149 = arith.addf %146, %148 : vector<16x128xf32>
    %150 = arith.addf %135, %149 : vector<16x128xf32>
    %cst_54 = arith.constant dense<0.000000e+00> : vector<16xf32>
    %151 = vector.multi_reduction <add>, %150, %cst_54 [1] : vector<16x128xf32> to vector<16xf32>
    %152 = vector.shape_cast %151 : vector<16xf32> to vector<16x1xf32>
    %cst_55 = arith.constant 1.280000e+02 : f32
    %153 = vector.broadcast %cst_55 : f32 to vector<16x1xf32>
    %154 = arith.divf %152, %153 : vector<16x1xf32>
    %155 = vector.broadcast %154 : vector<16x1xf32> to vector<16x128xf32>
    %156 = arith.subf %150, %155 : vector<16x128xf32>
    %157 = arith.mulf %156, %156 : vector<16x128xf32>
    %cst_56 = arith.constant dense<0.000000e+00> : vector<16xf32>
    %158 = vector.multi_reduction <add>, %157, %cst_56 [1] : vector<16x128xf32> to vector<16xf32>
    %159 = vector.shape_cast %158 : vector<16xf32> to vector<16x1xf32>
    %cst_57 = arith.constant 1.280000e+02 : f32
    %160 = vector.broadcast %cst_57 : f32 to vector<16x1xf32>
    %161 = arith.divf %159, %160 : vector<16x1xf32>
    %cst_58 = arith.constant 9.99999974E-6 : f32
    %162 = vector.broadcast %cst_58 : f32 to vector<16x1xf32>
    %163 = arith.addf %161, %162 : vector<16x1xf32>
    %164 = math.rsqrt %163 : vector<16x1xf32>
    %165 = vector.broadcast %164 : vector<16x1xf32> to vector<16x128xf32>
    %166 = arith.mulf %156, %165 : vector<16x128xf32>
    %c0_59 = arith.constant 0 : index
    %c0_60 = arith.constant 0 : index
    %167 = vector.load %arg13[%c0_59, %c0_60] : memref<1x128xf32, #tpu.memory_space<vmem>>, vector<1x128xf32>
    %168 = vector.broadcast %167 : vector<1x128xf32> to vector<16x128xf32>
    %169 = arith.mulf %166, %168 : vector<16x128xf32>
    %c0_61 = arith.constant 0 : index
    %c0_62 = arith.constant 0 : index
    %170 = vector.load %arg14[%c0_61, %c0_62] : memref<1x128xf32, #tpu.memory_space<vmem>>, vector<1x128xf32>
    %171 = vector.broadcast %170 : vector<1x128xf32> to vector<16x128xf32>
    %172 = arith.addf %169, %171 : vector<16x128xf32>
    %c0_63 = arith.constant 0 : index
    %c0_64 = arith.constant 0 : index
    %c0_65 = arith.constant 0 : index
    %173 = vector.load %arg15[%c0_63, %c0_64, %c0_65] : memref<1x16x128xf32, #tpu.memory_space<vmem>>, vector<1x16x128xf32>
    %174 = vector.shape_cast %173 : vector<1x16x128xf32> to vector<16x128xf32>
    %175 = vector.shape_cast %172 : vector<16x128xf32> to vector<1x16x128xf32>
    tpu.vector_store %arg15[%c0_63, %c0_64, %c0_65], %175 {strides = array<i32>} : memref<1x16x128xf32, #tpu.memory_space<vmem>>, vector<1x16x128xf32>,
    return
  }
  func.func @transform_0(%arg0: i32) -> (i32, i32, i32) {
    %c0_i32 = arith.constant 0 : i32
    %c0_i32_0 = arith.constant 0 : i32
    %c0_i32_1 = arith.constant 0 : i32
    return %arg0, %c0_i32, %c0_i32_0 : i32, i32, i32
  }
  func.func @transform_1(%arg0: i32) -> (i32, i32, i32) {
    %c0_i32 = arith.constant 0 : i32
    %c0_i32_0 = arith.constant 0 : i32
    %c0_i32_1 = arith.constant 0 : i32
    return %arg0, %c0_i32, %c0_i32_0 : i32, i32, i32
  }
  func.func @transform_2(%arg0: i32) -> (i32, i32) {
    %c0_i32 = arith.constant 0 : i32
    %c0_i32_0 = arith.constant 0 : i32
    %c0_i32_1 = arith.constant 0 : i32
    return %c0_i32, %c0_i32_0 : i32, i32
  }
  func.func @transform_3(%arg0: i32) -> (i32, i32) {
    %c0_i32 = arith.constant 0 : i32
    %c0_i32_0 = arith.constant 0 : i32
    %c0_i32_1 = arith.constant 0 : i32
    return %c0_i32, %c0_i32_0 : i32, i32
  }
  func.func @transform_4(%arg0: i32) -> (i32, i32) {
    %c0_i32 = arith.constant 0 : i32
    %c0_i32_0 = arith.constant 0 : i32
    %c0_i32_1 = arith.constant 0 : i32
    return %c0_i32, %c0_i32_0 : i32, i32
  }
  func.func @transform_5(%arg0: i32) -> (i32, i32) {
    %c0_i32 = arith.constant 0 : i32
    %c0_i32_0 = arith.constant 0 : i32
    %c0_i32_1 = arith.constant 0 : i32
    return %c0_i32, %c0_i32_0 : i32, i32
  }
  func.func @transform_6(%arg0: i32) -> (i32, i32) {
    %c0_i32 = arith.constant 0 : i32
    %c0_i32_0 = arith.constant 0 : i32
    %c0_i32_1 = arith.constant 0 : i32
    return %c0_i32, %c0_i32_0 : i32, i32
  }
  func.func @transform_7(%arg0: i32) -> (i32, i32) {
    %c0_i32 = arith.constant 0 : i32
    %c0_i32_0 = arith.constant 0 : i32
    %c0_i32_1 = arith.constant 0 : i32
    return %c0_i32, %c0_i32_0 : i32, i32
  }
  func.func @transform_8(%arg0: i32) -> (i32, i32) {
    %c0_i32 = arith.constant 0 : i32
    %c0_i32_0 = arith.constant 0 : i32
    %c0_i32_1 = arith.constant 0 : i32
    return %c0_i32, %c0_i32_0 : i32, i32
  }
  func.func @transform_9(%arg0: i32) -> (i32, i32) {
    %c0_i32 = arith.constant 0 : i32
    %c0_i32_0 = arith.constant 0 : i32
    %c0_i32_1 = arith.constant 0 : i32
    return %c0_i32, %c0_i32_0 : i32, i32
  }
  func.func @transform_10(%arg0: i32) -> (i32, i32) {
    %c0_i32 = arith.constant 0 : i32
    %c0_i32_0 = arith.constant 0 : i32
    %c0_i32_1 = arith.constant 0 : i32
    return %c0_i32, %c0_i32_0 : i32, i32
  }
  func.func @transform_11(%arg0: i32) -> (i32, i32) {
    %c0_i32 = arith.constant 0 : i32
    %c0_i32_0 = arith.constant 0 : i32
    %c0_i32_1 = arith.constant 0 : i32
    return %c0_i32, %c0_i32_0 : i32, i32
  }
  func.func @transform_12(%arg0: i32) -> (i32, i32) {
    %c0_i32 = arith.constant 0 : i32
    %c0_i32_0 = arith.constant 0 : i32
    %c0_i32_1 = arith.constant 0 : i32
    return %c0_i32, %c0_i32_0 : i32, i32
  }
  func.func @transform_13(%arg0: i32) -> (i32, i32) {
    %c0_i32 = arith.constant 0 : i32
    %c0_i32_0 = arith.constant 0 : i32
    %c0_i32_1 = arith.constant 0 : i32
    return %c0_i32, %c0_i32_0 : i32, i32
  }
  func.func @transform_14(%arg0: i32) -> (i32, i32, i32) {
    %c0_i32 = arith.constant 0 : i32
    %c0_i32_0 = arith.constant 0 : i32
    %c0_i32_1 = arith.constant 0 : i32
    return %arg0, %c0_i32, %c0_i32_0 : i32, i32, i32
  }
}

module attributes {stable_mosaic.version = 11 : i64} {
  func.func @_fused_mlp_kernel(%arg0: i32, %arg1: memref<16x128xf32, #tpu.memory_space<vmem>>, %arg2: memref<128x128xbf16, #tpu.memory_space<vmem>>, %arg3: memref<1x128xf32, #tpu.memory_space<vmem>>, %arg4: memref<1x128xf32, #tpu.memory_space<vmem>>, %arg5: memref<1x128xf32, #tpu.memory_space<vmem>>, %arg6: memref<16x128xf32, #tpu.memory_space<vmem>>, %arg7: memref<16x128xf32, #tpu.memory_space<vmem>>) attributes {dimension_semantics = [#tpu.dimension_semantics<parallel>], iteration_bounds = array<i64: 2>, scalar_prefetch = 0 : i64, scratch_operands = 0 : i64, tpu.core_type = #tpu.core_type<tc>, window_params = [{transform_indices = @transform_0, window_bounds = array<i64: 16, 128>}, {pipeline_mode = #tpu.pipeline_mode<synchronous>, transform_indices = @transform_1, window_bounds = array<i64: 128, 128>}, {pipeline_mode = #tpu.pipeline_mode<synchronous>, transform_indices = @transform_2, window_bounds = array<i64: 1, 128>}, {pipeline_mode = #tpu.pipeline_mode<synchronous>, transform_indices = @transform_3, window_bounds = array<i64: 1, 128>}, {pipeline_mode = #tpu.pipeline_mode<synchronous>, transform_indices = @transform_4, window_bounds = array<i64: 1, 128>}, {transform_indices = @transform_5, window_bounds = array<i64: 16, 128>}, {transform_indices = @transform_6, window_bounds = array<i64: 16, 128>}]} {
    %c0 = arith.constant 0 : index
    %c0_0 = arith.constant 0 : index
    %0 = vector.load %arg1[%c0, %c0_0] : memref<16x128xf32, #tpu.memory_space<vmem>>, vector<16x128xf32>
    %c0_1 = arith.constant 0 : index
    %c0_2 = arith.constant 0 : index
    %1 = vector.load %arg2[%c0_1, %c0_2] : memref<128x128xbf16, #tpu.memory_space<vmem>>, vector<128x128xbf16>
    %2 = arith.truncf %0 : vector<16x128xf32> to vector<16x128xbf16>
    %cst = arith.constant dense<0.000000e+00> : vector<16x128xf32>
    %3 = tpu.matmul %2, %1, %cst {dimension_numbers = #tpu.dot_dimension_numbers<[1], [0], [0], [1], [0, 0, 1, 1], [], []>} : vector<16x128xbf16>, vector<128x128xbf16>, vector<16x128xf32> -> vector<16x128xf32>
    %c0_3 = arith.constant 0 : index
    %c0_4 = arith.constant 0 : index
    %4 = vector.load %arg3[%c0_3, %c0_4] : memref<1x128xf32, #tpu.memory_space<vmem>>, vector<1x128xf32>
    %5 = vector.broadcast %4 : vector<1x128xf32> to vector<16x128xf32>
    %6 = arith.addf %3, %5 : vector<16x128xf32>
    %cst_5 = arith.constant dense<0.000000e+00> : vector<16xf32>
    %7 = vector.multi_reduction <add>, %6, %cst_5 [1] : vector<16x128xf32> to vector<16xf32>
    %8 = vector.shape_cast %7 : vector<16xf32> to vector<16x1xf32>
    %cst_6 = arith.constant 1.280000e+02 : f32
    %9 = vector.broadcast %cst_6 : f32 to vector<16x1xf32>
    %10 = arith.divf %8, %9 : vector<16x1xf32>
    %11 = vector.broadcast %10 : vector<16x1xf32> to vector<16x128xf32>
    %12 = arith.subf %6, %11 : vector<16x128xf32>
    %13 = arith.mulf %12, %12 : vector<16x128xf32>
    %cst_7 = arith.constant dense<0.000000e+00> : vector<16xf32>
    %14 = vector.multi_reduction <add>, %13, %cst_7 [1] : vector<16x128xf32> to vector<16xf32>
    %15 = vector.shape_cast %14 : vector<16xf32> to vector<16x1xf32>
    %cst_8 = arith.constant 1.280000e+02 : f32
    %16 = vector.broadcast %cst_8 : f32 to vector<16x1xf32>
    %17 = arith.divf %15, %16 : vector<16x1xf32>
    %cst_9 = arith.constant 9.99999974E-6 : f32
    %18 = vector.broadcast %cst_9 : f32 to vector<16x1xf32>
    %19 = arith.addf %17, %18 : vector<16x1xf32>
    %20 = math.rsqrt %19 : vector<16x1xf32>
    %21 = vector.broadcast %20 : vector<16x1xf32> to vector<16x128xf32>
    %22 = arith.mulf %12, %21 : vector<16x128xf32>
    %c0_10 = arith.constant 0 : index
    %c0_11 = arith.constant 0 : index
    %23 = vector.load %arg4[%c0_10, %c0_11] : memref<1x128xf32, #tpu.memory_space<vmem>>, vector<1x128xf32>
    %24 = vector.broadcast %23 : vector<1x128xf32> to vector<16x128xf32>
    %25 = arith.mulf %22, %24 : vector<16x128xf32>
    %c0_12 = arith.constant 0 : index
    %c0_13 = arith.constant 0 : index
    %26 = vector.load %arg5[%c0_12, %c0_13] : memref<1x128xf32, #tpu.memory_space<vmem>>, vector<1x128xf32>
    %27 = vector.broadcast %26 : vector<1x128xf32> to vector<16x128xf32>
    %28 = arith.addf %25, %27 : vector<16x128xf32>
    %c0_14 = arith.constant 0 : index
    %c0_15 = arith.constant 0 : index
    %29 = vector.load %arg6[%c0_14, %c0_15] : memref<16x128xf32, #tpu.memory_space<vmem>>, vector<16x128xf32>
    %30 = arith.addf %28, %29 : vector<16x128xf32>
    %c0_16 = arith.constant 0 : index
    %c0_17 = arith.constant 0 : index
    %31 = vector.load %arg7[%c0_16, %c0_17] : memref<16x128xf32, #tpu.memory_space<vmem>>, vector<16x128xf32>
    tpu.vector_store %arg7[%c0_16, %c0_17], %30 {strides = array<i32>} : memref<16x128xf32, #tpu.memory_space<vmem>>, vector<16x128xf32>,
    return
  }
  func.func @transform_0(%arg0: i32) -> (i32, i32) {
    %c0_i32 = arith.constant 0 : i32
    %c0_i32_0 = arith.constant 0 : i32
    return %arg0, %c0_i32 : i32, i32
  }
  func.func @transform_1(%arg0: i32) -> (i32, i32) {
    %c0_i32 = arith.constant 0 : i32
    %c0_i32_0 = arith.constant 0 : i32
    %c0_i32_1 = arith.constant 0 : i32
    return %c0_i32, %c0_i32_0 : i32, i32
  }
  func.func @transform_2(%arg0: i32) -> (i32, i32) {
    %c0_i32 = arith.constant 0 : i32
    %c0_i32_0 = arith.constant 0 : i32
    %c0_i32_1 = arith.constant 0 : i32
    return %c0_i32, %c0_i32_0 : i32, i32
  }
  func.func @transform_3(%arg0: i32) -> (i32, i32) {
    %c0_i32 = arith.constant 0 : i32
    %c0_i32_0 = arith.constant 0 : i32
    %c0_i32_1 = arith.constant 0 : i32
    return %c0_i32, %c0_i32_0 : i32, i32
  }
  func.func @transform_4(%arg0: i32) -> (i32, i32) {
    %c0_i32 = arith.constant 0 : i32
    %c0_i32_0 = arith.constant 0 : i32
    %c0_i32_1 = arith.constant 0 : i32
    return %c0_i32, %c0_i32_0 : i32, i32
  }
  func.func @transform_5(%arg0: i32) -> (i32, i32) {
    %c0_i32 = arith.constant 0 : i32
    %c0_i32_0 = arith.constant 0 : i32
    return %arg0, %c0_i32 : i32, i32
  }
  func.func @transform_6(%arg0: i32) -> (i32, i32) {
    %c0_i32 = arith.constant 0 : i32
    %c0_i32_0 = arith.constant 0 : i32
    return %arg0, %c0_i32 : i32, i32
  }
}

module attributes {stable_mosaic.version = 11 : i64} {
  func.func @_fused_mlp_kernel(%arg0: i32, %arg1: memref<8x32xf32, #tpu.memory_space<vmem>>, %arg2: memref<32x32xbf16, #tpu.memory_space<vmem>>, %arg3: memref<1x32xf32, #tpu.memory_space<vmem>>, %arg4: memref<8x32xf32, #tpu.memory_space<vmem>>) attributes {dimension_semantics = [#tpu.dimension_semantics<parallel>], iteration_bounds = array<i64: 1>, scalar_prefetch = 0 : i64, scratch_operands = 0 : i64, tpu.core_type = #tpu.core_type<tc>, window_params = [{transform_indices = @transform_0, window_bounds = array<i64: 8, 32>}, {pipeline_mode = #tpu.pipeline_mode<synchronous>, transform_indices = @transform_1, window_bounds = array<i64: 32, 32>}, {pipeline_mode = #tpu.pipeline_mode<synchronous>, transform_indices = @transform_2, window_bounds = array<i64: 1, 32>}, {transform_indices = @transform_3, window_bounds = array<i64: 8, 32>}]} {
    %c0 = arith.constant 0 : index
    %c0_0 = arith.constant 0 : index
    %0 = vector.load %arg1[%c0, %c0_0] : memref<8x32xf32, #tpu.memory_space<vmem>>, vector<8x32xf32>
    %c0_1 = arith.constant 0 : index
    %c0_2 = arith.constant 0 : index
    %1 = vector.load %arg2[%c0_1, %c0_2] : memref<32x32xbf16, #tpu.memory_space<vmem>>, vector<32x32xbf16>
    %2 = arith.truncf %0 : vector<8x32xf32> to vector<8x32xbf16>
    %cst = arith.constant dense<0.000000e+00> : vector<8x32xf32>
    %3 = tpu.matmul %2, %1, %cst {dimension_numbers = #tpu.dot_dimension_numbers<[1], [0], [0], [1], [0, 0, 1, 1], [], []>} : vector<8x32xbf16>, vector<32x32xbf16>, vector<8x32xf32> -> vector<8x32xf32>
    %c0_3 = arith.constant 0 : index
    %c0_4 = arith.constant 0 : index
    %4 = vector.load %arg3[%c0_3, %c0_4] : memref<1x32xf32, #tpu.memory_space<vmem>>, vector<1x32xf32>
    %5 = vector.broadcast %4 : vector<1x32xf32> to vector<8x32xf32>
    %6 = arith.addf %3, %5 : vector<8x32xf32>
    %c0_5 = arith.constant 0 : index
    %c0_6 = arith.constant 0 : index
    %7 = vector.load %arg4[%c0_5, %c0_6] : memref<8x32xf32, #tpu.memory_space<vmem>>, vector<8x32xf32>
    tpu.vector_store %arg4[%c0_5, %c0_6], %6 {strides = array<i32>} : memref<8x32xf32, #tpu.memory_space<vmem>>, vector<8x32xf32>,
    return
  }
  func.func @transform_0(%arg0: i32) -> (i32, i32) {
    %c0_i32 = arith.constant 0 : i32
    %c0_i32_0 = arith.constant 0 : i32
    return %arg0, %c0_i32 : i32, i32
  }
  func.func @transform_1(%arg0: i32) -> (i32, i32) {
    %c0_i32 = arith.constant 0 : i32
    %c0_i32_0 = arith.constant 0 : i32
    %c0_i32_1 = arith.constant 0 : i32
    return %c0_i32, %c0_i32_0 : i32, i32
  }
  func.func @transform_2(%arg0: i32) -> (i32, i32) {
    %c0_i32 = arith.constant 0 : i32
    %c0_i32_0 = arith.constant 0 : i32
    %c0_i32_1 = arith.constant 0 : i32
    return %c0_i32, %c0_i32_0 : i32, i32
  }
  func.func @transform_3(%arg0: i32) -> (i32, i32) {
    %c0_i32 = arith.constant 0 : i32
    %c0_i32_0 = arith.constant 0 : i32
    return %arg0, %c0_i32 : i32, i32
  }
}

module attributes {stable_mosaic.version = 11 : i64} {
  func.func @_fused_mlp_kernel(%arg0: i32, %arg1: memref<8x32xf32, #tpu.memory_space<vmem>>, %arg2: memref<32x128xbf16, #tpu.memory_space<vmem>>, %arg3: memref<1x128xf32, #tpu.memory_space<vmem>>, %arg4: memref<128x128xbf16, #tpu.memory_space<vmem>>, %arg5: memref<1x128xf32, #tpu.memory_space<vmem>>, %arg6: memref<8x128xf32, #tpu.memory_space<vmem>>) attributes {dimension_semantics = [#tpu.dimension_semantics<parallel>], iteration_bounds = array<i64: 1>, scalar_prefetch = 0 : i64, scratch_operands = 0 : i64, tpu.core_type = #tpu.core_type<tc>, window_params = [{transform_indices = @transform_0, window_bounds = array<i64: 8, 32>}, {pipeline_mode = #tpu.pipeline_mode<synchronous>, transform_indices = @transform_1, window_bounds = array<i64: 32, 128>}, {pipeline_mode = #tpu.pipeline_mode<synchronous>, transform_indices = @transform_2, window_bounds = array<i64: 1, 128>}, {pipeline_mode = #tpu.pipeline_mode<synchronous>, transform_indices = @transform_3, window_bounds = array<i64: 128, 128>}, {pipeline_mode = #tpu.pipeline_mode<synchronous>, transform_indices = @transform_4, window_bounds = array<i64: 1, 128>}, {transform_indices = @transform_5, window_bounds = array<i64: 8, 128>}]} {
    %c0 = arith.constant 0 : index
    %c0_0 = arith.constant 0 : index
    %0 = vector.load %arg1[%c0, %c0_0] : memref<8x32xf32, #tpu.memory_space<vmem>>, vector<8x32xf32>
    %c0_1 = arith.constant 0 : index
    %c0_2 = arith.constant 0 : index
    %1 = vector.load %arg2[%c0_1, %c0_2] : memref<32x128xbf16, #tpu.memory_space<vmem>>, vector<32x128xbf16>
    %2 = arith.truncf %0 : vector<8x32xf32> to vector<8x32xbf16>
    %cst = arith.constant dense<0.000000e+00> : vector<8x128xf32>
    %3 = tpu.matmul %2, %1, %cst {dimension_numbers = #tpu.dot_dimension_numbers<[1], [0], [0], [1], [0, 0, 1, 1], [], []>} : vector<8x32xbf16>, vector<32x128xbf16>, vector<8x128xf32> -> vector<8x128xf32>
    %c0_3 = arith.constant 0 : index
    %c0_4 = arith.constant 0 : index
    %4 = vector.load %arg3[%c0_3, %c0_4] : memref<1x128xf32, #tpu.memory_space<vmem>>, vector<1x128xf32>
    %5 = vector.broadcast %4 : vector<1x128xf32> to vector<8x128xf32>
    %6 = arith.addf %3, %5 : vector<8x128xf32>
    %cst_5 = arith.constant 0.000000e+00 : f32
    %7 = vector.broadcast %cst_5 : f32 to vector<8x128xf32>
    %8 = arith.maximumf %6, %7 : vector<8x128xf32>
    %c0_6 = arith.constant 0 : index
    %c0_7 = arith.constant 0 : index
    %9 = vector.load %arg4[%c0_6, %c0_7] : memref<128x128xbf16, #tpu.memory_space<vmem>>, vector<128x128xbf16>
    %10 = arith.truncf %8 : vector<8x128xf32> to vector<8x128xbf16>
    %cst_8 = arith.constant dense<0.000000e+00> : vector<8x128xf32>
    %11 = tpu.matmul %10, %9, %cst_8 {dimension_numbers = #tpu.dot_dimension_numbers<[1], [0], [0], [1], [0, 0, 1, 1], [], []>} : vector<8x128xbf16>, vector<128x128xbf16>, vector<8x128xf32> -> vector<8x128xf32>
    %c0_9 = arith.constant 0 : index
    %c0_10 = arith.constant 0 : index
    %12 = vector.load %arg5[%c0_9, %c0_10] : memref<1x128xf32, #tpu.memory_space<vmem>>, vector<1x128xf32>
    %13 = vector.broadcast %12 : vector<1x128xf32> to vector<8x128xf32>
    %14 = arith.addf %11, %13 : vector<8x128xf32>
    %c0_11 = arith.constant 0 : index
    %c0_12 = arith.constant 0 : index
    %15 = vector.load %arg6[%c0_11, %c0_12] : memref<8x128xf32, #tpu.memory_space<vmem>>, vector<8x128xf32>
    tpu.vector_store %arg6[%c0_11, %c0_12], %14 {strides = array<i32>} : memref<8x128xf32, #tpu.memory_space<vmem>>, vector<8x128xf32>,
    return
  }
  func.func @transform_0(%arg0: i32) -> (i32, i32) {
    %c0_i32 = arith.constant 0 : i32
    %c0_i32_0 = arith.constant 0 : i32
    return %arg0, %c0_i32 : i32, i32
  }
  func.func @transform_1(%arg0: i32) -> (i32, i32) {
    %c0_i32 = arith.constant 0 : i32
    %c0_i32_0 = arith.constant 0 : i32
    %c0_i32_1 = arith.constant 0 : i32
    return %c0_i32, %c0_i32_0 : i32, i32
  }
  func.func @transform_2(%arg0: i32) -> (i32, i32) {
    %c0_i32 = arith.constant 0 : i32
    %c0_i32_0 = arith.constant 0 : i32
    %c0_i32_1 = arith.constant 0 : i32
    return %c0_i32, %c0_i32_0 : i32, i32
  }
  func.func @transform_3(%arg0: i32) -> (i32, i32) {
    %c0_i32 = arith.constant 0 : i32
    %c0_i32_0 = arith.constant 0 : i32
    %c0_i32_1 = arith.constant 0 : i32
    return %c0_i32, %c0_i32_0 : i32, i32
  }
  func.func @transform_4(%arg0: i32) -> (i32, i32) {
    %c0_i32 = arith.constant 0 : i32
    %c0_i32_0 = arith.constant 0 : i32
    %c0_i32_1 = arith.constant 0 : i32
    return %c0_i32, %c0_i32_0 : i32, i32
  }
  func.func @transform_5(%arg0: i32) -> (i32, i32) {
    %c0_i32 = arith.constant 0 : i32
    %c0_i32_0 = arith.constant 0 : i32
    return %arg0, %c0_i32 : i32, i32
  }
}

module attributes {stable_mosaic.version = 11 : i64} {
  func.func @_fused_mlp_kernel(%arg0: i32, %arg1: memref<16x160xf32, #tpu.memory_space<vmem>>, %arg2: memref<160x128xbf16, #tpu.memory_space<vmem>>, %arg3: memref<1x128xf32, #tpu.memory_space<vmem>>, %arg4: memref<128x128xbf16, #tpu.memory_space<vmem>>, %arg5: memref<1x128xf32, #tpu.memory_space<vmem>>, %arg6: memref<128x2xbf16, #tpu.memory_space<vmem>>, %arg7: memref<1x2xf32, #tpu.memory_space<vmem>>, %arg8: memref<16x2xf32, #tpu.memory_space<vmem>>) attributes {dimension_semantics = [#tpu.dimension_semantics<parallel>], iteration_bounds = array<i64: 2>, scalar_prefetch = 0 : i64, scratch_operands = 0 : i64, tpu.core_type = #tpu.core_type<tc>, window_params = [{transform_indices = @transform_0, window_bounds = array<i64: 16, 160>}, {pipeline_mode = #tpu.pipeline_mode<synchronous>, transform_indices = @transform_1, window_bounds = array<i64: 160, 128>}, {pipeline_mode = #tpu.pipeline_mode<synchronous>, transform_indices = @transform_2, window_bounds = array<i64: 1, 128>}, {pipeline_mode = #tpu.pipeline_mode<synchronous>, transform_indices = @transform_3, window_bounds = array<i64: 128, 128>}, {pipeline_mode = #tpu.pipeline_mode<synchronous>, transform_indices = @transform_4, window_bounds = array<i64: 1, 128>}, {pipeline_mode = #tpu.pipeline_mode<synchronous>, transform_indices = @transform_5, window_bounds = array<i64: 128, 2>}, {pipeline_mode = #tpu.pipeline_mode<synchronous>, transform_indices = @transform_6, window_bounds = array<i64: 1, 2>}, {transform_indices = @transform_7, window_bounds = array<i64: 16, 2>}]} {
    %c0 = arith.constant 0 : index
    %c0_0 = arith.constant 0 : index
    %0 = vector.load %arg1[%c0, %c0_0] : memref<16x160xf32, #tpu.memory_space<vmem>>, vector<16x160xf32>
    %c0_1 = arith.constant 0 : index
    %c0_2 = arith.constant 0 : index
    %1 = vector.load %arg2[%c0_1, %c0_2] : memref<160x128xbf16, #tpu.memory_space<vmem>>, vector<160x128xbf16>
    %2 = arith.truncf %0 : vector<16x160xf32> to vector<16x160xbf16>
    %cst = arith.constant dense<0.000000e+00> : vector<16x128xf32>
    %3 = tpu.matmul %2, %1, %cst {dimension_numbers = #tpu.dot_dimension_numbers<[1], [0], [0], [1], [0, 0, 1, 1], [], []>} : vector<16x160xbf16>, vector<160x128xbf16>, vector<16x128xf32> -> vector<16x128xf32>
    %c0_3 = arith.constant 0 : index
    %c0_4 = arith.constant 0 : index
    %4 = vector.load %arg3[%c0_3, %c0_4] : memref<1x128xf32, #tpu.memory_space<vmem>>, vector<1x128xf32>
    %5 = vector.broadcast %4 : vector<1x128xf32> to vector<16x128xf32>
    %6 = arith.addf %3, %5 : vector<16x128xf32>
    %cst_5 = arith.constant 0.000000e+00 : f32
    %7 = vector.broadcast %cst_5 : f32 to vector<16x128xf32>
    %8 = arith.maximumf %6, %7 : vector<16x128xf32>
    %c0_6 = arith.constant 0 : index
    %c0_7 = arith.constant 0 : index
    %9 = vector.load %arg4[%c0_6, %c0_7] : memref<128x128xbf16, #tpu.memory_space<vmem>>, vector<128x128xbf16>
    %10 = arith.truncf %8 : vector<16x128xf32> to vector<16x128xbf16>
    %cst_8 = arith.constant dense<0.000000e+00> : vector<16x128xf32>
    %11 = tpu.matmul %10, %9, %cst_8 {dimension_numbers = #tpu.dot_dimension_numbers<[1], [0], [0], [1], [0, 0, 1, 1], [], []>} : vector<16x128xbf16>, vector<128x128xbf16>, vector<16x128xf32> -> vector<16x128xf32>
    %c0_9 = arith.constant 0 : index
    %c0_10 = arith.constant 0 : index
    %12 = vector.load %arg5[%c0_9, %c0_10] : memref<1x128xf32, #tpu.memory_space<vmem>>, vector<1x128xf32>
    %13 = vector.broadcast %12 : vector<1x128xf32> to vector<16x128xf32>
    %14 = arith.addf %11, %13 : vector<16x128xf32>
    %cst_11 = arith.constant 0.000000e+00 : f32
    %15 = vector.broadcast %cst_11 : f32 to vector<16x128xf32>
    %16 = arith.maximumf %14, %15 : vector<16x128xf32>
    %c0_12 = arith.constant 0 : index
    %c0_13 = arith.constant 0 : index
    %17 = vector.load %arg6[%c0_12, %c0_13] : memref<128x2xbf16, #tpu.memory_space<vmem>>, vector<128x2xbf16>
    %18 = arith.truncf %16 : vector<16x128xf32> to vector<16x128xbf16>
    %cst_14 = arith.constant dense<0.000000e+00> : vector<16x2xf32>
    %19 = tpu.matmul %18, %17, %cst_14 {dimension_numbers = #tpu.dot_dimension_numbers<[1], [0], [0], [1], [0, 0, 1, 1], [], []>} : vector<16x128xbf16>, vector<128x2xbf16>, vector<16x2xf32> -> vector<16x2xf32>
    %c0_15 = arith.constant 0 : index
    %c0_16 = arith.constant 0 : index
    %20 = vector.load %arg7[%c0_15, %c0_16] : memref<1x2xf32, #tpu.memory_space<vmem>>, vector<1x2xf32>
    %21 = vector.broadcast %20 : vector<1x2xf32> to vector<16x2xf32>
    %22 = arith.addf %19, %21 : vector<16x2xf32>
    %c0_17 = arith.constant 0 : index
    %c0_18 = arith.constant 0 : index
    %23 = vector.load %arg8[%c0_17, %c0_18] : memref<16x2xf32, #tpu.memory_space<vmem>>, vector<16x2xf32>
    tpu.vector_store %arg8[%c0_17, %c0_18], %22 {strides = array<i32>} : memref<16x2xf32, #tpu.memory_space<vmem>>, vector<16x2xf32>,
    return
  }
  func.func @transform_0(%arg0: i32) -> (i32, i32) {
    %c0_i32 = arith.constant 0 : i32
    %c0_i32_0 = arith.constant 0 : i32
    return %arg0, %c0_i32 : i32, i32
  }
  func.func @transform_1(%arg0: i32) -> (i32, i32) {
    %c0_i32 = arith.constant 0 : i32
    %c0_i32_0 = arith.constant 0 : i32
    %c0_i32_1 = arith.constant 0 : i32
    return %c0_i32, %c0_i32_0 : i32, i32
  }
  func.func @transform_2(%arg0: i32) -> (i32, i32) {
    %c0_i32 = arith.constant 0 : i32
    %c0_i32_0 = arith.constant 0 : i32
    %c0_i32_1 = arith.constant 0 : i32
    return %c0_i32, %c0_i32_0 : i32, i32
  }
  func.func @transform_3(%arg0: i32) -> (i32, i32) {
    %c0_i32 = arith.constant 0 : i32
    %c0_i32_0 = arith.constant 0 : i32
    %c0_i32_1 = arith.constant 0 : i32
    return %c0_i32, %c0_i32_0 : i32, i32
  }
  func.func @transform_4(%arg0: i32) -> (i32, i32) {
    %c0_i32 = arith.constant 0 : i32
    %c0_i32_0 = arith.constant 0 : i32
    %c0_i32_1 = arith.constant 0 : i32
    return %c0_i32, %c0_i32_0 : i32, i32
  }
  func.func @transform_5(%arg0: i32) -> (i32, i32) {
    %c0_i32 = arith.constant 0 : i32
    %c0_i32_0 = arith.constant 0 : i32
    %c0_i32_1 = arith.constant 0 : i32
    return %c0_i32, %c0_i32_0 : i32, i32
  }
  func.func @transform_6(%arg0: i32) -> (i32, i32) {
    %c0_i32 = arith.constant 0 : i32
    %c0_i32_0 = arith.constant 0 : i32
    %c0_i32_1 = arith.constant 0 : i32
    return %c0_i32, %c0_i32_0 : i32, i32
  }
  func.func @transform_7(%arg0: i32) -> (i32, i32) {
    %c0_i32 = arith.constant 0 : i32
    %c0_i32_0 = arith.constant 0 : i32
    return %arg0, %c0_i32 : i32, i32
  }
}

</mosaic_0001>

<bundles_post_ra>
// kernel: transformer_backbone_fwd.23
= control target key start
LH: loop header
LB: loop body
LE: loop exit
PB: predicated region body
PF: predicated region fallthrough
CT: control target
= control target key end

     0   :  { %s400_s15 = smov 0   ;;  %s431_s0 = inlined_call_operand.vmem [shape: f32[32,128], index: 0, kind: input, shape index: {}]   ;;  %s432_s1 = inlined_call_operand.vmem [shape: f32[1,128], index: 1, kind: input, shape index: {}]   ;;  %s433_s2 = inlined_call_operand.vmem [shape: f32[1,128], index: 2, kind: input, shape index: {}]   ;;  %s434_s3 = inlined_call_operand.vmem [shape: f32[32,128], index: 3, kind: input, shape index: {}]   ;;  %s435_s4 = inlined_call_operand.vmem [shape: f32[32,128], index: 4, kind: output, shape index: {}]  }
   0x1 LB: > { %s340_s16 = sadd.s32 4294967295, %s373_s15   ;;  %p344_p0 = scmp.ge.s32.totalorder %s373_s15, 1  ;;  %s373_s15 = sphi %s400_s15, %s14_s15  }
   0x2   : > { %p174_p1 = scmp.lt.s32.totalorder %s373_s15, 3 }
   0x4   : > { %p175_p2 = pnand %p344_p0, %p174_p1 }
   0x5   : > { %s345_s17 = sshll.u32 (!%p175_p2), %s340_s16, 1 }
   0x6   : > { %178 = sbr.rel (%p175_p2) target bundleno = 329 (0x149), region = 36  ;;  %p206_p3 = scmp.lt.s32.totalorder (!%p175_p2), %s345_s17, 3 }
   0xb   : > { %s437_s17 = smov (!%p206_p3, %s345_s17), 3  ;;  %v351_v21 = vld [vmem:[%s432_s1] ss:$0 sm:$0xff] }
   0xc   : > { %s408_s18 = sshll.u32 %s437_s17, 3  ;;  %v352_v23 = vld [vmem:[%s433_s2] ss:$0 sm:$0xff] }
   0xd   : > { %s209_s21 = scalar_lea.vmem %s431_s0, %s408_s18  ;;  %s215_s24 = scalar_lea.vmem %s434_s3, %s408_s18 }
   0xe   : > { %v223_v0 = vld [vmem:[%s209_s21] sm:$0xff]  ;;  %v224_v2 = vld [vmem:[%s209_s21 + $0x8] sm:$0xff]  ;;  %s221_s5 = scalar_lea.vmem %s435_s4, %s408_s18 }
   0xf   : > { %v225_v1 = vld [vmem:[%s215_s24] sm:$0xff]  ;;  %v226_v4 = vld [vmem:[%s215_s24 + $0x8] sm:$0xff] }
  0x10   : > { %v227_v3 = vadd.f32 %v225_v1, %v223_v0  ;;  %v228_v5 = vadd.f32 %v226_v4, %v224_v2 }
  0x12   : > { %229 = vadd.xlane.f32.xlu0 %v227_v3 }
  0x16   : > { %231 = vadd.xlane.f32.xlu0 %v228_v5 }
  0x9b   : > { %v230_v6 = vpop.xlane.xlu0 %229 }
  0x9c   : > { %v234_v7 = vmul.f32 0.0078125, %v230_v6 }
  0x9e   : > { %v236_v8 = vsub.f32 %v227_v3, %v234_v7 }
  0x9f   : > { %v232_v9 = vpop.xlane.xlu0 %231 }
  0xa0   : > { %v235_v10 = vmul.f32 0.0078125, %v232_v9  ;;  %v238_v11 = vmul.f32 %v236_v8, %v236_v8 }
  0xa2   : > { %v237_v12 = vsub.f32 %v228_v5, %v235_v10  ;;  %240 = vadd.xlane.f32.xlu1 %v238_v11 }
  0xa4   : > { %v239_v13 = vmul.f32 %v237_v12, %v237_v12 }
  0xa6   : > { %242 = vadd.xlane.f32.xlu1 %v239_v13 }
 0x12b   : > { %v241_v14 = vpop.xlane.xlu1 %240 }
 0x12c   : > { %v244_v15 = vmul.f32 0.0078125, %v241_v14 }
 0x12e   : > { %v246_v16 = vadd.f32 1e-05, %v244_v15 }
 0x12f   : > { %v243_v17 = vpop.xlane.xlu1 %242 }
 0x130   : > { %363 = vrsqrt.f32 %v246_v16  ;;  %v245_v18 = vmul.f32 0.0078125, %v243_v17 }
 0x132   : > { %v247_v19 = vadd.f32 1e-05, %v245_v18 }
 0x134   : > { %365 = vrsqrt.f32 %v247_v19 }
 0x13d   : > { %v364_v20 = vpop.eup %363 }
 0x13e   : > { %v250_v22 = vmul.f32 %v364_v20, %v236_v8 }
 0x140   : > { %v259_v24 = vmul.f32 %v351_v21, %v250_v22 }
 0x141   : > { %v366_v25 = vpop.eup %365 }
 0x142   : > { %v268_v26 = vadd.f32 %v352_v23, %v259_v24  ;;  %v251_v27 = vmul.f32 %v366_v25, %v237_v12 }
 0x144   : > { %270 = vst [vmem:[%s221_s5] sm:$0xff] %v268_v26  ;;  %v260_v28 = vmul.f32 %v351_v21, %v251_v27 }
 0x146   : > { %v269_v29 = vadd.f32 %v352_v23, %v260_v28 }
 0x148   : > { %271 = vst [vmem:[%s221_s5 + $0x8] sm:$0xff] %v269_v29 }
 0x149 PF: > { %s14_s15 = sadd.s32 1, %s373_s15  }
 0x14a   : > { %p11_p4 = scmp.ge.s32.totalorder %s14_s15, 4  }
 0x14c   :  { %13 = sbr.rel (!%p11_p4) target bundleno = 1 (0x1), region = 69 }

// kernel: transformer_backbone_fwd.22
= control target key start
LH: loop header
LB: loop body
LE: loop exit
PB: predicated region body
PF: predicated region fallthrough
CT: control target
= control target key end

     0   :  { %s822_s24 = smov 0   ;;  %s933_s0 = inlined_call_operand.vmem [shape: f32[32,32], index: 0, kind: input, shape index: {}]   ;;  %s934_s1 = inlined_call_operand.vmem [shape: bf16[32,128], index: 1, kind: input, shape index: {}]   ;;  %s935_s2 = inlined_call_operand.vmem [shape: f32[1,128], index: 2, kind: input, shape index: {}]   ;;  %s936_s3 = inlined_call_operand.vmem [shape: bf16[128,128], index: 3, kind: input, shape index: {}]   ;;  %s937_s4 = inlined_call_operand.vmem [shape: f32[1,128], index: 4, kind: input, shape index: {}]   ;;  %s938_s5 = inlined_call_operand.vmem [shape: bf16[128,128], index: 5, kind: input, shape index: {}]   ;;  %s939_s6 = inlined_call_operand.vmem [shape: f32[1,128], index: 6, kind: input, shape index: {}]   ;;  %s940_s7 = inlined_call_operand.vmem [shape: f32[32,128], index: 7, kind: output, shape index: {}]  }
   0x1 LB: > { %s642_s25 = sadd.s32 4294967295, %s778_s24   ;;  %p646_p0 = scmp.ge.s32.totalorder %s778_s24, 1  ;;  %s778_s24 = sphi %s822_s24, %s17_s24  }
   0x2   : > { %p238_p1 = scmp.lt.s32.totalorder %s778_s24, 3 }
   0x4   : > { %p239_p2 = pnand %p646_p0, %p238_p1 }
   0x5   : > { %s647_s30 = sshll.u32 (!%p239_p2), %s642_s25, 1 }
   0x6   : > { %242 = sbr.rel (%p239_p2) target bundleno = 626 (0x272), region = 48  ;;  %p271_p3 = scmp.lt.s32.totalorder (!%p239_p2), %s647_s30, 3 }
   0xb   : > { %v754_v0 = vld [vmem:[%s934_s1 + $0x8] sm:$0xff]   ;;  %v780_v1 = vmov 0.0   ;;  %v755_v2 = vld [vmem:[%s934_s1] sm:$0xff]   ;;  %vm781_vm0 = vmmov 0   ;;  %v756_v3 = vld [vmem:[%s936_s3 + $0x38] sm:$0xff]   ;;  %s942_s30 = smov (!%p271_p3, %s647_s30), 3 }
   0xc   : > { %696 = vmatprep.subr.bf16.mxu0 %v780_v1  ;;  %704 = vmatprep.subr.bf16.mxu1 %v780_v1  ;;  %v757_v4 = vld [vmem:[%s936_s3 + $0x30] sm:$0xff]   ;;  %s648_s12 = sshll.u32 %s942_s30, 3  ;;  %v758_v5 = vld [vmem:[%s936_s3 + $0x28] sm:$0xff]   ;;  %vm309_vm1 = vcmask 261120   ;;  %v759_v9 = vld [vmem:[%s936_s3 + $0x20] sm:$0xff]  }
   0xd   : > { %697 = vmatpush3.bf16.msra.mxu0 %v754_v0  ;;  %700 = vmatprep.mubr.msk.bf16.mxu0 %vm781_vm0, %v780_v1  ;;  %s274_s17 = scalar_lea.vmem %s933_s0, %s648_s12  ;;  %v760_v10 = vld [vmem:[%s936_s3 + $0x18] sm:$0xff]   ;;  %v761_v11 = vld [vmem:[%s936_s3 + $0x10] sm:$0xff]   ;;  %v762_v12 = vld [vmem:[%s936_s3 + $0x8] sm:$0xff]   ;;  %s280_s11 = scalar_lea.vmem %s940_s7, %s648_s12 }
   0xe   : > { %698 = vmatprep.subr.bf16.mxu0 %v780_v1  ;;  %720 = vmatprep.mubr.msk.bf16.mxu1 %vm781_vm0, %v780_v1  ;;  %v283_v6 = vld [vmem:[%s274_s17] sm:$0xff]  ;;  %v284_v7 = vld [vmem:[%s274_s17 + $0x8] sm:$0xff]  ;;  %v764_v14 = vld [vmem:[%s938_s5 + $0x38] sm:$0xff]  }
   0xf   : > { %705 = vmatpush3.bf16.msra.mxu1 %v756_v3  ;;  %v289_v8 = vpack.c.bf16 %v284_v7, %v283_v6  ;;  %v763_v13 = vld [vmem:[%s936_s3] sm:$0xff]   ;;  %v765_v15 = vld [vmem:[%s938_s5 + $0x30] sm:$0xff]   ;;  %v766_v16 = vld [vmem:[%s938_s5 + $0x28] sm:$0xff]  }
  0x10   : > { %706 = vmatprep.subr.bf16.mxu1 %v780_v1  ;;  %v767_v17 = vld [vmem:[%s938_s5 + $0x20] sm:$0xff]   ;;  %v768_v18 = vld [vmem:[%s938_s5 + $0x18] sm:$0xff]   ;;  %v769_v29 = vld [vmem:[%s938_s5 + $0x10] sm:$0xff]  }
  0x11   : > { %699 = vmatpush3.bf16.msra.mxu0 %v755_v2  ;;  %v651_v19 = vld [vmem:[%s935_s2] ss:$0 sm:$0xff]  ;;  %v770_v30 = vld [vmem:[%s938_s5 + $0x8] sm:$0xff]  }
  0x12   : > { %724 = vmatprep.subr.bf16.mxu0 %v780_v1  ;;  %v771_v31 = vld [vmem:[%s938_s5] sm:$0xff]  }
  0x13   : > { %707 = vmatpush3.bf16.msra.mxu1 %v757_v4  ;;  %v655_v32 = vld [vmem:[%s937_s4] ss:$0 sm:$0xff] }
  0x14   : > { %708 = vmatprep.subr.bf16.mxu1 %v780_v1  ;;  %701 = vmatmul.mubr.msk.bf16.vlgmr.msra.gmra.mxu0 %vm309_vm1, %v289_v8  ;;  %v664_v42 = vld [vmem:[%s939_s6] ss:$0 sm:$0xff] }
  0x15   : > { %740 = vmatprep.mubr.msk.bf16.mxu0 %vm781_vm0, %v780_v1  ;;  %725 = vmatpush3.bf16.msra.mxu0 %v764_v14 }
  0x16   : > { %726 = vmatprep.subr.bf16.mxu0 %v780_v1 }
  0x17   : > { %709 = vmatpush3.bf16.msra.mxu1 %v758_v5 }
  0x18   : > { %710 = vmatprep.subr.bf16.mxu1 %v780_v1 }
  0x19   : > { %727 = vmatpush3.bf16.msra.mxu0 %v765_v15 }
  0x1a   : > { %728 = vmatprep.subr.bf16.mxu0 %v780_v1 }
  0x1b   : > { %711 = vmatpush3.bf16.msra.mxu1 %v759_v9 }
  0x1c   : > { %712 = vmatprep.subr.bf16.mxu1 %v780_v1 }
  0x1d   : > { %729 = vmatpush3.bf16.msra.mxu0 %v766_v16 }
  0x1e   : > { %730 = vmatprep.subr.bf16.mxu0 %v780_v1 }
  0x1f   : > { %713 = vmatpush3.bf16.msra.mxu1 %v760_v10 }
  0x20   : > { %714 = vmatprep.subr.bf16.mxu1 %v780_v1 }
  0x21   : > { %731 = vmatpush3.bf16.msra.mxu0 %v767_v17 }
  0x22   : > { %732 = vmatprep.subr.bf16.mxu0 %v780_v1 }
  0x23   : > { %715 = vmatpush3.bf16.msra.mxu1 %v761_v11 }
  0x24   : > { %716 = vmatprep.subr.bf16.mxu1 %v780_v1 }
  0x25   : > { %733 = vmatpush3.bf16.msra.mxu0 %v768_v18 }
  0x26   : > { %734 = vmatprep.subr.bf16.mxu0 %v780_v1 }
  0x27   : > { %717 = vmatpush3.bf16.msra.mxu1 %v762_v12 }
  0x28   : > { %718 = vmatprep.subr.bf16.mxu1 %v780_v1 }
  0x29   : > { %735 = vmatpush3.bf16.msra.mxu0 %v769_v29 }
  0x2a   : > { %736 = vmatprep.subr.bf16.mxu0 %v780_v1 }
  0x2b   : > { %719 = vmatpush3.bf16.msra.mxu1 %v763_v13 }
  0x2d   : > { %737 = vmatpush3.bf16.msra.mxu0 %v770_v30 }
  0x2e   : > { %738 = vmatprep.subr.bf16.mxu0 %v780_v1 }
  0x31   : > { %739 = vmatpush3.bf16.msra.mxu0 %v771_v31 }
  0xd4   : > { %v347_v20 = vpop.f32.mrf.mxu0 }
  0xd5   : > { %v348_v22 = vadd.f32 %v651_v19, %v347_v20 }
  0xd6   : > { %v702_v21 = vpop.f32.mrf.mxu0 }
  0xd7   : > { %v354_v26 = vmax.f32 %v348_v22, 0.0 }
  0xd8   : > { %v350_v23 = vpop.f32.mrf.mxu0 }
  0xd9   : > { %v351_v24 = vadd.f32 %v651_v19, %v350_v23 }
  0xda   : > { %v703_v25 = vpop.f32.mrf.mxu0 }
  0xdb   : > { %v355_v27 = vmax.f32 %v351_v24, 0.0 }
  0xdd   : > { %v372_v28 = vpack.c.bf16 %v355_v27, %v354_v26 }
  0xdf   : > { %721 = vmatmul.mubr.bf16.vlgmr.msra.gmra.mxu1 %v372_v28 }
 0x19f   : > { %v462_v33 = vpop.f32.mrf.mxu1 }
 0x1a0   : > { %v463_v35 = vadd.f32 %v655_v32, %v462_v33 }
 0x1a1   : > { %v722_v34 = vpop.f32.mrf.mxu1 }
 0x1a2   : > { %v469_v39 = vmax.f32 %v463_v35, 0.0 }
 0x1a3   : > { %v465_v36 = vpop.f32.mrf.mxu1 }
 0x1a4   : > { %v466_v37 = vadd.f32 %v655_v32, %v465_v36 }
 0x1a5   : > { %v723_v38 = vpop.f32.mrf.mxu1 }
 0x1a6   : > { %v470_v40 = vmax.f32 %v466_v37, 0.0 }
 0x1a8   : > { %v487_v41 = vpack.c.bf16 %v470_v40, %v469_v39 }
 0x1aa   : > { %741 = vmatmul.mubr.bf16.vlgmr.msra.gmra.mxu0 %v487_v41 }
 0x26a   : > { %v577_v43 = vpop.f32.mrf.mxu0 }
 0x26b   : > { %v578_v44 = vadd.f32 %v664_v42, %v577_v43 }
 0x26c   : > { %v742_v45 = vpop.f32.mrf.mxu0 }
 0x26d   : > { %584 = vst [vmem:[%s280_s11] sm:$0xff] %v578_v44 }
 0x26e   : > { %v580_v46 = vpop.f32.mrf.mxu0 }
 0x26f   : > { %v581_v47 = vadd.f32 %v664_v42, %v580_v46 }
 0x270   : > { %v743_v48 = vpop.f32.mrf.mxu0 }
 0x271   : > { %585 = vst [vmem:[%s280_s11 + $0x8] sm:$0xff] %v581_v47 }
 0x272 PF: > { %s17_s24 = sadd.s32 1, %s778_s24  }
 0x273   : > { %p14_p4 = scmp.ge.s32.totalorder %s17_s24, 4  }
 0x275   :  { %16 = sbr.rel (!%p14_p4) target bundleno = 1 (0x1), region = 78 }

// kernel: transformer_backbone_fwd.19
= control target key start
LH: loop header
LB: loop body
LE: loop exit
PB: predicated region body
PF: predicated region fallthrough
CT: control target
= control target key end

     0   :  { %s1221_s17 = smov 0   ;;  %s1384_s0 = inlined_call_operand.vmem [shape: f32[32,96], index: 0, kind: input, shape index: {}]   ;;  %s1385_s1 = inlined_call_operand.vmem [shape: bf16[96,256], index: 1, kind: input, shape index: {}]   ;;  %s1386_s2 = inlined_call_operand.vmem [shape: f32[1,256], index: 2, kind: input, shape index: {}]   ;;  %s1387_s3 = inlined_call_operand.vmem [shape: f32[1,256], index: 3, kind: input, shape index: {}]   ;;  %s1388_s4 = inlined_call_operand.vmem [shape: f32[1,256], index: 4, kind: input, shape index: {}]   ;;  %s1389_s5 = inlined_call_operand.vmem [shape: bf16[256,128], index: 5, kind: input, shape index: {}]   ;;  %s1390_s6 = inlined_call_operand.vmem [shape: f32[1,128], index: 6, kind: input, shape index: {}]   ;;  %s1391_s7 = inlined_call_operand.vmem [shape: f32[1,128], index: 7, kind: input, shape index: {}]   ;;  %s1392_s8 = inlined_call_operand.vmem [shape: f32[1,128], index: 8, kind: input, shape index: {}]   ;;  %s1393_s9 = inlined_call_operand.vmem [shape: bf16[128,128], index: 9, kind: input, shape index: {}]   ;;  %s1394_s10 = inlined_call_operand.vmem [shape: f32[1,128], index: 10, kind: input, shape index: {}]   ;;  %s1395_s11 = inlined_call_operand.vmem [shape: f32[32,128], index: 11, kind: output, shape index: {}]  }
   0x1 LB: > { %s986_s18 = sadd.s32 4294967295, %s1156_s17   ;;  %p990_p0 = scmp.ge.s32.totalorder %s1156_s17, 1  ;;  %s1156_s17 = sphi %s1221_s17, %s21_s17  }
   0x2   : > { %p338_p1 = scmp.lt.s32.totalorder %s1156_s17, 3 }
   0x4   : > { %p339_p2 = pnand %p990_p0, %p338_p1 }
   0x5   : > { %s991_s21 = sshll.u32 (!%p339_p2), %s986_s18, 1 }
   0x6   : > { %342 = sbr.rel (%p339_p2) target bundleno = 1265 (0x4f1), region = 64  ;;  %p379_p3 = scmp.lt.s32.totalorder (!%p339_p2), %s991_s21, 3 }
   0xb   : > { %v1100_v0 = vld [vmem:[%s1385_s1 + $0x54] ss:$8 sps:$4 sm:$0xff]   ;;  %v1102_v1 = vld [vmem:[%s1385_s1 + $0x50] ss:$8 sps:$4 sm:$0xff]   ;;  %v1158_v2 = vmov 0   ;;  %s1397_s21 = smov (!%p379_p3, %s991_s21), 3  ;;  %v408_v16 = vlaneseq }
   0xc   : > { %514 = vmatprep.mubr.bf16.mxu0 %v1158_v2  ;;  %486 = vmatprep.subr.bf16.mxu0 %v1100_v0  ;;  %v1103_v3 = vld [vmem:[%s1385_s1 + $0x44] ss:$8 sps:$4 sm:$0xff]   ;;  %v1105_v4 = vld [vmem:[%s1385_s1 + $0x40] ss:$8 sps:$4 sm:$0xff]   ;;  %v1106_v5 = vld [vmem:[%s1385_s1 + $0x34] ss:$8 sps:$4 sm:$0xff]  }
   0xd   : > { %487 = vmatpush1.bf16.msra.mxu0 %v1102_v1  ;;  %v1108_v6 = vld [vmem:[%s1385_s1 + $0x30] ss:$8 sps:$4 sm:$0xff]   ;;  %v1109_v7 = vld [vmem:[%s1385_s1 + $0x24] ss:$8 sps:$4 sm:$0xff]   ;;  %s992_s15 = sshll.u32 %s1397_s21, 3  ;;  %vm478_vm0 = vcmask 785408  }
   0xe   : > { %488 = vmatprep.subr.bf16.mxu0 %v1103_v3  ;;  %v1111_v8 = vld [vmem:[%s1385_s1 + $0x20] ss:$8 sps:$4 sm:$0xff]   ;;  %v1112_v9 = vld [vmem:[%s1385_s1 + $0x14] ss:$8 sps:$4 sm:$0xff]   ;;  %v1114_v10 = vld [vmem:[%s1385_s1 + $0x10] ss:$8 sps:$4 sm:$0xff]   ;;  %s382_s28 = scalar_lea.vmem %s1384_s0, %s992_s15  ;;  %s388_s12 = scalar_lea.vmem %s1395_s11, %s992_s15 }
   0xf   : > { %v1115_v11 = vld [vmem:[%s1385_s1 + $0x4] ss:$8 sps:$4 sm:$0xff]   ;;  %v1117_v12 = vld [vmem:[%s1385_s1] ss:$8 sps:$4 sm:$0xff]   ;;  %v409_v17 = vshrl.u32 %v408_v16, 7  ;;  %v1118_v47 = vld [vmem:[%s1389_s5 + $0x78] sm:$0xff]  }
  0x10   : > { %v391_v13 = vld [vmem:[%s382_s28] sm:$0xff]  ;;  %v392_v14 = vld [vmem:[%s382_s28 + $0x8] sm:$0xff]  ;;  %v1119_v48 = vld [vmem:[%s1389_s5 + $0x38] sm:$0xff]   ;;  %1038 = vmatprep.subr.bf16.mxu1 %v1118_v47  ;;  %vm1160_vm1 = vmmov 0  }
  0x11   : > { %489 = vmatpush1.bf16.msra.mxu0 %v1105_v4  ;;  %v405_v15 = vpack.c.bf16 %v392_v14, %v391_v13  ;;  %v1273_v18 = vsub.s32 0, %v409_v17  ;;  %v1275_v19 = vsub.s32 1, %v409_v17  ;;  %v406_v20 = vld [vmem:[%s1386_s2] sm:$0x3]  ;;  %1039 = vmatpush3.bf16.msra.mxu1 %v1119_v48  ;;  %v1120_v49 = vld [vmem:[%s1389_s5 + $0x70] sm:$0xff]   ;;  %v1122_v51 = vld [vmem:[%s1389_s5 + $0x68] sm:$0xff]  }
  0x12   : > { %490 = vmatprep.subr.bf16.mxu0 %v1106_v5  ;;  %v1121_v50 = vld [vmem:[%s1389_s5 + $0x30] sm:$0xff]   ;;  %1040 = vmatprep.subr.bf16.mxu1 %v1120_v49  ;;  %v1123_v52 = vld [vmem:[%s1389_s5 + $0x28] sm:$0xff]   ;;  %v1124_v53 = vld [vmem:[%s1389_s5 + $0x60] sm:$0xff]   ;;  %v1159_v49 = vmov 0.0  }
  0x13   : > { %v411_v21 = vrot.slane %v406_v20, %v1273_v18  ;;  %v415_v22 = vrot.slane %v406_v20, %v1275_v19  ;;  %v1125_v54 = vld [vmem:[%s1389_s5 + $0x20] sm:$0xff]   ;;  %v1126_v55 = vld [vmem:[%s1389_s5 + $0x58] sm:$0xff]   ;;  %v1128_v57 = vld [vmem:[%s1389_s5 + $0x50] sm:$0xff]  }
  0x14   : > { %v1127_v56 = vld [vmem:[%s1389_s5 + $0x18] sm:$0xff]   ;;  %v1129_v58 = vld [vmem:[%s1389_s5 + $0x10] sm:$0xff]   ;;  %v1130_v59 = vld [vmem:[%s1389_s5 + $0x48] sm:$0xff]  }
  0x15   : > { %491 = vmatpush1.bf16.msra.mxu0 %v1108_v6  ;;  %1041 = vmatpush3.bf16.msra.mxu1 %v1121_v50  ;;  %v1131_v60 = vld [vmem:[%s1389_s5 + $0x8] sm:$0xff]   ;;  %v1132_v61 = vld [vmem:[%s1389_s5 + $0x40] sm:$0xff]   ;;  %v1134_v48 = vld [vmem:[%s1393_s9 + $0x38] sm:$0xff]  }
  0x16   : > { %492 = vmatprep.subr.bf16.mxu0 %v1109_v7  ;;  %1042 = vmatprep.subr.bf16.mxu1 %v1122_v51  ;;  %v1133_v62 = vld [vmem:[%s1389_s5] sm:$0xff]   ;;  %v1135_v50 = vld [vmem:[%s1393_s9 + $0x30] sm:$0xff]   ;;  %v1136_v51 = vld [vmem:[%s1393_s9 + $0x28] sm:$0xff]  }
  0x17   : > { %v558_v5 = vld [vmem:[%s1387_s3] sm:$0x3] }
  0x18   : > { %v563_v6 = vrot.slane %v558_v5, %v1273_v18  ;;  %v567_v7 = vrot.slane %v558_v5, %v1275_v19 }
  0x19   : > { %493 = vmatpush1.bf16.msra.mxu0 %v1111_v8  ;;  %1043 = vmatpush3.bf16.msra.mxu1 %v1123_v52  ;;  %v1137_v52 = vld [vmem:[%s1393_s9 + $0x20] sm:$0xff]  }
  0x1a   : > { %494 = vmatprep.subr.bf16.mxu0 %v1112_v9  ;;  %1044 = vmatprep.subr.bf16.mxu1 %v1124_v53  ;;  %v574_v9 = vld [vmem:[%s1388_s4] sm:$0x3]  ;;  %v1138_v53 = vld [vmem:[%s1393_s9 + $0x18] sm:$0xff]  }
  0x1b   : > { %v579_v13 = vrot.slane %v574_v9, %v1273_v18  ;;  %v583_v14 = vrot.slane %v574_v9, %v1275_v19 }
  0x1d   : > { %495 = vmatpush1.bf16.msra.mxu0 %v1114_v10  ;;  %1045 = vmatpush3.bf16.msra.mxu1 %v1125_v54  ;;  %v1139_v54 = vld [vmem:[%s1393_s9 + $0x10] sm:$0xff]  }
  0x1e   : > { %496 = vmatprep.subr.bf16.mxu0 %v1115_v11  ;;  %1046 = vmatprep.subr.bf16.mxu1 %v1126_v55  ;;  %v1140_v55 = vld [vmem:[%s1393_s9 + $0x8] sm:$0xff]  }
  0x21   : > { %497 = vmatpush1.bf16.msra.mxu0 %v1117_v12  ;;  %1047 = vmatpush3.bf16.msra.mxu1 %v1127_v56  ;;  %v1141_v56 = vld [vmem:[%s1393_s9] sm:$0xff]  }
  0x22   : > { %1048 = vmatprep.subr.bf16.mxu1 %v1128_v57  ;;  %1069 = vmatprep.subr.bf16.mxu0 %v1159_v49 }
  0x24   : > { %1007 = vmatmul.mubr.msk.bf16.vlgmr.msra.gmra.mxu0 %vm478_vm0, %v405_v15 }
  0x25   : > { %1049 = vmatpush3.bf16.msra.mxu1 %v1129_v58  ;;  %1070 = vmatpush3.bf16.msra.mxu0 %v1134_v48 }
  0x26   : > { %1050 = vmatprep.subr.bf16.mxu1 %v1130_v59  ;;  %1071 = vmatprep.subr.bf16.mxu0 %v1159_v49 }
  0x27   : > { %1085 = vmatprep.mubr.msk.bf16.mxu0 %vm1160_vm1, %v1159_v49 }
  0x29   : > { %1051 = vmatpush3.bf16.msra.mxu1 %v1131_v60  ;;  %1072 = vmatpush3.bf16.msra.mxu0 %v1135_v50 }
  0x2a   : > { %1052 = vmatprep.subr.bf16.mxu1 %v1132_v61  ;;  %1073 = vmatprep.subr.bf16.mxu0 %v1159_v49 }
  0x2d   : > { %1053 = vmatpush3.bf16.msra.mxu1 %v1133_v62  ;;  %1074 = vmatpush3.bf16.msra.mxu0 %v1136_v51 }
  0x2e   : > { %1075 = vmatprep.subr.bf16.mxu0 %v1159_v49 }
  0x31   : > { %1076 = vmatpush3.bf16.msra.mxu0 %v1137_v52 }
  0x32   : > { %1077 = vmatprep.subr.bf16.mxu0 %v1159_v49 }
  0x35   : > { %1078 = vmatpush3.bf16.msra.mxu0 %v1138_v53 }
  0x36   : > { %1079 = vmatprep.subr.bf16.mxu0 %v1159_v49 }
  0x39   : > { %1080 = vmatpush3.bf16.msra.mxu0 %v1139_v54 }
  0x3a   : > { %1081 = vmatprep.subr.bf16.mxu0 %v1159_v49 }
  0x3d   : > { %1082 = vmatpush3.bf16.msra.mxu0 %v1140_v55 }
  0x3e   : > { %1083 = vmatprep.subr.bf16.mxu0 %v1159_v49 }
  0x41   : > { %1084 = vmatpush3.bf16.msra.mxu0 %v1141_v56 }
  0xe4   : > { %v516_v23 = vpop.f32.mrf.mxu0 }
  0xe5   : > { %v517_v25 = vadd.f32 %v516_v23, %v411_v21 }
  0xe6   : > { %v518_v24 = vpop.f32.mrf.mxu0 }
  0xe7   : > { %v519_v26 = vadd.f32 %v518_v24, %v415_v22 }
  0xe8   : > { %v520_v27 = vpop.f32.mrf.mxu0 }
  0xe9   : > { %v525_v28 = vadd.f32 %v519_v26, %v517_v25  ;;  %v521_v30 = vadd.f32 %v520_v27, %v411_v21 }
  0xea   : > { %v522_v29 = vpop.f32.mrf.mxu0 }
  0xeb   : > { %v523_v31 = vadd.f32 %v522_v29, %v415_v22  ;;  %526 = vadd.xlane.f32.xlu0 %v525_v28 }
  0xed   : > { %v528_v32 = vadd.f32 %v523_v31, %v521_v30 }
  0xef   : > { %529 = vadd.xlane.f32.xlu0 %v528_v32 }
 0x174   : > { %v527_v33 = vpop.xlane.xlu0 %526 }
 0x175   : > { %v532_v34 = vmul.f32 0.00390625, %v527_v33  ;;  %v1008_v33 = vld [vmem:[%s1390_s6] ss:$0 sm:$0xff] }
 0x177   : > { %v534_v35 = vsub.f32 %v517_v25, %v532_v34  ;;  %v535_v36 = vsub.f32 %v519_v26, %v532_v34 }
 0x178   : > { %v530_v37 = vpop.xlane.xlu0 %529 }
 0x179   : > { %v533_v38 = vmul.f32 0.00390625, %v530_v37  ;;  %v538_v39 = vmul.f32 %v534_v35, %v534_v35  ;;  %v539_v40 = vmul.f32 %v535_v36, %v535_v36 }
 0x17b   : > { %v536_v41 = vsub.f32 %v521_v30, %v533_v38  ;;  %v537_v42 = vsub.f32 %v523_v31, %v533_v38  ;;  %v542_v43 = vadd.f32 %v539_v40, %v538_v39 }
 0x17d   : > { %543 = vadd.xlane.f32.xlu1 %v542_v43  ;;  %v540_v44 = vmul.f32 %v536_v41, %v536_v41  ;;  %v541_v45 = vmul.f32 %v537_v42, %v537_v42 }
 0x17f   : > { %v545_v46 = vadd.f32 %v541_v45, %v540_v44 }
 0x181   : > { %546 = vadd.xlane.f32.xlu1 %v545_v46 }
 0x206   : > { %v544_v63 = vpop.xlane.xlu1 %543 }
 0x207   : > { %v548_v0 = vmul.f32 0.00390625, %v544_v63 }
 0x209   : > { %v550_v1 = vadd.f32 1e-05, %v548_v0  ;;  %v1025_v0 = vld [vmem:[%s1391_s7] ss:$0 sm:$0xff] }
 0x20a   : > { %v547_v2 = vpop.xlane.xlu1 %546 }
 0x20b   : > { %1142 = vrsqrt.f32 %v550_v1  ;;  %v549_v3 = vmul.f32 0.00390625, %v547_v2 }
 0x20d   : > { %v551_v4 = vadd.f32 1e-05, %v549_v3 }
 0x20f   : > { %1144 = vrsqrt.f32 %v551_v4  ;;  %v1026_v4 = vld [vmem:[%s1392_s8] ss:$0 sm:$0xff] }
 0x218   : > { %v1143_v8 = vpop.eup %1142 }
 0x219   : > { %v555_v10 = vmul.f32 %v1143_v8, %v535_v36  ;;  %v554_v11 = vmul.f32 %v1143_v8, %v534_v35 }
 0x21b   : > { %v571_v12 = vmul.f32 %v567_v7, %v555_v10  ;;  %v570_v15 = vmul.f32 %v563_v6, %v554_v11 }
 0x21c   : > { %v1145_v16 = vpop.eup %1144 }
 0x21d   : > { %v557_v17 = vmul.f32 %v1145_v16, %v537_v42  ;;  %v556_v20 = vmul.f32 %v1145_v16, %v536_v41  ;;  %v587_v22 = vadd.f32 %v583_v14, %v571_v12  ;;  %v586_v24 = vadd.f32 %v579_v13, %v570_v15  ;;  %v1027_v12 = vld [vmem:[%s1394_s10] ss:$0 sm:$0xff] }
 0x21f   : > { %v573_v21 = vmul.f32 %v567_v7, %v557_v17  ;;  %v572_v23 = vmul.f32 %v563_v6, %v556_v20  ;;  %v591_v27 = vmax.f32 %v587_v22, 0.0  ;;  %v590_v29 = vmax.f32 %v586_v24, 0.0 }
 0x221   : > { %v589_v25 = vadd.f32 %v583_v14, %v573_v21  ;;  %v588_v26 = vadd.f32 %v579_v13, %v572_v23 }
 0x223   : > { %v593_v28 = vmax.f32 %v589_v25, 0.0  ;;  %v592_v30 = vmax.f32 %v588_v26, 0.0 }
 0x225   : > { %v627_v31 = vpack.c.bf16 %v593_v28, %v591_v27  ;;  %v626_v32 = vpack.c.bf16 %v592_v30, %v590_v29 }
 0x227   : > { %763 = vmatprep.mubr.bf16.mxu1 %v627_v31 }
 0x228   : > { %764 = vmatmul.mubr.bf16.vlgmr.msra.gmra.mxu1 %v626_v32 }
 0x2e8   : > { %v1054_v18 = vpop.f32.mrf.mxu1 }
 0x2ea   : > { %v1055_v19 = vpop.f32.mrf.mxu1 }
 0x2eb   : > { %v1056_v34 = vadd.f32 %v1055_v19, %v1054_v18 }
 0x2ec   : > { %v1057_v35 = vpop.f32.mrf.mxu1 }
 0x2ed   : > { %v766_v36 = vadd.f32 %v1056_v34, %v1008_v33 }
 0x2ee   : > { %v1058_v37 = vpop.f32.mrf.mxu1 }
 0x2ef   : > { %v1059_v38 = vadd.f32 %v1058_v37, %v1057_v35  ;;  %772 = vadd.xlane.f32.xlu0 %v766_v36 }
 0x2f1   : > { %v769_v39 = vadd.f32 %v1059_v38, %v1008_v33 }
 0x2f3   : > { %774 = vadd.xlane.f32.xlu1 %v769_v39 }
 0x378   : > { %v773_v40 = vpop.xlane.xlu0 %772 }
 0x379   : > { %v777_v41 = vmul.f32 0.0078125, %v773_v40 }
 0x37b   : > { %v779_v42 = vsub.f32 %v766_v36, %v777_v41 }
 0x37c   : > { %v775_v43 = vpop.xlane.xlu1 %774 }
 0x37d   : > { %v778_v44 = vmul.f32 0.0078125, %v775_v43  ;;  %v781_v45 = vmul.f32 %v779_v42, %v779_v42 }
 0x37f   : > { %v780_v46 = vsub.f32 %v769_v39, %v778_v44  ;;  %783 = vadd.xlane.f32.xlu0 %v781_v45 }
 0x381   : > { %v782_v47 = vmul.f32 %v780_v46, %v780_v46 }
 0x383   : > { %785 = vadd.xlane.f32.xlu1 %v782_v47 }
 0x408   : > { %v784_v57 = vpop.xlane.xlu0 %783 }
 0x409   : > { %v787_v58 = vmul.f32 0.0078125, %v784_v57 }
 0x40b   : > { %v789_v59 = vadd.f32 1e-05, %v787_v58 }
 0x40c   : > { %v786_v60 = vpop.xlane.xlu1 %785 }
 0x40d   : > { %1146 = vrsqrt.f32 %v789_v59  ;;  %v788_v61 = vmul.f32 0.0078125, %v786_v60 }
 0x40f   : > { %v790_v62 = vadd.f32 1e-05, %v788_v61 }
 0x411   : > { %1148 = vrsqrt.f32 %v790_v62 }
 0x41a   : > { %v1147_v63 = vpop.eup %1146 }
 0x41b   : > { %v793_v1 = vmul.f32 %v1147_v63, %v779_v42 }
 0x41d   : > { %v802_v2 = vmul.f32 %v1025_v0, %v793_v1 }
 0x41e   : > { %v1149_v3 = vpop.eup %1148 }
 0x41f   : > { %v794_v5 = vmul.f32 %v1149_v3, %v780_v46  ;;  %v811_v7 = vadd.f32 %v1026_v4, %v802_v2 }
 0x421   : > { %v803_v6 = vmul.f32 %v1025_v0, %v794_v5  ;;  %v813_v9 = vmax.f32 %v811_v7, 0.0 }
 0x423   : > { %v812_v8 = vadd.f32 %v1026_v4, %v803_v6 }
 0x425   : > { %v814_v10 = vmax.f32 %v812_v8, 0.0 }
 0x427   : > { %v831_v11 = vpack.c.bf16 %v814_v10, %v813_v9 }
 0x429   : > { %1086 = vmatmul.mubr.bf16.vlgmr.msra.gmra.mxu0 %v831_v11 }
 0x4e9   : > { %v921_v13 = vpop.f32.mrf.mxu0 }
 0x4ea   : > { %v922_v14 = vadd.f32 %v1027_v12, %v921_v13 }
 0x4eb   : > { %v1087_v15 = vpop.f32.mrf.mxu0 }
 0x4ec   : > { %928 = vst [vmem:[%s388_s12] sm:$0xff] %v922_v14 }
 0x4ed   : > { %v924_v16 = vpop.f32.mrf.mxu0 }
 0x4ee   : > { %v925_v17 = vadd.f32 %v1027_v12, %v924_v16 }
 0x4ef   : > { %v1088_v20 = vpop.f32.mrf.mxu0 }
 0x4f0   : > { %929 = vst [vmem:[%s388_s12 + $0x8] sm:$0xff] %v925_v17 }
 0x4f1 PF: > { %s21_s17 = sadd.s32 1, %s1156_s17  }
 0x4f2   : > { %p18_p4 = scmp.ge.s32.totalorder %s21_s17, 4  }
 0x4f4   :  { %20 = sbr.rel (!%p18_p4) target bundleno = 1 (0x1), region = 94 }

// kernel: transformer_backbone_fwd.20
= control target key start
LH: loop header
LB: loop body
LE: loop exit
PB: predicated region body
PF: predicated region fallthrough
CT: control target
= control target key end

     0   :  { %v108_v0 = vmov 0.0   ;;  %vm109_vm0 = vmmov 0   ;;  %vm40_vm1 = vcmask 261120   ;;  %s145_s1 = inlined_call_operand.vmem [shape: bf16[32,32], index: 1, kind: input, shape index: {}]   ;;  %s146_s0 = inlined_call_operand.vmem [shape: f32[8,32], index: 0, kind: input, shape index: {}]   ;;  %s147_s2 = inlined_call_operand.vmem [shape: f32[1,32], index: 2, kind: input, shape index: {}]   ;;  %s148_s3 = inlined_call_operand.vmem [shape: f32[8,32], index: 3, kind: output, shape index: {}]  }
   0x1   :  { %96 = vmatprep.subr.bf16.mxu0 %v108_v0  ;;  %v106_v1 = vld [vmem:[%s145_s1 + $0x8] sm:$0xff]   ;;  %100 = vmatprep.mubr.msk.bf16.mxu0 %vm109_vm0, %v108_v0  ;;  %v107_v2 = vld [vmem:[%s145_s1] sm:$0xff]  }
   0x2   :  { %97 = vmatpush3.bf16.msra.mxu0 %v106_v1  ;;  %v15_v3 = vld [vmem:[%s146_s0] sm:$0xff] }
   0x3   :  { %98 = vmatprep.subr.bf16.mxu0 %v108_v0  ;;  %v20_v4 = vpack.c.bf16 %v15_v3, %v15_v3  ;;  %v89_v5 = vld [vmem:[%s147_s2] ss:$0 sm:$0xff] }
   0x6   :  { %99 = vmatpush3.bf16.msra.mxu0 %v107_v2 }
   0x9   :  { %101 = vmatmul.mubr.msk.bf16.vlgmr.msra.gmra.mxu0 %vm40_vm1, %v20_v4 }
  0xc9   :  { %v78_v6 = vpop.f32.mrf.mxu0 }
  0xca   :  { %v79_v7 = vadd.f32 %v89_v5, %v78_v6 }
  0xcb   :  { %v102_v8 = vpop.f32.mrf.mxu0 }
  0xcc   :  { %84 = vst.msk [vmem:[%s148_s3] sm:$0xff] %vm40_vm1, %v79_v7 }
  0xcd   :  { %v81_v9 = vpop.f32.mrf.mxu0 }
  0xcf   :  { %v103_v10 = vpop.f32.mrf.mxu0 }

// kernel: transformer_backbone_fwd.28
= control target key start
LH: loop header
LB: loop body
LE: loop exit
PB: predicated region body
PF: predicated region fallthrough
CT: control target
= control target key end

     0   :  { %s628_s21 = smov 0   ;;  %s686_s0 = inlined_call_operand.vmem [shape: f32[32,128], index: 0, kind: input, shape index: {}]   ;;  %s687_s1 = inlined_call_operand.vmem [shape: bf16[128,128], index: 1, kind: input, shape index: {}]   ;;  %s688_s2 = inlined_call_operand.vmem [shape: f32[1,128], index: 2, kind: input, shape index: {}]   ;;  %s689_s3 = inlined_call_operand.vmem [shape: f32[1,128], index: 3, kind: input, shape index: {}]   ;;  %s690_s4 = inlined_call_operand.vmem [shape: f32[1,128], index: 4, kind: input, shape index: {}]   ;;  %s691_s5 = inlined_call_operand.vmem [shape: f32[32,128], index: 5, kind: input, shape index: {}]   ;;  %s692_s6 = inlined_call_operand.vmem [shape: f32[32,128], index: 6, kind: output, shape index: {}]  }
   0x1 LB: > { %s508_s22 = sadd.s32 4294967295, %s589_s21   ;;  %p512_p0 = scmp.ge.s32.totalorder %s589_s21, 1  ;;  %s589_s21 = sphi %s628_s21, %s16_s21  }
   0x2   : > { %p224_p1 = scmp.lt.s32.totalorder %s589_s21, 3 }
   0x4   : > { %p225_p2 = pnand %p512_p0, %p224_p1 }
   0x5   : > { %s513_s29 = sshll.u32 (!%p225_p2), %s508_s22, 1 }
   0x6   : > { %228 = sbr.rel (%p225_p2) target bundleno = 552 (0x228), region = 44  ;;  %p260_p3 = scmp.lt.s32.totalorder (!%p225_p2), %s513_s29, 3 }
   0xb   : > { %v571_v0 = vld [vmem:[%s687_s1 + $0x38] sm:$0xff]   ;;  %v591_v1 = vmov 0.0   ;;  %v572_v2 = vld [vmem:[%s687_s1 + $0x30] sm:$0xff]   ;;  %vm592_vm0 = vmmov 0   ;;  %v573_v3 = vld [vmem:[%s687_s1 + $0x28] sm:$0xff]   ;;  %s694_s29 = smov (!%p260_p3, %s513_s29), 3 }
   0xc   : > { %541 = vmatprep.subr.bf16.mxu0 %v591_v1  ;;  %557 = vmatprep.mubr.msk.bf16.mxu0 %vm592_vm0, %v591_v1  ;;  %v574_v4 = vld [vmem:[%s687_s1 + $0x20] sm:$0xff]   ;;  %v575_v5 = vld [vmem:[%s687_s1 + $0x18] sm:$0xff]   ;;  %v576_v6 = vld [vmem:[%s687_s1 + $0x10] sm:$0xff]   ;;  %s654_s12 = sshll.u32 %s694_s29, 3 }
   0xd   : > { %542 = vmatpush3.bf16.msra.mxu0 %v571_v0  ;;  %v577_v7 = vld [vmem:[%s687_s1 + $0x8] sm:$0xff]   ;;  %s263_s17 = scalar_lea.vmem %s686_s0, %s654_s12  ;;  %v578_v8 = vld [vmem:[%s687_s1] sm:$0xff]   ;;  %s269_s27 = scalar_lea.vmem %s691_s5, %s654_s12 }
   0xe   : > { %543 = vmatprep.subr.bf16.mxu0 %v591_v1  ;;  %v278_v9 = vld [vmem:[%s263_s17] sm:$0xff]  ;;  %v279_v10 = vld [vmem:[%s263_s17 + $0x8] sm:$0xff]  ;;  %s275_s8 = scalar_lea.vmem %s692_s6, %s654_s12 }
   0xf   : > { %v296_v11 = vpack.c.bf16 %v279_v10, %v278_v9  ;;  %v519_v12 = vld [vmem:[%s688_s2] ss:$0 sm:$0xff]  ;;  %v435_v44 = vld [vmem:[%s269_s27 + $0x8] sm:$0xff] }
  0x10   : > { %v528_v34 = vld [vmem:[%s689_s3] ss:$0 sm:$0xff] }
  0x11   : > { %544 = vmatpush3.bf16.msra.mxu0 %v572_v2  ;;  %v529_v36 = vld [vmem:[%s690_s4] ss:$0 sm:$0xff] }
  0x12   : > { %545 = vmatprep.subr.bf16.mxu0 %v591_v1  ;;  %v434_v39 = vld [vmem:[%s269_s27] sm:$0xff] }
  0x15   : > { %546 = vmatpush3.bf16.msra.mxu0 %v573_v3 }
  0x16   : > { %547 = vmatprep.subr.bf16.mxu0 %v591_v1 }
  0x19   : > { %548 = vmatpush3.bf16.msra.mxu0 %v574_v4 }
  0x1a   : > { %549 = vmatprep.subr.bf16.mxu0 %v591_v1 }
  0x1d   : > { %550 = vmatpush3.bf16.msra.mxu0 %v575_v5 }
  0x1e   : > { %551 = vmatprep.subr.bf16.mxu0 %v591_v1 }
  0x21   : > { %552 = vmatpush3.bf16.msra.mxu0 %v576_v6 }
  0x22   : > { %553 = vmatprep.subr.bf16.mxu0 %v591_v1 }
  0x25   : > { %554 = vmatpush3.bf16.msra.mxu0 %v577_v7 }
  0x26   : > { %555 = vmatprep.subr.bf16.mxu0 %v591_v1 }
  0x29   : > { %556 = vmatpush3.bf16.msra.mxu0 %v578_v8 }
  0x2c   : > { %558 = vmatmul.mubr.bf16.vlgmr.msra.gmra.mxu0 %v296_v11 }
  0xec   : > { %v386_v13 = vpop.f32.mrf.mxu0 }
  0xed   : > { %v387_v14 = vadd.f32 %v519_v12, %v386_v13 }
  0xee   : > { %v559_v15 = vpop.f32.mrf.mxu0 }
  0xef   : > { %393 = vadd.xlane.f32.xlu0 %v387_v14 }
  0xf0   : > { %v389_v16 = vpop.f32.mrf.mxu0 }
  0xf1   : > { %v390_v17 = vadd.f32 %v519_v12, %v389_v16 }
  0xf2   : > { %v560_v18 = vpop.f32.mrf.mxu0 }
  0xf3   : > { %395 = vadd.xlane.f32.xlu0 %v390_v17 }
 0x178   : > { %v394_v19 = vpop.xlane.xlu0 %393 }
 0x179   : > { %v398_v20 = vmul.f32 0.0078125, %v394_v19 }
 0x17b   : > { %v400_v21 = vsub.f32 %v387_v14, %v398_v20 }
 0x17c   : > { %v396_v22 = vpop.xlane.xlu0 %395 }
 0x17d   : > { %v399_v23 = vmul.f32 0.0078125, %v396_v22  ;;  %v402_v24 = vmul.f32 %v400_v21, %v400_v21 }
 0x17f   : > { %v401_v25 = vsub.f32 %v390_v17, %v399_v23  ;;  %404 = vadd.xlane.f32.xlu1 %v402_v24 }
 0x181   : > { %v403_v26 = vmul.f32 %v401_v25, %v401_v25 }
 0x183   : > { %406 = vadd.xlane.f32.xlu1 %v403_v26 }
 0x208   : > { %v405_v27 = vpop.xlane.xlu1 %404 }
 0x209   : > { %v408_v28 = vmul.f32 0.0078125, %v405_v27 }
 0x20b   : > { %v410_v29 = vadd.f32 1e-05, %v408_v28 }
 0x20c   : > { %v407_v30 = vpop.xlane.xlu1 %406 }
 0x20d   : > { %579 = vrsqrt.f32 %v410_v29  ;;  %v409_v31 = vmul.f32 0.0078125, %v407_v30 }
 0x20f   : > { %v411_v32 = vadd.f32 1e-05, %v409_v31 }
 0x211   : > { %581 = vrsqrt.f32 %v411_v32 }
 0x21a   : > { %v580_v33 = vpop.eup %579 }
 0x21b   : > { %v414_v35 = vmul.f32 %v580_v33, %v400_v21 }
 0x21d   : > { %v423_v37 = vmul.f32 %v528_v34, %v414_v35 }
 0x21e   : > { %v582_v38 = vpop.eup %581 }
 0x21f   : > { %v432_v40 = vadd.f32 %v529_v36, %v423_v37  ;;  %v415_v41 = vmul.f32 %v582_v38, %v401_v25 }
 0x221   : > { %v436_v42 = vadd.f32 %v434_v39, %v432_v40  ;;  %v424_v43 = vmul.f32 %v528_v34, %v415_v41 }
 0x223   : > { %438 = vst [vmem:[%s275_s8] sm:$0xff] %v436_v42  ;;  %v433_v45 = vadd.f32 %v529_v36, %v424_v43 }
 0x225   : > { %v437_v46 = vadd.f32 %v435_v44, %v433_v45 }
 0x227   : > { %439 = vst [vmem:[%s275_s8 + $0x8] sm:$0xff] %v437_v46 }
 0x228 PF: > { %s16_s21 = sadd.s32 1, %s589_s21  }
 0x229   : > { %p13_p4 = scmp.ge.s32.totalorder %s16_s21, 4  }
 0x22b   :  { %15 = sbr.rel (!%p13_p4) target bundleno = 1 (0x1), region = 77 }

// kernel: transformer_backbone_fwd.25
= control target key start
LH: loop header
LB: loop body
LE: loop exit
PB: predicated region body
PF: predicated region fallthrough
CT: control target
= control target key end

     0   :  { %v273_v0 = vmov 0.0   ;;  %vm274_vm0 = vmmov 0   ;;  %vm46_vm1 = vcmask 261120   ;;  %s347_s1 = inlined_call_operand.vmem [shape: bf16[32,128], index: 1, kind: input, shape index: {}]   ;;  %s348_s0 = inlined_call_operand.vmem [shape: f32[8,32], index: 0, kind: input, shape index: {}]   ;;  %s349_s3 = inlined_call_operand.vmem [shape: bf16[128,128], index: 3, kind: input, shape index: {}]   ;;  %s350_s2 = inlined_call_operand.vmem [shape: f32[1,128], index: 2, kind: input, shape index: {}]   ;;  %s351_s4 = inlined_call_operand.vmem [shape: f32[1,128], index: 4, kind: input, shape index: {}]   ;;  %s352_s5 = inlined_call_operand.vmem [shape: f32[8,128], index: 5, kind: output, shape index: {}]  }
   0x1   :  { %233 = vmatprep.subr.bf16.mxu0 %v273_v0  ;;  %v263_v1 = vld [vmem:[%s347_s1 + $0x8] sm:$0xff]   ;;  %237 = vmatprep.mubr.msk.bf16.mxu0 %vm274_vm0, %v273_v0  ;;  %v264_v2 = vld [vmem:[%s347_s1] sm:$0xff]   ;;  %v265_v4 = vld [vmem:[%s349_s3 + $0x38] sm:$0xff]  }
   0x2   :  { %241 = vmatprep.subr.bf16.mxu1 %v273_v0  ;;  %257 = vmatprep.mubr.msk.bf16.mxu1 %vm274_vm0, %v273_v0  ;;  %v21_v3 = vld [vmem:[%s348_s0] sm:$0xff]  ;;  %v266_v6 = vld [vmem:[%s349_s3 + $0x30] sm:$0xff]   ;;  %v267_v7 = vld [vmem:[%s349_s3 + $0x28] sm:$0xff]  }
   0x3   :  { %234 = vmatpush3.bf16.msra.mxu0 %v263_v1  ;;  %v26_v5 = vpack.c.bf16 %v21_v3, %v21_v3  ;;  %242 = vmatpush3.bf16.msra.mxu1 %v265_v4  ;;  %v268_v8 = vld [vmem:[%s349_s3 + $0x20] sm:$0xff]   ;;  %v269_v9 = vld [vmem:[%s349_s3 + $0x18] sm:$0xff]   ;;  %v270_v10 = vld [vmem:[%s349_s3 + $0x10] sm:$0xff]  }
   0x4   :  { %235 = vmatprep.subr.bf16.mxu0 %v273_v0  ;;  %243 = vmatprep.subr.bf16.mxu1 %v273_v0  ;;  %v271_v11 = vld [vmem:[%s349_s3 + $0x8] sm:$0xff]   ;;  %v272_v12 = vld [vmem:[%s349_s3] sm:$0xff]  }
   0x5   :  { %v208_v13 = vld [vmem:[%s350_s2] ss:$0 sm:$0xff] }
   0x6   :  { %v212_v21 = vld [vmem:[%s351_s4] ss:$0 sm:$0xff] }
   0x7   :  { %236 = vmatpush3.bf16.msra.mxu0 %v264_v2  ;;  %244 = vmatpush3.bf16.msra.mxu1 %v266_v6 }
   0x8   :  { %245 = vmatprep.subr.bf16.mxu1 %v273_v0 }
   0xa   :  { %238 = vmatmul.mubr.msk.bf16.vlgmr.msra.gmra.mxu0 %vm46_vm1, %v26_v5 }
   0xb   :  { %246 = vmatpush3.bf16.msra.mxu1 %v267_v7 }
   0xc   :  { %247 = vmatprep.subr.bf16.mxu1 %v273_v0 }
   0xf   :  { %248 = vmatpush3.bf16.msra.mxu1 %v268_v8 }
  0x10   :  { %249 = vmatprep.subr.bf16.mxu1 %v273_v0 }
  0x13   :  { %250 = vmatpush3.bf16.msra.mxu1 %v269_v9 }
  0x14   :  { %251 = vmatprep.subr.bf16.mxu1 %v273_v0 }
  0x17   :  { %252 = vmatpush3.bf16.msra.mxu1 %v270_v10 }
  0x18   :  { %253 = vmatprep.subr.bf16.mxu1 %v273_v0 }
  0x1b   :  { %254 = vmatpush3.bf16.msra.mxu1 %v271_v11 }
  0x1c   :  { %255 = vmatprep.subr.bf16.mxu1 %v273_v0 }
  0x1f   :  { %256 = vmatpush3.bf16.msra.mxu1 %v272_v12 }
  0xca   :  { %v84_v14 = vpop.f32.mrf.mxu0 }
  0xcb   :  { %v85_v15 = vadd.f32 %v208_v13, %v84_v14 }
  0xcc   :  { %v239_v16 = vpop.f32.mrf.mxu0 }
  0xcd   :  { %v90_v17 = vmax.f32 %v85_v15, 0.0 }
  0xce   :  { %v87_v18 = vpop.f32.mrf.mxu0 }
  0xcf   :  { %v107_v19 = vpack.c.bf16 %v90_v17, %v90_v17 }
  0xd0   :  { %v240_v20 = vpop.f32.mrf.mxu0 }
  0xd1   :  { %258 = vmatmul.mubr.bf16.vlgmr.msra.gmra.mxu1 %v107_v19 }
 0x191   :  { %v197_v22 = vpop.f32.mrf.mxu1 }
 0x192   :  { %v198_v23 = vadd.f32 %v212_v21, %v197_v22 }
 0x193   :  { %v259_v24 = vpop.f32.mrf.mxu1 }
 0x194   :  { %203 = vst [vmem:[%s352_s5] sm:$0xff] %v198_v23 }
 0x195   :  { %v200_v25 = vpop.f32.mrf.mxu1 }
 0x197   :  { %v260_v26 = vpop.f32.mrf.mxu1 }

// kernel: transformer_backbone_fwd.24
= control target key start
LH: loop header
LB: loop body
LE: loop exit
PB: predicated region body
PF: predicated region fallthrough
CT: control target
= control target key end

     0   :  { %s2345_s29 = smov 0   ;;  %s2730_s0 = inlined_call_operand.vmem [shape: f32[2,16,128], index: 0, kind: input, shape index: {}]   ;;  %s2731_s1 = inlined_call_operand.vmem [shape: f32[2,1,16], index: 1, kind: input, shape index: {}]   ;;  %s2732_s2 = inlined_call_operand.vmem [shape: bf16[128,384], index: 2, kind: input, shape index: {}]   ;;  %s2733_s3 = inlined_call_operand.vmem [shape: f32[1,384], index: 3, kind: input, shape index: {}]   ;;  %s2734_s4 = inlined_call_operand.vmem [shape: bf16[128,128], index: 4, kind: input, shape index: {}]   ;;  %s2735_s5 = inlined_call_operand.vmem [shape: f32[1,128], index: 5, kind: input, shape index: {}]   ;;  %s2736_s6 = inlined_call_operand.vmem [shape: f32[1,128], index: 6, kind: input, shape index: {}]   ;;  %s2737_s7 = inlined_call_operand.vmem [shape: f32[1,128], index: 7, kind: input, shape index: {}]   ;;  %s2738_s8 = inlined_call_operand.vmem [shape: bf16[128,256], index: 8, kind: input, shape index: {}]   ;;  %s2739_s9 = inlined_call_operand.vmem [shape: f32[1,256], index: 9, kind: input, shape index: {}]   ;;  %s2740_s10 = inlined_call_operand.vmem [shape: bf16[256,128], index: 10, kind: input, shape index: {}]   ;;  %s2741_s11 = inlined_call_operand.vmem [shape: f32[1,128], index: 11, kind: input, shape index: {}]   ;;  %s2742_s12 = inlined_call_operand.vmem [shape: f32[1,128], index: 12, kind: input, shape index: {}]   ;;  %s2743_s13 = inlined_call_operand.vmem [shape: f32[1,128], index: 13, kind: input, shape index: {}]   ;;  %s2744_s14 = inlined_call_operand.vmem [shape: f32[2,16,128], index: 14, kind: output, shape index: {}]  }
   0x1 LB: > { %s1871_s30 = sadd.s32 4294967295, %s2262_s29   ;;  %p1875_p0 = scmp.ge.s32.totalorder %s2262_s29, 1  ;;  %s2262_s29 = sphi %s2345_s29, %s24_s29  }
   0x2   : > { %p420_p1 = scmp.lt.s32.totalorder %s2262_s29, 3 }
   0x4   : > { %p421_p2 = pnand %p1875_p0, %p420_p1 }
   0x5   : > { %p469_p3 = scmp.lt.s32.totalorder (!%p421_p2), %s1871_s30, 1  ;;  %s2267_s18 = smov (!%p421_p2), 96  }
   0x6   : > { %424 = sbr.rel (%p421_p2) target bundleno = 2864 (0xb30), region = 76  ;;  %s2268_s19 = smov (!%p421_p2), 32  }
   0x7   : > { %s2269_s20 = smov (!%p421_p2), 64  }
   0xb   : > { %v2136_v0 = vld [vmem:[%s2732_s2 + $0xac] ss:$12 sps:$4 sm:$0xff]   ;;  %v2138_v1 = vld [vmem:[%s2732_s2 + $0xa8] ss:$12 sps:$4 sm:$0xff]   ;;  %v2264_v2 = vmov 0   ;;  %v2265_v4 = vmov 0.0   ;;  %v520_v29 = vlaneseq }
   0xc   : > { %695 = vmatprep.mubr.bf16.mxu0 %v2264_v2  ;;  %663 = vmatprep.subr.bf16.mxu0 %v2136_v0  ;;  %v2139_v3 = vld [vmem:[%s2732_s2 + $0x94] ss:$12 sps:$4 sm:$0xff]   ;;  %v2141_v5 = vld [vmem:[%s2732_s2 + $0x90] ss:$12 sps:$4 sm:$0xff]   ;;  %v2144_v7 = vld [vmem:[%s2732_s2 + $0x78] ss:$12 sps:$4 sm:$0xff]  }
   0xd   : > { %2019 = vmatprep.subr.bf16.mxu1 %v2265_v4  ;;  %664 = vmatpush1.bf16.msra.mxu0 %v2138_v1  ;;  %v2142_v6 = vld [vmem:[%s2732_s2 + $0x7c] ss:$12 sps:$4 sm:$0xff]   ;;  %v2145_v8 = vld [vmem:[%s2732_s2 + $0x64] ss:$12 sps:$4 sm:$0xff]   ;;  %s2746_s30 = smov (!%p469_p3, %s1871_s30), 1  ;;  %vm2266_vm0 = vmmov 0  }
   0xe   : > { %665 = vmatprep.subr.bf16.mxu0 %v2139_v3  ;;  %v2147_v9 = vld [vmem:[%s2732_s2 + $0x60] ss:$12 sps:$4 sm:$0xff]   ;;  %v2160_v11 = vld [vmem:[%s2732_s2 + $0xb0] ss:$12 sps:$4 sm:$0xff]   ;;  %s1961_s21 = sshll.u32 %s2746_s30, 4  ;;  %2035 = vmatprep.mubr.msk.bf16.mxu1 %vm2266_vm0, %v2265_v4  ;;  %v2456_v30 = vshrl.u32 %v520_v29, 7  ;;  %s476_s17 = scalar_lea.vmem %s2731_s1, %s2746_s30 }
   0xf   : > { %v2148_v10 = vld [vmem:[%s2732_s2 + $0x4c] ss:$12 sps:$4 sm:$0xff]   ;;  %2020 = vmatpush3.bf16.msra.mxu1 %v2160_v11  ;;  %v2150_v13 = vld [vmem:[%s2732_s2 + $0x48] ss:$12 sps:$4 sm:$0xff]   ;;  %v2153_v15 = vld [vmem:[%s2732_s2 + $0x30] ss:$12 sps:$4 sm:$0xff]   ;;  %s473_s15 = scalar_lea.vmem %s2730_s0, %s1961_s21 }
  0x10   : > { %v2161_v12 = vld [vmem:[%s2732_s2 + $0x98] ss:$12 sps:$4 sm:$0xff]   ;;  %2021 = vmatprep.subr.bf16.mxu1 %v2265_v4  ;;  %v2151_v14 = vld [vmem:[%s2732_s2 + $0x34] ss:$12 sps:$4 sm:$0xff]   ;;  %v2154_v16 = vld [vmem:[%s2732_s2 + $0x1c] ss:$12 sps:$4 sm:$0xff]  }
  0x11   : > { %666 = vmatpush1.bf16.msra.mxu0 %v2141_v5  ;;  %v2162_v17 = vld [vmem:[%s2732_s2 + $0x80] ss:$12 sps:$4 sm:$0xff]   ;;  %v2163_v18 = vld [vmem:[%s2732_s2 + $0x68] ss:$12 sps:$4 sm:$0xff]   ;;  %v2156_v19 = vld [vmem:[%s2732_s2 + $0x18] ss:$12 sps:$4 sm:$0xff]  }
  0x12   : > { %667 = vmatprep.subr.bf16.mxu0 %v2142_v6  ;;  %v2157_v20 = vld [vmem:[%s2732_s2 + $0x4] ss:$12 sps:$4 sm:$0xff]   ;;  %v2159_v22 = vld [vmem:[%s2732_s2] ss:$12 sps:$4 sm:$0xff]   ;;  %v2167_v28 = vld [vmem:[%s2732_s2 + $0x8] ss:$12 sps:$4 sm:$0xff]  }
  0x13   : > { %2022 = vmatpush3.bf16.msra.mxu1 %v2161_v12  ;;  %v2164_v21 = vld [vmem:[%s2732_s2 + $0x50] ss:$12 sps:$4 sm:$0xff]   ;;  %v2429_v23 = vld [vmem:[%s473_s15] sm:$0xff]  ;;  %v2431_v24 = vld [vmem:[%s473_s15 + $0x8] sm:$0xff]  ;;  %v526_v31 = vsub.s32 1, %v2456_v30  ;;  %v522_v35 = vsub.s32 0, %v2456_v30 }
  0x14   : > { %2023 = vmatprep.subr.bf16.mxu1 %v2265_v4  ;;  %v2165_v25 = vld [vmem:[%s2732_s2 + $0x38] ss:$12 sps:$4 sm:$0xff]   ;;  %v485_v26 = vpack.c.bf16 %v2431_v24, %v2429_v23  ;;  %v2166_v27 = vld [vmem:[%s2732_s2 + $0x20] ss:$12 sps:$4 sm:$0xff]   ;;  %vm759_vm1 = vcmask 261120   ;;  %v530_v49 = vsub.s32 2, %v2456_v30 }
  0x15   : > { %668 = vmatpush1.bf16.msra.mxu0 %v2144_v7  ;;  %v518_v33 = vld [vmem:[%s2733_s3] sm:$0x7]  ;;  %vm807_vm2 = vcmask 130048   ;;  %vm1267_vm3 = vcmask 523264   ;;  %vm1270_vm4 = vcmask 785408  }
  0x16   : > { %669 = vmatprep.subr.bf16.mxu0 %v2145_v8  ;;  %v527_v36 = vrot.slane %v518_v33, %v526_v31  ;;  %v523_v39 = vrot.slane %v518_v33, %v522_v35  ;;  %v531_v50 = vrot.slane %v518_v33, %v530_v49  ;;  %v2481_v58 = vld [vmem:[%s476_s17] ss:$0 sm:$0xff] }
  0x17   : > { %2024 = vmatpush3.bf16.msra.mxu1 %v2162_v17  ;;  %v1940_v30 = vld [vmem:[%s2741_s11] ss:$0 sm:$0xff] }
  0x18   : > { %2025 = vmatprep.subr.bf16.mxu1 %v2265_v4 }
  0x19   : > { %670 = vmatpush1.bf16.msra.mxu0 %v2147_v9 }
  0x1a   : > { %671 = vmatprep.subr.bf16.mxu0 %v2148_v10 }
  0x1b   : > { %2026 = vmatpush3.bf16.msra.mxu1 %v2163_v18 }
  0x1c   : > { %2027 = vmatprep.subr.bf16.mxu1 %v2265_v4 }
  0x1d   : > { %672 = vmatpush1.bf16.msra.mxu0 %v2150_v13 }
  0x1e   : > { %673 = vmatprep.subr.bf16.mxu0 %v2151_v14 }
  0x1f   : > { %2028 = vmatpush3.bf16.msra.mxu1 %v2164_v21 }
  0x20   : > { %2029 = vmatprep.subr.bf16.mxu1 %v2265_v4 }
  0x21   : > { %674 = vmatpush1.bf16.msra.mxu0 %v2153_v15 }
  0x22   : > { %675 = vmatprep.subr.bf16.mxu0 %v2154_v16 }
  0x23   : > { %2030 = vmatpush3.bf16.msra.mxu1 %v2165_v25 }
  0x24   : > { %2031 = vmatprep.subr.bf16.mxu1 %v2265_v4 }
  0x25   : > { %676 = vmatpush1.bf16.msra.mxu0 %v2156_v19 }
  0x26   : > { %677 = vmatprep.subr.bf16.mxu0 %v2157_v20 }
  0x27   : > { %2032 = vmatpush3.bf16.msra.mxu1 %v2166_v27 }
  0x28   : > { %2033 = vmatprep.subr.bf16.mxu1 %v2265_v4 }
  0x29   : > { %678 = vmatpush1.bf16.msra.mxu0 %v2159_v22 }
  0x2a   : > { %2063 = vmatprep.subr.bf16.mxu0 %v2265_v4 }
  0x2b   : > { %2034 = vmatpush3.bf16.msra.mxu1 %v2167_v28 }
  0x2c   : > { %696 = vmatmul.mubr.bf16.vlgmr.msra.gmra.mxu0 %v485_v26  ;;  %2039 = vmatprep.subr.bf16.mxu1 %v2265_v4 }
  0x2d   : > { %2065 = vmatprep.mubr.msk.bf16.mxu0 %vm2266_vm0, %v2265_v4 }
  0x2e   : > { %2036 = vmatmul.mubr.bf16.vlgmr.msra.gmra.mxu1 %v485_v26 }
  0x2f   : > { %2041 = vmatprep.mubr.msk.bf16.mxu1 %vm2266_vm0, %v2265_v4 }
  0xec   : > { %v697_v32 = vpop.f32.mrf.mxu0 }
  0xed   : > { %v698_v44 = vadd.f32 %v697_v32, %v523_v39 }
  0xee   : > { %v699_v34 = vpop.f32.mrf.mxu0  ;;  %v740_v51 = vpop.f32.mrf.mxu1 }
  0xef   : > { %v700_v40 = vadd.f32 %v699_v34, %v527_v36  ;;  %v748_v47 = vmul.f32 0.17677669, %v698_v44  ;;  %v741_v53 = vadd.f32 %v740_v51, %v531_v50 }
  0xf0   : > { %v701_v37 = vpop.f32.mrf.mxu0  ;;  %v2037_v52 = vpop.f32.mrf.mxu1 }
  0xf1   : > { %v702_v42 = vadd.f32 %v701_v37, %v523_v39 }
  0xf2   : > { %v703_v38 = vpop.f32.mrf.mxu0  ;;  %v743_v54 = vpop.f32.mrf.mxu1 }
  0xf3   : > { %v704_v41 = vadd.f32 %v703_v38, %v527_v36  ;;  %v749_v46 = vmul.f32 0.17677669, %v702_v42  ;;  %v744_v55 = vadd.f32 %v743_v54, %v531_v50 }
  0xf4   : > { %v2038_v56 = vpop.f32.mrf.mxu1 }
  0xf5   : > { %v751_v43 = vpack.c.bf16 %v704_v41, %v700_v40  ;;  %v750_v48 = vpack.c.bf16 %v749_v46, %v748_v47  ;;  %v2473_v57 = vpack.c.bf16 %v744_v55, %v741_v53 }
  0xf7   : > { %v764_v45 = vsel %vm759_vm1, %v751_v43, 0 }
  0xf8   : > { %2040 = vmatpush3.bf16.xpose.msra.mxu1 %v764_v45 }
  0xf9   : > { %2045 = vmatprep.subr.bf16.mxu1 %v2265_v4 }
  0xff   : > { %2042 = vmatmul.mubr.msk.bf16.vlgmr.msra.gmra.mxu1 %vm759_vm1, %v750_v48 }
 0x100   : > { %2047 = vmatprep.mubr.msk.bf16.mxu1 %vm2266_vm0, %v2265_v4  ;;  %2046 = vmatpush3.bf16.msra.mxu1 %v2473_v57 }
 0x101   : > { %2051 = vmatprep.subr.bf16.mxu1 %v2265_v4 }
 0x1bf   : > { %v800_v59 = vpop.f32.mrf.mxu1 }
 0x1c0   : > { %v801_v60 = vadd.f32 %v2481_v58, %v800_v59 }
 0x1c1   : > { %v2043_v61 = vpop.f32.mrf.mxu1 }
 0x1c2   : > { %v808_v62 = vsel %vm807_vm2, %v801_v60, -inf }
 0x1c3   : > { %809 = vmax.xlane.f32.xlu0 %v808_v62  ;;  %v803_v63 = vpop.f32.mrf.mxu1 }
 0x1c4   : > { %v804_v0 = vadd.f32 %v2481_v58, %v803_v63 }
 0x1c5   : > { %v2044_v1 = vpop.f32.mrf.mxu1 }
 0x1c6   : > { %v811_v3 = vsel %vm807_vm2, %v804_v0, -inf }
 0x1c7   : > { %812 = vmax.xlane.f32.xlu0 %v811_v3 }
 0x1dd   : > { %879 = vrot.lane.b32.xlu0 %v751_v43, %s2267_s18 }
 0x1e1   : > { %1122 = vrot.lane.b32.xlu0 %v751_v43, %s2268_s19 }
 0x24c   : > { %v810_v5 = vpop.xlane.xlu0 %809 }
 0x24d   : > { %v814_v6 = vsub.f32 %v801_v60, %v810_v5 }
 0x24f   : > { %v816_v7 = vmul.f32 1.442695, %v814_v6 }
 0x250   : > { %v813_v8 = vpop.xlane.xlu0 %812 }
 0x251   : > { %2216 = vpow2.f32 %v816_v7  ;;  %v815_v9 = vsub.f32 %v804_v0, %v813_v8 }
 0x253   : > { %v818_v10 = vmul.f32 1.442695, %v815_v9 }
 0x254   : > { %v880_v18 = vpop.permute.xlu0 %879 }
 0x255   : > { %2218 = vpow2.f32 %v818_v10  ;;  %v885_v33 = vsel %vm759_vm1, %v880_v18, 0 }
 0x258   : > { %v1123_v25 = vpop.permute.xlu0 %1122 }
 0x259   : > { %v1128_v29 = vsel %vm759_vm1, %v1123_v25, 0 }
 0x25e   : > { %v2217_v11 = vpop.eup %2216 }
 0x25f   : > { %v820_v12 = vsel %vm807_vm2, %v2217_v11, 0.0 }
 0x260   : > { %821 = vadd.xlane.f32.xlu1 %v820_v12 }
 0x262   : > { %v2219_v13 = vpop.eup %2218 }
 0x263   : > { %v823_v14 = vsel %vm807_vm2, %v2219_v13, 0.0 }
 0x264   : > { %824 = vadd.xlane.f32.xlu1 %v823_v14 }
 0x275   : > { %876 = vrot.lane.b32.xlu1 %v750_v48, %s2267_s18 }
 0x279   : > { %1001 = vrot.lane.b32.xlu1 %v751_v43, %s2269_s20 }
 0x27d   : > { %999 = vrot.lane.b32.xlu1 %v750_v48, %s2269_s20 }
 0x281   : > { %1120 = vrot.lane.b32.xlu1 %v750_v48, %s2268_s19 }
 0x2e9   : > { %v822_v15 = vpop.xlane.xlu1 %821 }
 0x2ea   : > { %2220 = vrcp.f32 %v822_v15 }
 0x2ed   : > { %v825_v16 = vpop.xlane.xlu1 %824 }
 0x2ee   : > { %2222 = vrcp.f32 %v825_v16 }
 0x2f1   : > { %v877_v17 = vpop.permute.xlu1 %876 }
 0x2f5   : > { %v1002_v19 = vpop.permute.xlu1 %1001 }
 0x2f6   : > { %v1007_v20 = vsel %vm759_vm1, %v1002_v19, 0 }
 0x2f7   : > { %2064 = vmatpush3.bf16.xpose.msra.mxu0 %v1007_v20  ;;  %v2221_v21 = vpop.eup %2220 }
 0x2f8   : > { %2075 = vmatprep.subr.bf16.mxu0 %v2265_v4  ;;  %v828_v26 = vmul.f32 %v2221_v21, %v2217_v11 }
 0x2f9   : > { %v1000_v28 = vpop.permute.xlu1 %999 }
 0x2fb   : > { %v2223_v22 = vpop.eup %2222 }
 0x2fc   : > { %v829_v27 = vmul.f32 %v2223_v22, %v2219_v13 }
 0x2fd   : > { %v1121_v34 = vpop.permute.xlu1 %1120 }
 0x2fe   : > { %2066 = vmatmul.mubr.msk.bf16.vlgmr.msra.gmra.mxu0 %vm759_vm1, %v1000_v28  ;;  %v830_v32 = vpack.c.bf16 %v829_v27, %v828_v26 }
 0x2ff   : > { %2076 = vmatpush3.bf16.xpose.msra.mxu0 %v1128_v29  ;;  %2077 = vmatprep.mubr.msk.bf16.mxu0 %vm2266_vm0, %v2265_v4 }
 0x300   : > { %2048 = vmatmul.mubr.msk.bf16.vlgmr.msra.gmra.mxu1 %vm807_vm2, %v830_v32  ;;  %2087 = vmatprep.subr.bf16.mxu0 %v2265_v4 }
 0x301   : > { %2052 = vmatpush3.bf16.xpose.msra.mxu1 %v885_v33  ;;  %2053 = vmatprep.mubr.msk.bf16.mxu1 %vm2266_vm0, %v2265_v4 }
 0x302   : > { %2057 = vmatprep.subr.bf16.mxu1 %v2265_v4 }
 0x306   : > { %2078 = vmatmul.mubr.msk.bf16.vlgmr.msra.gmra.mxu0 %vm759_vm1, %v1121_v34 }
 0x307   : > { %2103 = vmatprep.mubr.msk.bf16.mxu0 %vm2266_vm0, %v2265_v4 }
 0x308   : > { %2054 = vmatmul.mubr.msk.bf16.vlgmr.msra.gmra.mxu1 %vm759_vm1, %v877_v17 }
 0x309   : > { %2059 = vmatprep.mubr.msk.bf16.mxu1 %vm2266_vm0, %v2265_v4 }
 0x3be   : > { %v1043_v36 = vpop.f32.mrf.mxu0 }
 0x3bf   : > { %v1044_v50 = vadd.f32 %v2481_v58, %v1043_v36 }
 0x3c0   : > { %v2513_v37 = vpop.f32.mrf.mxu1  ;;  %v2067_v38 = vpop.f32.mrf.mxu0 }
 0x3c1   : > { %v1050_v60 = vsel %vm807_vm2, %v1044_v50, -inf }
 0x3c2   : > { %v2049_v39 = vpop.f32.mrf.mxu1  ;;  %v1046_v40 = vpop.f32.mrf.mxu0 }
 0x3c3   : > { %v1047_v56 = vadd.f32 %v2481_v58, %v1046_v40 }
 0x3c4   : > { %v2515_v41 = vpop.f32.mrf.mxu1  ;;  %v2068_v42 = vpop.f32.mrf.mxu0 }
 0x3c5   : > { %v1053_v63 = vsel %vm807_vm2, %v1047_v56, -inf }
 0x3c6   : > { %v2050_v43 = vpop.f32.mrf.mxu1  ;;  %v1164_v44 = vpop.f32.mrf.mxu0 }
 0x3c7   : > { %v1165_v62 = vadd.f32 %v2481_v58, %v1164_v44 }
 0x3c8   : > { %v921_v45 = vpop.f32.mrf.mxu1  ;;  %v2079_v46 = vpop.f32.mrf.mxu0 }
 0x3c9   : > { %v922_v47 = vadd.f32 %v2481_v58, %v921_v45  ;;  %v1171_v1 = vsel %vm807_vm2, %v1165_v62, -inf }
 0x3ca   : > { %v2055_v48 = vpop.f32.mrf.mxu1  ;;  %v1167_v49 = vpop.f32.mrf.mxu0 }
 0x3cb   : > { %v928_v51 = vsel %vm807_vm2, %v922_v47, -inf  ;;  %v1168_v59 = vadd.f32 %v2481_v58, %v1167_v49 }
 0x3cc   : > { %v2080_v52 = vpop.f32.mrf.mxu0  ;;  %929 = vmax.xlane.f32.xlu0 %v928_v51  ;;  %v924_v53 = vpop.f32.mrf.mxu1 }
 0x3cd   : > { %v925_v54 = vadd.f32 %v2481_v58, %v924_v53  ;;  %v1174_v0 = vsel %vm807_vm2, %v1168_v59, -inf }
 0x3ce   : > { %v2056_v55 = vpop.f32.mrf.mxu1 }
 0x3cf   : > { %v931_v61 = vsel %vm807_vm2, %v925_v54, -inf }
 0x3d0   : > { %1051 = vmax.xlane.f32.xlu0 %v1050_v60  ;;  %932 = vmax.xlane.f32.xlu1 %v931_v61 }
 0x3d4   : > { %1054 = vmax.xlane.f32.xlu0 %v1053_v63  ;;  %1175 = vmax.xlane.f32.xlu1 %v1174_v0 }
 0x3d8   : > { %1172 = vmax.xlane.f32.xlu0 %v1171_v1  ;;  %v2168_v1 = vld [vmem:[%s2734_s4 + $0x38] sm:$0xff]  }
 0x3d9   : > { %2088 = vmatpush3.bf16.msra.mxu0 %v2168_v1  ;;  %v2182_v1 = vld [vmem:[%s2738_s8 + $0x50] ss:$8 sps:$4 sm:$0xff]  }
 0x3da   : > { %2089 = vmatprep.subr.bf16.mxu0 %v2265_v4 }
 0x455   : > { %v930_v3 = vpop.xlane.xlu0 %929 }
 0x456   : > { %v934_v58 = vsub.f32 %v922_v47, %v930_v3  ;;  %v2169_v3 = vld [vmem:[%s2734_s4 + $0x30] sm:$0xff]  }
 0x457   : > { %2090 = vmatpush3.bf16.msra.mxu0 %v2169_v3  ;;  %v2185_v3 = vld [vmem:[%s2738_s8 + $0x40] ss:$8 sps:$4 sm:$0xff]  }
 0x458   : > { %v936_v18 = vmul.f32 1.442695, %v934_v58  ;;  %2091 = vmatprep.subr.bf16.mxu0 %v2265_v4 }
 0x459   : > { %v1052_v5 = vpop.xlane.xlu0 %1051  ;;  %v933_v6 = vpop.xlane.xlu1 %932 }
 0x45a   : > { %v1056_v7 = vsub.f32 %v1044_v50, %v1052_v5  ;;  %v935_v13 = vsub.f32 %v925_v54, %v933_v6  ;;  %v2170_v5 = vld [vmem:[%s2734_s4 + $0x28] sm:$0xff]   ;;  %v2172_v6 = vld [vmem:[%s2734_s4 + $0x18] sm:$0xff]  }
 0x45b   : > { %2092 = vmatpush3.bf16.msra.mxu0 %v2170_v5  ;;  %v2187_v5 = vld [vmem:[%s2738_s8 + $0x44] ss:$8 sps:$4 sm:$0xff]  }
 0x45c   : > { %v1058_v8 = vmul.f32 1.442695, %v1056_v7  ;;  %v938_v19 = vmul.f32 1.442695, %v935_v13  ;;  %2093 = vmatprep.subr.bf16.mxu0 %v2265_v4 }
 0x45d   : > { %v1055_v9 = vpop.xlane.xlu0 %1054  ;;  %v1176_v10 = vpop.xlane.xlu1 %1175 }
 0x45e   : > { %2224 = vpow2.f32 %v1058_v8  ;;  %v1057_v11 = vsub.f32 %v1047_v56, %v1055_v9  ;;  %v1178_v12 = vsub.f32 %v1168_v59, %v1176_v10  ;;  %v2173_v9 = vld [vmem:[%s2734_s4 + $0x10] sm:$0xff]  }
 0x460   : > { %v1060_v14 = vmul.f32 1.442695, %v1057_v11  ;;  %v1181_v15 = vmul.f32 1.442695, %v1178_v12  ;;  %v2174_v12 = vld [vmem:[%s2734_s4 + $0x8] sm:$0xff]  }
 0x461   : > { %v1173_v16 = vpop.xlane.xlu0 %1172 }
 0x462   : > { %2226 = vpow2.f32 %v1060_v14  ;;  %v1177_v17 = vsub.f32 %v1165_v62, %v1173_v16 }
 0x463   : > { %2228 = vpow2.f32 %v1181_v15  ;;  %v2175_v15 = vld [vmem:[%s2734_s4] sm:$0xff]  }
 0x464   : > { %v1179_v20 = vmul.f32 1.442695, %v1177_v17 }
 0x466   : > { %2230 = vpow2.f32 %v1179_v20 }
 0x467   : > { %2232 = vpow2.f32 %v936_v18 }
 0x468   : > { %2234 = vpow2.f32 %v938_v19 }
 0x46b   : > { %v2225_v21 = vpop.eup %2224 }
 0x46c   : > { %v1062_v22 = vsel %vm807_vm2, %v2225_v21, 0.0 }
 0x46d   : > { %1063 = vadd.xlane.f32.xlu0 %v1062_v22 }
 0x46f   : > { %v2227_v25 = vpop.eup %2226 }
 0x470   : > { %v1065_v26 = vsel %vm807_vm2, %v2227_v25, 0.0  ;;  %v2229_v27 = vpop.eup %2228 }
 0x471   : > { %1066 = vadd.xlane.f32.xlu1 %v1065_v26  ;;  %v1186_v33 = vsel %vm807_vm2, %v2229_v27, 0.0 }
 0x473   : > { %v2231_v28 = vpop.eup %2230 }
 0x474   : > { %v2233_v29 = vpop.eup %2232  ;;  %v1183_v32 = vsel %vm807_vm2, %v2231_v28, 0.0 }
 0x475   : > { %v2235_v34 = vpop.eup %2234  ;;  %1184 = vadd.xlane.f32.xlu0 %v1183_v32  ;;  %1187 = vadd.xlane.f32.xlu1 %v1186_v33  ;;  %v940_v36 = vsel %vm807_vm2, %v2233_v29, 0.0 }
 0x476   : > { %v943_v38 = vsel %vm807_vm2, %v2235_v34, 0.0 }
 0x479   : > { %941 = vadd.xlane.f32.xlu0 %v940_v36  ;;  %944 = vadd.xlane.f32.xlu1 %v943_v38 }
 0x48a   : > { %1073 = vrot.lane.b32.xlu1 %v2473_v57, %s2269_s20 }
 0x48e   : > { %1194 = vrot.lane.b32.xlu1 %v2473_v57, %s2268_s19 }
 0x48f   : > { %952 = vrot.lane.b32.xlu0 %v2473_v57, %s2267_s18 }
 0x4f6   : > { %v1064_v39 = vpop.xlane.xlu0 %1063 }
 0x4fa   : > { %v1067_v40 = vpop.xlane.xlu1 %1066 }
 0x4fe   : > { %v1185_v42 = vpop.xlane.xlu0 %1184  ;;  %v1188_v43 = vpop.xlane.xlu1 %1187 }
 0x502   : > { %v942_v44 = vpop.xlane.xlu0 %941  ;;  %v945_v45 = vpop.xlane.xlu1 %944 }
 0x503   : > { %2236 = vrcp.f32 %v942_v44 }
 0x504   : > { %2238 = vrcp.f32 %v945_v45 }
 0x505   : > { %2240 = vrcp.f32 %v1067_v40 }
 0x506   : > { %v953_v46 = vpop.permute.xlu0 %952  ;;  %2242 = vrcp.f32 %v1064_v39  ;;  %v1074_v52 = vpop.permute.xlu1 %1073 }
 0x507   : > { %2058 = vmatpush3.bf16.msra.mxu1 %v953_v46  ;;  %2244 = vrcp.f32 %v1185_v42  ;;  %v1913_v46 = vld [vmem:[%s2735_s5] ss:$0 sm:$0xff] }
 0x508   : > { %2069 = vmatprep.subr.bf16.mxu1 %v2265_v4  ;;  %2246 = vrcp.f32 %v1188_v43 }
 0x50a   : > { %v1195_v61 = vpop.permute.xlu1 %1194 }
 0x510   : > { %v2237_v47 = vpop.eup %2236 }
 0x511   : > { %v2239_v48 = vpop.eup %2238  ;;  %v948_v49 = vmul.f32 %v2237_v47, %v2233_v29 }
 0x512   : > { %v949_v57 = vmul.f32 %v2239_v48, %v2235_v34  ;;  %v2241_v51 = vpop.eup %2240 }
 0x513   : > { %v2243_v53 = vpop.eup %2242  ;;  %v1071_v54 = vmul.f32 %v2241_v51, %v2227_v25 }
 0x514   : > { %v950_v50 = vpack.c.bf16 %v949_v57, %v948_v49  ;;  %v1070_v55 = vmul.f32 %v2243_v53, %v2225_v21  ;;  %v2245_v56 = vpop.eup %2244  ;;  %v2178_v53 = vld [vmem:[%s2738_s8 + $0x74] ss:$8 sps:$4 sm:$0xff]  }
 0x515   : > { %v2247_v60 = vpop.eup %2246  ;;  %v1191_v62 = vmul.f32 %v2245_v56, %v2231_v28 }
 0x516   : > { %2060 = vmatmul.mubr.msk.bf16.vlgmr.msra.gmra.mxu1 %vm807_vm2, %v950_v50  ;;  %v1072_v59 = vpack.c.bf16 %v1071_v54, %v1070_v55  ;;  %v1192_v63 = vmul.f32 %v2247_v60, %v2229_v27 }
 0x517   : > { %2070 = vmatpush3.bf16.msra.mxu1 %v1074_v52  ;;  %2071 = vmatprep.mubr.msk.bf16.mxu1 %vm2266_vm0, %v2265_v4  ;;  %v2176_v52 = vld [vmem:[%s2738_s8 + $0x70] ss:$8 sps:$4 sm:$0xff]  }
 0x518   : > { %2081 = vmatprep.subr.bf16.mxu1 %v2265_v4  ;;  %v1193_v0 = vpack.c.bf16 %v1192_v63, %v1191_v62  ;;  %v2181_v62 = vld [vmem:[%s2738_s8 + $0x64] ss:$8 sps:$4 sm:$0xff]   ;;  %v2179_v63 = vld [vmem:[%s2738_s8 + $0x60] ss:$8 sps:$4 sm:$0xff]  }
 0x51e   : > { %2072 = vmatmul.mubr.msk.bf16.vlgmr.msra.gmra.mxu1 %vm807_vm2, %v1072_v59 }
 0x51f   : > { %2082 = vmatpush3.bf16.msra.mxu1 %v1195_v61  ;;  %2083 = vmatprep.mubr.msk.bf16.mxu1 %vm2266_vm0, %v2265_v4 }
 0x520   : > { %1538 = vmatprep.subr.bf16.mxu1 %v2178_v53 }
 0x526   : > { %2084 = vmatmul.mubr.msk.bf16.vlgmr.msra.gmra.mxu1 %vm807_vm2, %v1193_v0  ;;  %v2184_v0 = vld [vmem:[%s2738_s8 + $0x54] ss:$8 sps:$4 sm:$0xff]  }
 0x527   : > { %1570 = vmatprep.mubr.bf16.mxu1 %v2264_v2  ;;  %v2171_v2 = vld [vmem:[%s2734_s4 + $0x20] sm:$0xff]   ;;  %1539 = vmatpush1.bf16.msra.mxu1 %v2176_v52 }
 0x528   : > { %2094 = vmatpush3.bf16.msra.mxu0 %v2171_v2  ;;  %1540 = vmatprep.subr.bf16.mxu1 %v2181_v62  ;;  %v2190_v2 = vld [vmem:[%s2738_s8 + $0x34] ss:$8 sps:$4 sm:$0xff]  }
 0x529   : > { %2095 = vmatprep.subr.bf16.mxu0 %v2265_v4 }
 0x52b   : > { %1541 = vmatpush1.bf16.msra.mxu1 %v2179_v63 }
 0x52c   : > { %2096 = vmatpush3.bf16.msra.mxu0 %v2172_v6  ;;  %1542 = vmatprep.subr.bf16.mxu1 %v2184_v0  ;;  %v2188_v6 = vld [vmem:[%s2738_s8 + $0x30] ss:$8 sps:$4 sm:$0xff]  }
 0x52d   : > { %2097 = vmatprep.subr.bf16.mxu0 %v2265_v4 }
 0x52f   : > { %1543 = vmatpush1.bf16.msra.mxu1 %v2182_v1 }
 0x530   : > { %2098 = vmatpush3.bf16.msra.mxu0 %v2173_v9  ;;  %1544 = vmatprep.subr.bf16.mxu1 %v2187_v5  ;;  %v2196_v9 = vld [vmem:[%s2738_s8 + $0x14] ss:$8 sps:$4 sm:$0xff]  }
 0x531   : > { %2099 = vmatprep.subr.bf16.mxu0 %v2265_v4 }
 0x533   : > { %1545 = vmatpush1.bf16.msra.mxu1 %v2185_v3 }
 0x534   : > { %2100 = vmatpush3.bf16.msra.mxu0 %v2174_v12  ;;  %1546 = vmatprep.subr.bf16.mxu1 %v2190_v2  ;;  %v2197_v12 = vld [vmem:[%s2738_s8] ss:$8 sps:$4 sm:$0xff]  }
 0x535   : > { %2101 = vmatprep.subr.bf16.mxu0 %v2265_v4 }
 0x537   : > { %1547 = vmatpush1.bf16.msra.mxu1 %v2188_v6 }
 0x538   : > { %2102 = vmatpush3.bf16.msra.mxu0 %v2175_v15  ;;  %v2203_v15 = vld [vmem:[%s2740_s10 + $0x30] sm:$0xff]  }
 0x5d6   : > { %v992_v7 = vpop.f32.mrf.mxu1 }
 0x5d8   : > { %v2061_v8 = vpop.f32.mrf.mxu1 }
 0x5d9   : > { %v2191_v8 = vld [vmem:[%s2738_s8 + $0x20] ss:$8 sps:$4 sm:$0xff]  }
 0x5da   : > { %v995_v10 = vpop.f32.mrf.mxu1 }
 0x5db   : > { %v2121_v11 = vpack.i.bf16 %v995_v10, %v992_v7  ;;  %v2193_v7 = vld [vmem:[%s2738_s8 + $0x24] ss:$8 sps:$4 sm:$0xff]   ;;  %v2194_v10 = vld [vmem:[%s2738_s8 + $0x10] ss:$8 sps:$4 sm:$0xff]  }
 0x5dc   : > { %v2062_v58 = vpop.f32.mrf.mxu1  ;;  %1548 = vmatprep.subr.bf16.mxu1 %v2193_v7 }
 0x5dd   : > { %2122 = vrot.lane.b32.xlu1 %v2121_v11, %s2268_s19  ;;  %1549 = vmatpush1.bf16.msra.mxu1 %v2191_v8  ;;  %v2199_v11 = vld [vmem:[%s2738_s8 + $0x4] ss:$8 sps:$4 sm:$0xff]   ;;  %v2200_v58 = vld [vmem:[%s2740_s10 + $0x78] sm:$0xff]  }
 0x5de   : > { %v1113_v13 = vpop.f32.mrf.mxu1  ;;  %1550 = vmatprep.subr.bf16.mxu1 %v2196_v9  ;;  %1997 = vmatprep.subr.bf16.mxu0 %v2200_v58 }
 0x5e0   : > { %v2073_v14 = vpop.f32.mrf.mxu1 }
 0x5e1   : > { %1551 = vmatpush1.bf16.msra.mxu1 %v2194_v10  ;;  %v2202_v14 = vld [vmem:[%s2740_s10 + $0x70] sm:$0xff]  }
 0x5e2   : > { %v1116_v16 = vpop.f32.mrf.mxu1  ;;  %1552 = vmatprep.subr.bf16.mxu1 %v2199_v11 }
 0x5e3   : > { %v2126_v17 = vpack.i.bf16 %v1116_v16, %v1113_v13  ;;  %v2201_v13 = vld [vmem:[%s2740_s10 + $0x38] sm:$0xff]   ;;  %v2204_v16 = vld [vmem:[%s2740_s10 + $0x68] sm:$0xff]  }
 0x5e4   : > { %v2074_v18 = vpop.f32.mrf.mxu1 }
 0x5e5   : > { %2127 = vrot.lane.b32.xlu0 %v2126_v17, %s2269_s20  ;;  %1553 = vmatpush1.bf16.msra.mxu1 %v2197_v12  ;;  %v2205_v17 = vld [vmem:[%s2740_s10 + $0x28] sm:$0xff]   ;;  %v2206_v18 = vld [vmem:[%s2740_s10 + $0x60] sm:$0xff]   ;;  %s481_s20 = scalar_lea.vmem %s2744_s14, %s1961_s21 }
 0x5e6   : > { %v1234_v19 = vpop.f32.mrf.mxu1 }
 0x5e8   : > { %v2085_v20 = vpop.f32.mrf.mxu1 }
 0x5e9   : > { %v2208_v20 = vld [vmem:[%s2740_s10 + $0x58] sm:$0xff]  }
 0x5ea   : > { %v1237_v21 = vpop.f32.mrf.mxu1 }
 0x5eb   : > { %v2131_v22 = vpack.i.bf16 %v1237_v21, %v1234_v19  ;;  %v2207_v19 = vld [vmem:[%s2740_s10 + $0x20] sm:$0xff]   ;;  %v2209_v21 = vld [vmem:[%s2740_s10 + $0x18] sm:$0xff]  }
 0x5ec   : > { %v2086_v25 = vpop.f32.mrf.mxu1 }
 0x5ed   : > { %2132 = vrot.lane.b32.xlu1 %v2131_v22, %s2267_s18 }
 0x64f   : > { %v2123_v26 = vpop.permute.xlu1 %2122 }
 0x650   : > { %v2125_v4 = vunpack.i.h.bf16 %v2123_v26  ;;  %v2124_v28 = vunpack.i.l.bf16 %v2123_v26 }
 0x652   : > { %v1266_v34 = vsel %vm759_vm1, %v2515_v41, %v2125_v4  ;;  %v1265_v36 = vsel %vm759_vm1, %v2513_v37, %v2124_v28 }
 0x657   : > { %v2128_v27 = vpop.permute.xlu0 %2127 }
 0x658   : > { %v2130_v29 = vunpack.i.h.bf16 %v2128_v27  ;;  %v2129_v32 = vunpack.i.l.bf16 %v2128_v27 }
 0x65a   : > { %v1269_v40 = vsel %vm1267_vm3, %v1266_v34, %v2130_v29  ;;  %v1268_v42 = vsel %vm1267_vm3, %v1265_v36, %v2129_v32 }
 0x65f   : > { %v2133_v33 = vpop.permute.xlu1 %2132 }
 0x660   : > { %v2135_v38 = vunpack.i.h.bf16 %v2133_v33  ;;  %v2134_v39 = vunpack.i.l.bf16 %v2133_v33  ;;  %v1922_v33 = vld [vmem:[%s2736_s6] ss:$0 sm:$0xff] }
 0x662   : > { %v1272_v43 = vsel %vm1270_vm4, %v1269_v40, %v2135_v38  ;;  %v1271_v44 = vsel %vm1270_vm4, %v1268_v42, %v2134_v39  ;;  %v1923_v39 = vld [vmem:[%s2737_s7] ss:$0 sm:$0xff] }
 0x663   : > { %v1273_v45 = vpack.c.bf16 %v1272_v43, %v1271_v44 }
 0x665   : > { %2104 = vmatmul.mubr.bf16.vlgmr.msra.gmra.mxu0 %v1273_v45  ;;  %v2210_v45 = vld [vmem:[%s2740_s10 + $0x50] sm:$0xff]  }
 0x666   : > { %1998 = vmatpush3.bf16.msra.mxu0 %v2201_v13 }
 0x667   : > { %1999 = vmatprep.subr.bf16.mxu0 %v2202_v14 }
 0x66a   : > { %2000 = vmatpush3.bf16.msra.mxu0 %v2203_v15 }
 0x66b   : > { %2001 = vmatprep.subr.bf16.mxu0 %v2204_v16 }
 0x66e   : > { %2002 = vmatpush3.bf16.msra.mxu0 %v2205_v17 }
 0x66f   : > { %2003 = vmatprep.subr.bf16.mxu0 %v2206_v18 }
 0x672   : > { %2004 = vmatpush3.bf16.msra.mxu0 %v2207_v19 }
 0x673   : > { %2005 = vmatprep.subr.bf16.mxu0 %v2208_v20 }
 0x676   : > { %2006 = vmatpush3.bf16.msra.mxu0 %v2209_v21 }
 0x677   : > { %2007 = vmatprep.subr.bf16.mxu0 %v2210_v45 }
 0x725   : > { %v1379_v47 = vpop.f32.mrf.mxu0 }
 0x726   : > { %v1380_v48 = vadd.f32 %v1913_v46, %v1379_v47  ;;  %v2212_v47 = vld [vmem:[%s2740_s10 + $0x48] sm:$0xff]  }
 0x727   : > { %v2105_v49 = vpop.f32.mrf.mxu0 }
 0x728   : > { %v1386_v41 = vadd.f32 %v1380_v48, %v2429_v23  ;;  %v2213_v48 = vld [vmem:[%s2740_s10 + $0x8] sm:$0xff]   ;;  %v2214_v49 = vld [vmem:[%s2740_s10 + $0x40] sm:$0xff]  }
 0x729   : > { %v1382_v57 = vpop.f32.mrf.mxu0 }
 0x72a   : > { %v1383_v50 = vadd.f32 %v1913_v46, %v1382_v57  ;;  %1388 = vadd.xlane.f32.xlu0 %v1386_v41  ;;  %v2211_v46 = vld [vmem:[%s2740_s10 + $0x10] sm:$0xff]   ;;  %v1446_v57 = vld [vmem:[%s2739_s9] sm:$0x3] }
 0x72b   : > { %v2106_v37 = vpop.f32.mrf.mxu0  ;;  %2008 = vmatpush3.bf16.msra.mxu0 %v2211_v46 }
 0x72c   : > { %v1387_v51 = vadd.f32 %v1383_v50, %v2431_v24  ;;  %2009 = vmatprep.subr.bf16.mxu0 %v2212_v47  ;;  %v1455_v37 = vrot.slane %v1446_v57, %v526_v31 }
 0x72e   : > { %1390 = vadd.xlane.f32.xlu1 %v1387_v51 }
 0x72f   : > { %2010 = vmatpush3.bf16.msra.mxu0 %v2213_v48 }
 0x730   : > { %2011 = vmatprep.subr.bf16.mxu0 %v2214_v49 }
 0x7b3   : > { %v1389_v54 = vpop.xlane.xlu0 %1388 }
 0x7b4   : > { %v1393_v55 = vmul.f32 0.0078125, %v1389_v54 }
 0x7b6   : > { %v2600_v23 = vsub.f32 %v1386_v41, %v1393_v55  ;;  %v2215_v41 = vld [vmem:[%s2740_s10] sm:$0xff]  }
 0x7b7   : > { %v1391_v56 = vpop.xlane.xlu1 %1390  ;;  %2012 = vmatpush3.bf16.msra.mxu0 %v2215_v41 }
 0x7b8   : > { %v1394_v59 = vmul.f32 0.0078125, %v1391_v56  ;;  %v1397_v24 = vmul.f32 %v2600_v23, %v2600_v23 }
 0x7ba   : > { %v2604_v60 = vsub.f32 %v1387_v51, %v1394_v59  ;;  %1399 = vadd.xlane.f32.xlu0 %v1397_v24  ;;  %v1451_v51 = vrot.slane %v1446_v57, %v522_v35 }
 0x7bc   : > { %v1398_v61 = vmul.f32 %v2604_v60, %v2604_v60 }
 0x7be   : > { %1401 = vadd.xlane.f32.xlu0 %v1398_v61 }
 0x843   : > { %v1400_v22 = vpop.xlane.xlu0 %1399 }
 0x844   : > { %v1403_v25 = vmul.f32 0.0078125, %v1400_v22 }
 0x846   : > { %v1405_v26 = vadd.f32 1e-05, %v1403_v25 }
 0x847   : > { %v1402_v27 = vpop.xlane.xlu0 %1401 }
 0x848   : > { %2248 = vrsqrt.f32 %v1405_v26  ;;  %v1404_v4 = vmul.f32 0.0078125, %v1402_v27  ;;  %v1957_v26 = vld [vmem:[%s2742_s12] ss:$0 sm:$0xff] }
 0x84a   : > { %v1406_v28 = vadd.f32 1e-05, %v1404_v4  ;;  %v1958_v4 = vld [vmem:[%s2743_s13] ss:$0 sm:$0xff] }
 0x84c   : > { %2250 = vrsqrt.f32 %v1406_v28 }
 0x855   : > { %v2249_v29 = vpop.eup %2248 }
 0x856   : > { %v1409_v32 = vmul.f32 %v2249_v29, %v2600_v23 }
 0x858   : > { %v1418_v38 = vmul.f32 %v1922_v33, %v1409_v32 }
 0x859   : > { %v2251_v34 = vpop.eup %2250 }
 0x85a   : > { %v1410_v36 = vmul.f32 %v2251_v34, %v2604_v60  ;;  %v1427_v42 = vadd.f32 %v1923_v39, %v1418_v38 }
 0x85c   : > { %v1419_v40 = vmul.f32 %v1922_v33, %v1410_v36 }
 0x85e   : > { %v1428_v43 = vadd.f32 %v1923_v39, %v1419_v40 }
 0x860   : > { %v1429_v44 = vpack.c.bf16 %v1428_v43, %v1427_v42 }
 0x862   : > { %1571 = vmatmul.mubr.bf16.vlgmr.msra.gmra.mxu1 %v1429_v44 }
 0x922   : > { %v1572_v50 = vpop.f32.mrf.mxu1 }
 0x923   : > { %v1573_v23 = vadd.f32 %v1572_v50, %v1451_v51 }
 0x924   : > { %v1574_v52 = vpop.f32.mrf.mxu1 }
 0x925   : > { %v1575_v54 = vadd.f32 %v1574_v52, %v1455_v37  ;;  %v1581_v62 = vmax.f32 %v1573_v23, 0.0 }
 0x926   : > { %v1576_v53 = vpop.f32.mrf.mxu1 }
 0x927   : > { %v1577_v55 = vadd.f32 %v1576_v53, %v1451_v51  ;;  %v1582_v60 = vmax.f32 %v1575_v54, 0.0 }
 0x928   : > { %v1578_v56 = vpop.f32.mrf.mxu1 }
 0x929   : > { %v1579_v59 = vadd.f32 %v1578_v56, %v1455_v37  ;;  %v1583_v24 = vmax.f32 %v1577_v55, 0.0 }
 0x92b   : > { %v1584_v61 = vmax.f32 %v1579_v59, 0.0  ;;  %v1585_v0 = vpack.c.bf16 %v1583_v24, %v1581_v62 }
 0x92d   : > { %v1586_v63 = vpack.c.bf16 %v1584_v61, %v1582_v60 }
 0x92f   : > { %1754 = vmatprep.mubr.bf16.mxu0 %v1586_v63 }
 0x930   : > { %1755 = vmatmul.mubr.bf16.vlgmr.msra.gmra.mxu0 %v1585_v0 }
 0x9f0   : > { %v2013_v1 = vpop.f32.mrf.mxu0 }
 0x9f2   : > { %v2014_v31 = vpop.f32.mrf.mxu0 }
 0x9f3   : > { %v2015_v35 = vadd.f32 %v2014_v31, %v2013_v1 }
 0x9f4   : > { %v2016_v3 = vpop.f32.mrf.mxu0 }
 0x9f5   : > { %v1757_v5 = vadd.f32 %v2015_v35, %v1940_v30 }
 0x9f6   : > { %v2017_v2 = vpop.f32.mrf.mxu0 }
 0x9f7   : > { %v2018_v6 = vadd.f32 %v2017_v2, %v2016_v3  ;;  %v1763_v7 = vadd.f32 %v1757_v5, %v1427_v42 }
 0x9f9   : > { %v1760_v8 = vadd.f32 %v2018_v6, %v1940_v30  ;;  %1765 = vadd.xlane.f32.xlu0 %v1763_v7 }
 0x9fb   : > { %v1764_v9 = vadd.f32 %v1760_v8, %v1428_v43 }
 0x9fd   : > { %1767 = vadd.xlane.f32.xlu1 %v1764_v9 }
 0xa82   : > { %v1766_v10 = vpop.xlane.xlu0 %1765 }
 0xa83   : > { %v1769_v11 = vmul.f32 0.0078125, %v1766_v10 }
 0xa85   : > { %v1771_v12 = vsub.f32 %v1763_v7, %v1769_v11 }
 0xa86   : > { %v1768_v58 = vpop.xlane.xlu1 %1767 }
 0xa87   : > { %v1770_v13 = vmul.f32 0.0078125, %v1768_v58  ;;  %v1773_v14 = vmul.f32 %v1771_v12, %v1771_v12 }
 0xa89   : > { %v1772_v15 = vsub.f32 %v1764_v9, %v1770_v13  ;;  %1775 = vadd.xlane.f32.xlu0 %v1773_v14 }
 0xa8b   : > { %v1774_v16 = vmul.f32 %v1772_v15, %v1772_v15 }
 0xa8d   : > { %1777 = vadd.xlane.f32.xlu1 %v1774_v16 }
 0xb12   : > { %v1776_v17 = vpop.xlane.xlu0 %1775 }
 0xb13   : > { %v1779_v18 = vmul.f32 0.0078125, %v1776_v17 }
 0xb15   : > { %v1781_v19 = vadd.f32 1e-05, %v1779_v18 }
 0xb16   : > { %v1778_v20 = vpop.xlane.xlu1 %1777 }
 0xb17   : > { %2252 = vrsqrt.f32 %v1781_v19  ;;  %v1780_v21 = vmul.f32 0.0078125, %v1778_v20 }
 0xb19   : > { %v1782_v22 = vadd.f32 1e-05, %v1780_v21 }
 0xb1b   : > { %2254 = vrsqrt.f32 %v1782_v22 }
 0xb24   : > { %v2253_v25 = vpop.eup %2252 }
 0xb25   : > { %v1785_v27 = vmul.f32 %v2253_v25, %v1771_v12 }
 0xb27   : > { %v1794_v28 = vmul.f32 %v1957_v26, %v1785_v27 }
 0xb28   : > { %v2255_v29 = vpop.eup %2254 }
 0xb29   : > { %v1803_v32 = vadd.f32 %v1958_v4, %v1794_v28  ;;  %v1786_v33 = vmul.f32 %v2255_v29, %v1772_v15 }
 0xb2b   : > { %1805 = vst [vmem:[%s481_s20] sm:$0xff] %v1803_v32  ;;  %v1795_v34 = vmul.f32 %v1957_v26, %v1786_v33 }
 0xb2d   : > { %v1804_v36 = vadd.f32 %v1958_v4, %v1795_v34 }
 0xb2f   : > { %1806 = vst [vmem:[%s481_s20 + $0x8] sm:$0xff] %v1804_v36 }
 0xb30 PF: > { %s24_s29 = sadd.s32 1, %s2262_s29  }
 0xb31   : > { %p21_p4 = scmp.ge.s32.totalorder %s24_s29, 4  }
 0xb33   :  { %23 = sbr.rel (!%p21_p4) target bundleno = 1 (0x1), region = 109 }

// kernel: transformer_backbone_fwd.29
= control target key start
LH: loop header
LB: loop body
LE: loop exit
PB: predicated region body
PF: predicated region fallthrough
CT: control target
= control target key end

     0   :  { %s902_s24 = smov 0   ;;  %s1036_s0 = inlined_call_operand.vmem [shape: f32[32,160], index: 0, kind: input, shape index: {}]   ;;  %s1037_s1 = inlined_call_operand.vmem [shape: bf16[160,128], index: 1, kind: input, shape index: {}]   ;;  %s1038_s2 = inlined_call_operand.vmem [shape: f32[1,128], index: 2, kind: input, shape index: {}]   ;;  %s1039_s3 = inlined_call_operand.vmem [shape: bf16[128,128], index: 3, kind: input, shape index: {}]   ;;  %s1040_s4 = inlined_call_operand.vmem [shape: f32[1,128], index: 4, kind: input, shape index: {}]   ;;  %s1041_s5 = inlined_call_operand.vmem [shape: bf16[128,2], index: 5, kind: input, shape index: {}]   ;;  %s1042_s6 = inlined_call_operand.vmem [shape: f32[1,2], index: 6, kind: input, shape index: {}]   ;;  %s1043_s7 = inlined_call_operand.vmem [shape: f32[32,2], index: 7, kind: output, shape index: {}]  }
   0x1 LB: > { %s713_s25 = sadd.s32 4294967295, %s857_s24   ;;  %p717_p0 = scmp.ge.s32.totalorder %s857_s24, 1  ;;  %s857_s24 = sphi %s902_s24, %s17_s24  }
   0x2   : > { %p239_p1 = scmp.lt.s32.totalorder %s857_s24, 3 }
   0x4   : > { %p240_p2 = pnand %p717_p0, %p239_p1 }
   0x5   : > { %s718_s28 = sshll.u32 (!%p240_p2), %s713_s25, 1 }
   0x6   : > { %243 = sbr.rel (%p240_p2) target bundleno = 658 (0x292), region = 48  ;;  %p273_p3 = scmp.lt.s32.totalorder (!%p240_p2), %s718_s28, 3 }
   0xb   : > { %v825_v0 = vld [vmem:[%s1037_s1 + $0x38] sm:$0xff]   ;;  %v859_v1 = vmov 0   ;;  %v826_v2 = vld [vmem:[%s1037_s1 + $0x30] sm:$0xff]   ;;  %s1045_s28 = smov (!%p273_p3, %s718_s28), 3  ;;  %v827_v3 = vld [vmem:[%s1037_s1 + $0x28] sm:$0xff]   ;;  %v860_v4 = vmov 0.0  }
   0xc   : > { %383 = vmatprep.subr.bf16.mxu0 %v859_v1  ;;  %s755_s10 = sshll.u32 %s1045_s28, 4  ;;  %774 = vmatprep.subr.bf16.mxu1 %v860_v4  ;;  %v828_v5 = vld [vmem:[%s1037_s1 + $0x20] sm:$0xff]   ;;  %vm379_vm0 = vcmask 261120   ;;  %v835_v9 = vld [vmem:[%s1039_s3 + $0x38] sm:$0xff]   ;;  %v836_v11 = vld [vmem:[%s1039_s3 + $0x30] sm:$0xff]   ;;  %vm861_vm1 = vmmov 0  }
   0xd   : > { %384 = vmatpush1.bf16.msra.mxu0 %v825_v0  ;;  %s926_s13 = scalar_lea.vmem %s1036_s0, %s755_s10  ;;  %v829_v10 = vld [vmem:[%s1037_s1 + $0x18] sm:$0xff]   ;;  %775 = vmatpush3.bf16.msra.mxu1 %v835_v9  ;;  %v830_v12 = vld [vmem:[%s1037_s1 + $0x10] sm:$0xff]   ;;  %v837_v13 = vld [vmem:[%s1039_s3 + $0x28] sm:$0xff]   ;;  %vm654_vm2 = vcmask 15360  }
   0xe   : > { %385 = vmatprep.subr.bf16.mxu0 %v859_v1  ;;  %v287_v6 = vld [vmem:[%s926_s13 + $0x8] sm:$0xff]  ;;  %v289_v7 = vld [vmem:[%s926_s13 + $0x18] sm:$0xff]  ;;  %776 = vmatprep.subr.bf16.mxu1 %v860_v4  ;;  %v838_v15 = vld [vmem:[%s1039_s3 + $0x20] sm:$0xff]  }
   0xf   : > { %v311_v8 = vpack.c.bf16 %v289_v7, %v287_v6  ;;  %v831_v14 = vld [vmem:[%s1037_s1 + $0x8] sm:$0xff]   ;;  %v832_v16 = vld [vmem:[%s1037_s1] sm:$0xff]   ;;  %v839_v17 = vld [vmem:[%s1039_s3 + $0x18] sm:$0xff]   ;;  %790 = vmatprep.mubr.msk.bf16.mxu1 %vm861_vm1, %v860_v4 }
  0x10   : > { %v833_v18 = vld [vmem:[%s1037_s1 + $0x48] sm:$0xff]   ;;  %v834_v19 = vld [vmem:[%s1037_s1 + $0x40] sm:$0xff]   ;;  %v288_v21 = vld [vmem:[%s926_s13 + $0x10] sm:$0xff] }
  0x11   : > { %386 = vmatpush1.bf16.msra.mxu0 %v826_v2  ;;  %734 = vmatprep.mubr.msk.bf16.mxu0 %vm379_vm0, %v311_v8  ;;  %v286_v20 = vld [vmem:[%s926_s13] sm:$0xff]  ;;  %v840_v23 = vld [vmem:[%s1039_s3 + $0x10] sm:$0xff]   ;;  %v841_v24 = vld [vmem:[%s1039_s3 + $0x8] sm:$0xff]   ;;  %s722_s13 = sshll.u32 %s1045_s28, 3 }
  0x12   : > { %387 = vmatprep.subr.bf16.mxu0 %v859_v1  ;;  %777 = vmatpush3.bf16.msra.mxu1 %v836_v11  ;;  %v310_v22 = vpack.c.bf16 %v288_v21, %v286_v20  ;;  %v842_v25 = vld [vmem:[%s1039_s3] sm:$0xff]   ;;  %v843_v35 = vld [vmem:[%s1041_s5 + $0x38] sm:$0xff]   ;;  %v844_v37 = vld [vmem:[%s1041_s5 + $0x30] sm:$0xff]   ;;  %s283_s29 = scalar_lea.vmem %s1043_s7, %s722_s13 }
  0x13   : > { %778 = vmatprep.subr.bf16.mxu1 %v860_v4  ;;  %v723_v26 = vld [vmem:[%s1038_s2] ss:$0 sm:$0xff]  ;;  %v845_v38 = vld [vmem:[%s1041_s5 + $0x28] sm:$0xff]   ;;  %v847_v40 = vld [vmem:[%s1041_s5 + $0x18] sm:$0xff]  }
  0x14   : > { %v846_v39 = vld [vmem:[%s1041_s5 + $0x20] sm:$0xff]   ;;  %v848_v41 = vld [vmem:[%s1041_s5 + $0x10] sm:$0xff]   ;;  %v849_v42 = vld [vmem:[%s1041_s5 + $0x8] sm:$0xff]  }
  0x15   : > { %388 = vmatpush1.bf16.msra.mxu0 %v827_v3  ;;  %v850_v43 = vld [vmem:[%s1041_s5] sm:$0xff]  }
  0x16   : > { %389 = vmatprep.subr.bf16.mxu0 %v859_v1  ;;  %779 = vmatpush3.bf16.msra.mxu1 %v837_v13  ;;  %v735_v44 = vld [vmem:[%s1040_s4] ss:$0 sm:$0xff] }
  0x17   : > { %780 = vmatprep.subr.bf16.mxu1 %v860_v4  ;;  %v744_v54 = vld [vmem:[%s1042_s6] ss:$0 sm:$0xff] }
  0x19   : > { %390 = vmatpush1.bf16.msra.mxu0 %v828_v5 }
  0x1a   : > { %391 = vmatprep.subr.bf16.mxu0 %v859_v1  ;;  %781 = vmatpush3.bf16.msra.mxu1 %v838_v15 }
  0x1b   : > { %782 = vmatprep.subr.bf16.mxu1 %v860_v4 }
  0x1d   : > { %392 = vmatpush1.bf16.msra.mxu0 %v829_v10 }
  0x1e   : > { %393 = vmatprep.subr.bf16.mxu0 %v859_v1  ;;  %783 = vmatpush3.bf16.msra.mxu1 %v839_v17 }
  0x1f   : > { %784 = vmatprep.subr.bf16.mxu1 %v860_v4 }
  0x21   : > { %394 = vmatpush1.bf16.msra.mxu0 %v830_v12 }
  0x22   : > { %395 = vmatprep.subr.bf16.mxu0 %v859_v1  ;;  %785 = vmatpush3.bf16.msra.mxu1 %v840_v23 }
  0x23   : > { %786 = vmatprep.subr.bf16.mxu1 %v860_v4 }
  0x25   : > { %396 = vmatpush1.bf16.msra.mxu0 %v831_v14 }
  0x26   : > { %397 = vmatprep.subr.bf16.mxu0 %v859_v1  ;;  %787 = vmatpush3.bf16.msra.mxu1 %v841_v24 }
  0x27   : > { %788 = vmatprep.subr.bf16.mxu1 %v860_v4 }
  0x29   : > { %398 = vmatpush1.bf16.msra.mxu0 %v832_v16 }
  0x2a   : > { %411 = vmatprep.subr.bf16.mxu0 %v859_v1  ;;  %789 = vmatpush3.bf16.msra.mxu1 %v842_v25 }
  0x2b   : > { %794 = vmatprep.subr.bf16.mxu1 %v860_v4 }
  0x2d   : > { %412 = vmatpush2.bf16.msra.mxu0 %v833_v18 }
  0x2e   : > { %413 = vmatprep.subr.bf16.mxu0 %v859_v1 }
  0x31   : > { %414 = vmatpush2.bf16.msra.mxu0 %v834_v19 }
  0x34   : > { %416 = vmatmul.mubr.bf16.vlgmr.msra.gmra.mxu0 %v310_v22 }
  0xf4   : > { %v417_v27 = vpop.f32.mrf.mxu0 }
  0xf5   : > { %v418_v29 = vadd.f32 %v723_v26, %v417_v27 }
  0xf6   : > { %v419_v28 = vpop.f32.mrf.mxu0 }
  0xf7   : > { %v424_v33 = vmax.f32 %v418_v29, 0.0 }
  0xf8   : > { %v420_v30 = vpop.f32.mrf.mxu0 }
  0xf9   : > { %v421_v31 = vadd.f32 %v723_v26, %v420_v30 }
  0xfa   : > { %v422_v32 = vpop.f32.mrf.mxu0 }
  0xfb   : > { %v425_v34 = vmax.f32 %v421_v31, 0.0 }
  0xfd   : > { %v442_v36 = vpack.c.bf16 %v425_v34, %v424_v33 }
  0xff   : > { %791 = vmatmul.mubr.bf16.vlgmr.msra.gmra.mxu1 %v442_v36 }
 0x100   : > { %795 = vmatpush3.bf16.msra.mxu1 %v843_v35  ;;  %810 = vmatprep.mubr.msk.bf16.mxu1 %vm861_vm1, %v860_v4 }
 0x101   : > { %796 = vmatprep.subr.bf16.mxu1 %v860_v4 }
 0x104   : > { %797 = vmatpush3.bf16.msra.mxu1 %v844_v37 }
 0x105   : > { %798 = vmatprep.subr.bf16.mxu1 %v860_v4 }
 0x108   : > { %799 = vmatpush3.bf16.msra.mxu1 %v845_v38 }
 0x109   : > { %800 = vmatprep.subr.bf16.mxu1 %v860_v4 }
 0x10c   : > { %801 = vmatpush3.bf16.msra.mxu1 %v846_v39 }
 0x10d   : > { %802 = vmatprep.subr.bf16.mxu1 %v860_v4 }
 0x110   : > { %803 = vmatpush3.bf16.msra.mxu1 %v847_v40 }
 0x111   : > { %804 = vmatprep.subr.bf16.mxu1 %v860_v4 }
 0x114   : > { %805 = vmatpush3.bf16.msra.mxu1 %v848_v41 }
 0x115   : > { %806 = vmatprep.subr.bf16.mxu1 %v860_v4 }
 0x118   : > { %807 = vmatpush3.bf16.msra.mxu1 %v849_v42 }
 0x119   : > { %808 = vmatprep.subr.bf16.mxu1 %v860_v4 }
 0x11c   : > { %809 = vmatpush3.bf16.msra.mxu1 %v850_v43 }
 0x1bf   : > { %v532_v45 = vpop.f32.mrf.mxu1 }
 0x1c0   : > { %v533_v47 = vadd.f32 %v735_v44, %v532_v45 }
 0x1c1   : > { %v792_v46 = vpop.f32.mrf.mxu1 }
 0x1c2   : > { %v539_v51 = vmax.f32 %v533_v47, 0.0 }
 0x1c3   : > { %v535_v48 = vpop.f32.mrf.mxu1 }
 0x1c4   : > { %v536_v49 = vadd.f32 %v735_v44, %v535_v48 }
 0x1c5   : > { %v793_v50 = vpop.f32.mrf.mxu1 }
 0x1c6   : > { %v540_v52 = vmax.f32 %v536_v49, 0.0 }
 0x1c8   : > { %v557_v53 = vpack.c.bf16 %v540_v52, %v539_v51 }
 0x1ca   : > { %811 = vmatmul.mubr.bf16.vlgmr.msra.gmra.mxu1 %v557_v53 }
 0x28a   : > { %v647_v55 = vpop.f32.mrf.mxu1 }
 0x28b   : > { %v648_v56 = vadd.f32 %v744_v54, %v647_v55 }
 0x28c   : > { %v812_v57 = vpop.f32.mrf.mxu1 }
 0x28d   : > { %655 = vst.msk [vmem:[%s283_s29] sm:$0xff] %vm654_vm2, %v648_v56 }
 0x28e   : > { %v650_v58 = vpop.f32.mrf.mxu1 }
 0x28f   : > { %v651_v59 = vadd.f32 %v744_v54, %v650_v58 }
 0x290   : > { %v813_v60 = vpop.f32.mrf.mxu1 }
 0x291   : > { %656 = vst.msk [vmem:[%s283_s29 + $0x8] sm:$0xff] %vm654_vm2, %v651_v59 }
 0x292 PF: > { %s17_s24 = sadd.s32 1, %s857_s24  }
 0x293   : > { %p14_p4 = scmp.ge.s32.totalorder %s17_s24, 4  }
 0x295   :  { %16 = sbr.rel (!%p14_p4) target bundleno = 1 (0x1), region = 78 }

</bundles_post_ra>
